<compile_context>
chip_gen: v7x
topology: tpu7x:2x2x1
jax: 0.10.0
libtpu: 0.0.40
codegen_flags: <defaults>
</compile_context>

<pallas_src>
import jax
import jax.numpy as jnp
from jax.experimental import pallas as pl
from jax.experimental.pallas import tpu as pltpu


# ----------------------------- Pallas kernel --------------------------------


def _make_cell_kernel(chid, s_in, q0_row, n_win, offsets):
    """Fused encoder+forecaster ConvLSTM step kernel (padded-layout state)."""

    def kernel(xg_ref, w_ref, mask_ref, wout_ref, bout_ref,
               out_ref, hext_ref, c_ref):
        t = pl.program_id(1)

        @pl.when(t == 0)
        def _init():
            hext_ref[...] = jnp.zeros_like(hext_ref)
            c_ref[...] = jnp.zeros_like(c_ref)

        # Recurrent state cast to bf16 once per step; the padded layout keeps
        # the halo rows at exactly zero so taps need no boundary masking.
        hb = hext_ref[...].astype(jnp.bfloat16)

        # Gate pre-activations: streamed input-frame term (f32), plus the
        # recurrent 3x3 conv as 9 shifted bf16 matmuls accumulated in f32.
        gates = xg_ref[0, 0]                                # (n_win, 4*chid)
        for tap, off in enumerate(offsets):
            start = q0_row + off                            # static slice
            gates = gates + jnp.dot(hb[start:start + n_win, :], w_ref[0, tap],
                                    preferred_element_type=jnp.float32)

        def sigmoid(z):
            return 1.0 / (1.0 + jnp.exp(-z))

        i = sigmoid(gates[:, 0 * chid:1 * chid])
        f = sigmoid(gates[:, 1 * chid:2 * chid])
        g = jnp.tanh(gates[:, 2 * chid:3 * chid])
        o = sigmoid(gates[:, 3 * chid:4 * chid])

        c_new = f * c_ref[...] + i * g
        h_new = (o * jnp.tanh(c_new)) * mask_ref[...]       # zero pad rows
        c_ref[...] = c_new
        hext_ref[q0_row:q0_row + n_win, :] = h_new          # 8-aligned store

        # Fused 1x1 output head -- forecaster steps only.
        @pl.when(t >= s_in)
        def _emit():
            frame = (jnp.sum(h_new * wout_ref[...], axis=-1, keepdims=True)
                     + bout_ref[...])                        # (n_win, 1)
            out_ref[...] = frame.reshape(1, 1, n_win, 1)

    return kernel


# ------------------------------ forward pass --------------------------------


def encoder_forecaster_forward(params, input_bshw, num_output_frames):
    """Equivalent of EncoderForecaster.forward(input, num_output_frames).

    input_bshw: (B, S, H, W) float32 -> output (B, num_output_frames, H, W).
    """
    B, S, H, W = input_bshw.shape
    s_in = S
    chid = params["w_out"].shape[0]
    C4 = 4 * chid
    S_total = S + num_output_frames

    # Padded-grid flat layout used for the recurrent state inside the kernel.
    Hp, Wp = H + 2, W + 2
    P = Hp * Wp
    q0 = Wp + 1                                   # first interior flat index
    span = (H - 1) * Wp + W                       # covers all interior cells
    n_win = ((span + 7) // 8) * 8                 # compute-window rows
    assert q0 + n_win <= P
    shift = (-q0) % 8
    q0_row = q0 + shift                           # 8-aligned state write start
    max_off = Wp + 1
    rows_ext = (((q0_row + max_off + n_win) + 7) // 8) * 8
    offsets = [(dy - 1) * Wp + (dx - 1) for dy in range(3) for dx in range(3)]

    # ---- XLA-side glue: state-independent input gate term, all steps -------
    # TODO(synk): input im2col + feedforward conv precompute stays in XLA.
    frames = jnp.transpose(input_bshw, (1, 0, 2, 3))[..., None]   # (S,B,H,W,1)
    xpad = jnp.pad(frames, ((0, 0), (0, 0), (1, 1), (1, 1), (0, 0)))
    cols = [xpad[:, :, dy:dy + H, dx:dx + W, :]
            for dy in range(3) for dx in range(3)]
    xpatch = jnp.concatenate(cols, axis=-1).reshape(S * B * H * W, 9)
    xg_enc = (xpatch @ params["w_enc_x"]).reshape(S, B, H, W, C4)
    xg_enc = xg_enc + params["b_enc"]
    # Embed into the zero-padded spatial grid, take the flat compute window.
    xg_enc = jnp.pad(xg_enc, ((0, 0), (0, 0), (1, 1), (1, 1), (0, 0)))
    xg_enc = xg_enc.reshape(S, B, P, C4)[:, :, q0:q0 + n_win, :]
    xg_enc = jnp.transpose(xg_enc, (1, 0, 2, 3))                  # (B,S,nw,4C)
    xg_fore = jnp.broadcast_to(params["b_fore"],
                               (B, num_output_frames, n_win, C4))
    xg = jnp.concatenate([xg_enc, xg_fore], axis=1)       # (B,S_total,nw,4C)

    # Recurrent weights for both phases (selected by index_map), bf16 for MXU.
    w_both = jnp.stack([params["w_enc_h"], params["w_fore_h"]],
                       axis=0).astype(jnp.bfloat16)       # (2, 9, chid, 4C)

    # Interior mask over the compute window (keeps padded-layout halo zero).
    q = q0 + jnp.arange(n_win)
    yp, xp = q // Wp, q % Wp
    win_mask = (((yp >= 1) & (yp <= H) & (xp >= 1) & (xp <= W))
                .astype(jnp.float32)[:, None])            # (n_win, 1)

    w_out = params["w_out"].reshape(1, chid).astype(jnp.float32)
    b_out = params["b_out"].reshape(1, 1).astype(jnp.float32)

    kernel = _make_cell_kernel(chid, s_in, q0_row, n_win, offsets)

    out = pl.pallas_call(
        kernel,
        out_shape=jax.ShapeDtypeStruct((B, num_output_frames, n_win, 1),
                                       jnp.float32),
        grid_spec=pltpu.PrefetchScalarGridSpec(
            num_scalar_prefetch=0,
            grid=(B, S_total),
            in_specs=[
                pl.BlockSpec((1, 1, n_win, C4), lambda b, t: (b, t, 0, 0)),
                pl.BlockSpec((1, 9, chid, C4),
                             lambda b, t: ((t >= s_in).astype(jnp.int32),
                                           0, 0, 0)),
                pl.BlockSpec((n_win, 1), lambda b, t: (0, 0)),
                pl.BlockSpec((1, chid), lambda b, t: (0, 0)),
                pl.BlockSpec((1, 1), lambda b, t: (0, 0)),
            ],
            out_specs=pl.BlockSpec(
                (1, 1, n_win, 1),
                lambda b, t: (b, jnp.maximum(t - s_in, 0), 0, 0)),
            scratch_shapes=[
                pltpu.VMEM((rows_ext, chid), jnp.float32),   # h (padded+halo)
                pltpu.VMEM((n_win, chid), jnp.float32),      # c
            ],
        ),
        compiler_params=pltpu.CompilerParams(
            dimension_semantics=("parallel", "arbitrary")),
    )(xg, w_both, win_mask, w_out, b_out)

    # Window -> padded grid -> interior; convert_SBCHW_to_BSHW equivalent.
    flat = jnp.pad(out[..., 0], ((0, 0), (0, 0), (q0, P - (q0 + n_win))))
    grid2d = flat.reshape(B, num_output_frames, Hp, Wp)
    return grid2d[:, :, 1:H + 1, 1:W + 1]


# ------------------------- pure-JAX reference (f32) --------------------------


def reference_forward(params, x, num_output_frames):
    B, S, H, W = x.shape
    chid = params["w_out"].shape[0]

    def conv3x3(inp, w):  # inp (B,H,W,Cin), w (9, Cin, Cout)
        xp = jnp.pad(inp, ((0, 0), (1, 1), (1, 1), (0, 0)))
        cols = [xp[:, dy:dy + H, dx:dx + W, :]
                for dy in range(3) for dx in range(3)]
        patch = jnp.concatenate(cols, axis=-1)
        return patch @ w.reshape(-1, w.shape[-1])

    h = jnp.zeros((B, H, W, chid), jnp.float32)
    c = jnp.zeros_like(h)
    outs = []
    for t in range(S + num_output_frames):
        if t < S:
            xg = (conv3x3(x[:, t, :, :, None],
                          params["w_enc_x"].reshape(9, 1, -1))
                  + params["b_enc"])
            hg = conv3x3(h, params["w_enc_h"])
        else:
            xg = params["b_fore"]
            hg = conv3x3(h, params["w_fore_h"])
        gates = xg + hg
        i = jax.nn.sigmoid(gates[..., 0 * chid:1 * chid])
        f = jax.nn.sigmoid(gates[..., 1 * chid:2 * chid])
        g = jnp.tanh(gates[..., 2 * chid:3 * chid])
        o = jax.nn.sigmoid(gates[..., 3 * chid:4 * chid])
        c = f * c + i * g
        h = o * jnp.tanh(c)
        if t >= S:
            outs.append((h @ params["w_out"])[..., 0] + params["b_out"][0])
    return jnp.stack(outs, axis=1)


# --------------------------------- params ------------------------------------


def init_params(key, chid):
    ks = jax.random.split(key, 7)
    s = 0.1
    return {
        # encoder ConvLSTM: input-frame taps (cin=1) and recurrent taps
        "w_enc_x": s * jax.random.normal(ks[0], (9, 4 * chid), jnp.float32),
        "w_enc_h": s * jax.random.normal(ks[1], (9, chid, 4 * chid), jnp.float32),
        "b_enc": s * jax.random.normal(ks[2], (4 * chid,), jnp.float32),
        # forecaster ConvLSTM (its input frames are zero -> only h-taps matter)
        "w_fore_h": s * jax.random.normal(ks[3], (9, chid, 4 * chid), jnp.float32),
        "b_fore": s * jax.random.normal(ks[4], (4 * chid,), jnp.float32),
        # output head: 1x1 conv chid -> 1 channel
        "w_out": s * jax.random.normal(ks[5], (chid, 1), jnp.float32),
        "b_out": s * jax.random.normal(ks[6], (1,), jnp.float32),
    }


# ---------------------------------- main --------------------------------------


if __name__ == "__main__":
    key = jax.random.PRNGKey(0)
    k_in, k_par = jax.random.split(key)

    B, S, H, W = 2, 4, 16, 16        # (batch, input seq, spatial, spatial)
    CHID = 32                        # ConvLSTM hidden channels
    NUM_OUTPUT_FRAMES = 4            # forecaster sequence length

    x = jax.random.normal(k_in, (B, S, H, W), jnp.float32)
    params = init_params(k_par, CHID)

    fwd = jax.jit(encoder_forecaster_forward, static_argnums=(2,))
    out = jax.block_until_ready(fwd(params, x, NUM_OUTPUT_FRAMES))

    assert out.shape == (B, NUM_OUTPUT_FRAMES, H, W), out.shape
    assert bool(jnp.all(jnp.isfinite(out)))

    ref = reference_forward(params, x, NUM_OUTPUT_FRAMES)
    err = float(jnp.max(jnp.abs(out - ref)))
    assert err < 5e-2, f"max abs err vs reference: {err}"

    print("KERNEL_OK")
</pallas_src>

<mosaic_0001>
module attributes {stable_mosaic.version = 11 : i64} {
  func.func @kernel(%arg0: i32, %arg1: i32, %arg2: memref<1x1x288x128xf32, #tpu.memory_space<vmem>>, %arg3: memref<1x9x32x128xbf16, #tpu.memory_space<vmem>>, %arg4: memref<288x1xf32, #tpu.memory_space<vmem>>, %arg5: memref<1x32xf32, #tpu.memory_space<vmem>>, %arg6: memref<1x1xf32, #tpu.memory_space<vmem>>, %arg7: memref<1x1x288x1xf32, #tpu.memory_space<vmem>>, %arg8: memref<336x32xf32, #tpu.memory_space<vmem>>, %arg9: memref<288x32xf32, #tpu.memory_space<vmem>>) attributes {dimension_semantics = [#tpu.dimension_semantics<parallel>, #tpu.dimension_semantics<arbitrary>], iteration_bounds = array<i64: 2, 8>, scalar_prefetch = 0 : i64, scratch_operands = 2 : i64, tpu.core_type = #tpu.core_type<tc>, window_params = [{transform_indices = @transform_0, window_bounds = array<i64: 1, 1, 288, 128>}, {transform_indices = @transform_1, window_bounds = array<i64: 1, 9, 32, 128>}, {pipeline_mode = #tpu.pipeline_mode<synchronous>, transform_indices = @transform_2, window_bounds = array<i64: 288, 1>}, {pipeline_mode = #tpu.pipeline_mode<synchronous>, transform_indices = @transform_3, window_bounds = array<i64: 1, 32>}, {pipeline_mode = #tpu.pipeline_mode<synchronous>, transform_indices = @transform_4, window_bounds = array<i64: 1, 1>}, {transform_indices = @transform_5, window_bounds = array<i64: 1, 1, 288, 1>}]} {
    %c0_i32 = arith.constant 0 : i32
    %0 = arith.cmpi eq, %arg1, %c0_i32 : i32
    %1 = arith.extui %0 : i1 to i32
    %c0_i32_0 = arith.constant 0 : i32
    %2 = arith.cmpi ne, %1, %c0_i32_0 : i32
    scf.if %2 {
      %cst_59 = arith.constant 0.000000e+00 : f32
      %92 = vector.broadcast %cst_59 : f32 to vector<336x32xf32>
      %c0_60 = arith.constant 0 : index
      %c0_61 = arith.constant 0 : index
      %93 = vector.load %arg8[%c0_60, %c0_61] : memref<336x32xf32, #tpu.memory_space<vmem>>, vector<336x32xf32>
      tpu.vector_store %arg8[%c0_60, %c0_61], %92 {strides = array<i32>} : memref<336x32xf32, #tpu.memory_space<vmem>>, vector<336x32xf32>,
      %cst_62 = arith.constant 0.000000e+00 : f32
      %94 = vector.broadcast %cst_62 : f32 to vector<288x32xf32>
      %c0_63 = arith.constant 0 : index
      %c0_64 = arith.constant 0 : index
      %95 = vector.load %arg9[%c0_63, %c0_64] : memref<288x32xf32, #tpu.memory_space<vmem>>, vector<288x32xf32>
      tpu.vector_store %arg9[%c0_63, %c0_64], %94 {strides = array<i32>} : memref<288x32xf32, #tpu.memory_space<vmem>>, vector<288x32xf32>,
    } else {
    }
    %c0 = arith.constant 0 : index
    %c0_1 = arith.constant 0 : index
    %3 = vector.load %arg8[%c0, %c0_1] : memref<336x32xf32, #tpu.memory_space<vmem>>, vector<336x32xf32>
    %4 = arith.truncf %3 : vector<336x32xf32> to vector<336x32xbf16>
    %c0_2 = arith.constant 0 : index
    %c0_3 = arith.constant 0 : index
    %c0_4 = arith.constant 0 : index
    %c0_5 = arith.constant 0 : index
    %5 = vector.load %arg2[%c0_2, %c0_3, %c0_4, %c0_5] : memref<1x1x288x128xf32, #tpu.memory_space<vmem>>, vector<1x1x288x128xf32>
    %6 = vector.shape_cast %5 : vector<1x1x288x128xf32> to vector<288x128xf32>
    %7 = vector.extract_strided_slice %4 {offsets = [5, 0], sizes = [288, 32], strides = [1, 1]} : vector<336x32xbf16> to vector<288x32xbf16>
    %c0_6 = arith.constant 0 : index
    %c0_7 = arith.constant 0 : index
    %c0_8 = arith.constant 0 : index
    %c0_9 = arith.constant 0 : index
    %8 = vector.load %arg3[%c0_6, %c0_7, %c0_8, %c0_9] : memref<1x9x32x128xbf16, #tpu.memory_space<vmem>>, vector<1x1x32x128xbf16>
    %9 = vector.shape_cast %8 : vector<1x1x32x128xbf16> to vector<32x128xbf16>
    %cst = arith.constant dense<0.000000e+00> : vector<288x128xf32>
    %10 = tpu.matmul %7, %9, %cst {dimension_numbers = #tpu.dot_dimension_numbers<[1], [0], [0], [1], [0, 0, 1, 1], [], []>} : vector<288x32xbf16>, vector<32x128xbf16>, vector<288x128xf32> -> vector<288x128xf32>
    %11 = arith.addf %6, %10 : vector<288x128xf32>
    %12 = vector.extract_strided_slice %4 {offsets = [6, 0], sizes = [288, 32], strides = [1, 1]} : vector<336x32xbf16> to vector<288x32xbf16>
    %c0_10 = arith.constant 0 : index
    %c1 = arith.constant 1 : index
    %c0_11 = arith.constant 0 : index
    %c0_12 = arith.constant 0 : index
    %13 = vector.load %arg3[%c0_10, %c1, %c0_11, %c0_12] : memref<1x9x32x128xbf16, #tpu.memory_space<vmem>>, vector<1x1x32x128xbf16>
    %14 = vector.shape_cast %13 : vector<1x1x32x128xbf16> to vector<32x128xbf16>
    %cst_13 = arith.constant dense<0.000000e+00> : vector<288x128xf32>
    %15 = tpu.matmul %12, %14, %cst_13 {dimension_numbers = #tpu.dot_dimension_numbers<[1], [0], [0], [1], [0, 0, 1, 1], [], []>} : vector<288x32xbf16>, vector<32x128xbf16>, vector<288x128xf32> -> vector<288x128xf32>
    %16 = arith.addf %11, %15 : vector<288x128xf32>
    %17 = vector.extract_strided_slice %4 {offsets = [7, 0], sizes = [288, 32], strides = [1, 1]} : vector<336x32xbf16> to vector<288x32xbf16>
    %c0_14 = arith.constant 0 : index
    %c2 = arith.constant 2 : index
    %c0_15 = arith.constant 0 : index
    %c0_16 = arith.constant 0 : index
    %18 = vector.load %arg3[%c0_14, %c2, %c0_15, %c0_16] : memref<1x9x32x128xbf16, #tpu.memory_space<vmem>>, vector<1x1x32x128xbf16>
    %19 = vector.shape_cast %18 : vector<1x1x32x128xbf16> to vector<32x128xbf16>
    %cst_17 = arith.constant dense<0.000000e+00> : vector<288x128xf32>
    %20 = tpu.matmul %17, %19, %cst_17 {dimension_numbers = #tpu.dot_dimension_numbers<[1], [0], [0], [1], [0, 0, 1, 1], [], []>} : vector<288x32xbf16>, vector<32x128xbf16>, vector<288x128xf32> -> vector<288x128xf32>
    %21 = arith.addf %16, %20 : vector<288x128xf32>
    %22 = vector.extract_strided_slice %4 {offsets = [23, 0], sizes = [288, 32], strides = [1, 1]} : vector<336x32xbf16> to vector<288x32xbf16>
    %c0_18 = arith.constant 0 : index
    %c3 = arith.constant 3 : index
    %c0_19 = arith.constant 0 : index
    %c0_20 = arith.constant 0 : index
    %23 = vector.load %arg3[%c0_18, %c3, %c0_19, %c0_20] : memref<1x9x32x128xbf16, #tpu.memory_space<vmem>>, vector<1x1x32x128xbf16>
    %24 = vector.shape_cast %23 : vector<1x1x32x128xbf16> to vector<32x128xbf16>
    %cst_21 = arith.constant dense<0.000000e+00> : vector<288x128xf32>
    %25 = tpu.matmul %22, %24, %cst_21 {dimension_numbers = #tpu.dot_dimension_numbers<[1], [0], [0], [1], [0, 0, 1, 1], [], []>} : vector<288x32xbf16>, vector<32x128xbf16>, vector<288x128xf32> -> vector<288x128xf32>
    %26 = arith.addf %21, %25 : vector<288x128xf32>
    %27 = vector.extract_strided_slice %4 {offsets = [24, 0], sizes = [288, 32], strides = [1, 1]} : vector<336x32xbf16> to vector<288x32xbf16>
    %c0_22 = arith.constant 0 : index
    %c4 = arith.constant 4 : index
    %c0_23 = arith.constant 0 : index
    %c0_24 = arith.constant 0 : index
    %28 = vector.load %arg3[%c0_22, %c4, %c0_23, %c0_24] : memref<1x9x32x128xbf16, #tpu.memory_space<vmem>>, vector<1x1x32x128xbf16>
    %29 = vector.shape_cast %28 : vector<1x1x32x128xbf16> to vector<32x128xbf16>
    %cst_25 = arith.constant dense<0.000000e+00> : vector<288x128xf32>
    %30 = tpu.matmul %27, %29, %cst_25 {dimension_numbers = #tpu.dot_dimension_numbers<[1], [0], [0], [1], [0, 0, 1, 1], [], []>} : vector<288x32xbf16>, vector<32x128xbf16>, vector<288x128xf32> -> vector<288x128xf32>
    %31 = arith.addf %26, %30 : vector<288x128xf32>
    %32 = vector.extract_strided_slice %4 {offsets = [25, 0], sizes = [288, 32], strides = [1, 1]} : vector<336x32xbf16> to vector<288x32xbf16>
    %c0_26 = arith.constant 0 : index
    %c5 = arith.constant 5 : index
    %c0_27 = arith.constant 0 : index
    %c0_28 = arith.constant 0 : index
    %33 = vector.load %arg3[%c0_26, %c5, %c0_27, %c0_28] : memref<1x9x32x128xbf16, #tpu.memory_space<vmem>>, vector<1x1x32x128xbf16>
    %34 = vector.shape_cast %33 : vector<1x1x32x128xbf16> to vector<32x128xbf16>
    %cst_29 = arith.constant dense<0.000000e+00> : vector<288x128xf32>
    %35 = tpu.matmul %32, %34, %cst_29 {dimension_numbers = #tpu.dot_dimension_numbers<[1], [0], [0], [1], [0, 0, 1, 1], [], []>} : vector<288x32xbf16>, vector<32x128xbf16>, vector<288x128xf32> -> vector<288x128xf32>
    %36 = arith.addf %31, %35 : vector<288x128xf32>
    %37 = vector.extract_strided_slice %4 {offsets = [41, 0], sizes = [288, 32], strides = [1, 1]} : vector<336x32xbf16> to vector<288x32xbf16>
    %c0_30 = arith.constant 0 : index
    %c6 = arith.constant 6 : index
    %c0_31 = arith.constant 0 : index
    %c0_32 = arith.constant 0 : index
    %38 = vector.load %arg3[%c0_30, %c6, %c0_31, %c0_32] : memref<1x9x32x128xbf16, #tpu.memory_space<vmem>>, vector<1x1x32x128xbf16>
    %39 = vector.shape_cast %38 : vector<1x1x32x128xbf16> to vector<32x128xbf16>
    %cst_33 = arith.constant dense<0.000000e+00> : vector<288x128xf32>
    %40 = tpu.matmul %37, %39, %cst_33 {dimension_numbers = #tpu.dot_dimension_numbers<[1], [0], [0], [1], [0, 0, 1, 1], [], []>} : vector<288x32xbf16>, vector<32x128xbf16>, vector<288x128xf32> -> vector<288x128xf32>
    %41 = arith.addf %36, %40 : vector<288x128xf32>
    %42 = vector.extract_strided_slice %4 {offsets = [42, 0], sizes = [288, 32], strides = [1, 1]} : vector<336x32xbf16> to vector<288x32xbf16>
    %c0_34 = arith.constant 0 : index
    %c7 = arith.constant 7 : index
    %c0_35 = arith.constant 0 : index
    %c0_36 = arith.constant 0 : index
    %43 = vector.load %arg3[%c0_34, %c7, %c0_35, %c0_36] : memref<1x9x32x128xbf16, #tpu.memory_space<vmem>>, vector<1x1x32x128xbf16>
    %44 = vector.shape_cast %43 : vector<1x1x32x128xbf16> to vector<32x128xbf16>
    %cst_37 = arith.constant dense<0.000000e+00> : vector<288x128xf32>
    %45 = tpu.matmul %42, %44, %cst_37 {dimension_numbers = #tpu.dot_dimension_numbers<[1], [0], [0], [1], [0, 0, 1, 1], [], []>} : vector<288x32xbf16>, vector<32x128xbf16>, vector<288x128xf32> -> vector<288x128xf32>
    %46 = arith.addf %41, %45 : vector<288x128xf32>
    %47 = vector.extract_strided_slice %4 {offsets = [43, 0], sizes = [288, 32], strides = [1, 1]} : vector<336x32xbf16> to vector<288x32xbf16>
    %c0_38 = arith.constant 0 : index
    %c8 = arith.constant 8 : index
    %c0_39 = arith.constant 0 : index
    %c0_40 = arith.constant 0 : index
    %48 = vector.load %arg3[%c0_38, %c8, %c0_39, %c0_40] : memref<1x9x32x128xbf16, #tpu.memory_space<vmem>>, vector<1x1x32x128xbf16>
    %49 = vector.shape_cast %48 : vector<1x1x32x128xbf16> to vector<32x128xbf16>
    %cst_41 = arith.constant dense<0.000000e+00> : vector<288x128xf32>
    %50 = tpu.matmul %47, %49, %cst_41 {dimension_numbers = #tpu.dot_dimension_numbers<[1], [0], [0], [1], [0, 0, 1, 1], [], []>} : vector<288x32xbf16>, vector<32x128xbf16>, vector<288x128xf32> -> vector<288x128xf32>
    %51 = arith.addf %46, %50 : vector<288x128xf32>
    %52 = vector.extract_strided_slice %51 {offsets = [0, 0], sizes = [288, 32], strides = [1, 1]} : vector<288x128xf32> to vector<288x32xf32>
    %cst_42 = arith.constant 0.000000e+00 : f32
    %53 = vector.broadcast %cst_42 : f32 to vector<288x32xf32>
    %54 = arith.subf %53, %52 : vector<288x32xf32>
    %55 = math.exp %54 : vector<288x32xf32>
    %cst_43 = arith.constant 1.000000e+00 : f32
    %56 = vector.broadcast %cst_43 : f32 to vector<288x32xf32>
    %57 = arith.addf %56, %55 : vector<288x32xf32>
    %cst_44 = arith.constant 1.000000e+00 : f32
    %58 = vector.broadcast %cst_44 : f32 to vector<288x32xf32>
    %59 = arith.divf %58, %57 : vector<288x32xf32>
    %60 = vector.extract_strided_slice %51 {offsets = [0, 32], sizes = [288, 32], strides = [1, 1]} : vector<288x128xf32> to vector<288x32xf32>
    %cst_45 = arith.constant 0.000000e+00 : f32
    %61 = vector.broadcast %cst_45 : f32 to vector<288x32xf32>
    %62 = arith.subf %61, %60 : vector<288x32xf32>
    %63 = math.exp %62 : vector<288x32xf32>
    %cst_46 = arith.constant 1.000000e+00 : f32
    %64 = vector.broadcast %cst_46 : f32 to vector<288x32xf32>
    %65 = arith.addf %64, %63 : vector<288x32xf32>
    %cst_47 = arith.constant 1.000000e+00 : f32
    %66 = vector.broadcast %cst_47 : f32 to vector<288x32xf32>
    %67 = arith.divf %66, %65 : vector<288x32xf32>
    %68 = vector.extract_strided_slice %51 {offsets = [0, 64], sizes = [288, 32], strides = [1, 1]} : vector<288x128xf32> to vector<288x32xf32>
    %69 = math.tanh %68 : vector<288x32xf32>
    %70 = vector.extract_strided_slice %51 {offsets = [0, 96], sizes = [288, 32], strides = [1, 1]} : vector<288x128xf32> to vector<288x32xf32>
    %cst_48 = arith.constant 0.000000e+00 : f32
    %71 = vector.broadcast %cst_48 : f32 to vector<288x32xf32>
    %72 = arith.subf %71, %70 : vector<288x32xf32>
    %73 = math.exp %72 : vector<288x32xf32>
    %cst_49 = arith.constant 1.000000e+00 : f32
    %74 = vector.broadcast %cst_49 : f32 to vector<288x32xf32>
    %75 = arith.addf %74, %73 : vector<288x32xf32>
    %cst_50 = arith.constant 1.000000e+00 : f32
    %76 = vector.broadcast %cst_50 : f32 to vector<288x32xf32>
    %77 = arith.divf %76, %75 : vector<288x32xf32>
    %c0_51 = arith.constant 0 : index
    %c0_52 = arith.constant 0 : index
    %78 = vector.load %arg9[%c0_51, %c0_52] : memref<288x32xf32, #tpu.memory_space<vmem>>, vector<288x32xf32>
    %79 = arith.mulf %67, %78 : vector<288x32xf32>
    %80 = arith.mulf %59, %69 : vector<288x32xf32>
    %81 = arith.addf %79, %80 : vector<288x32xf32>
    %82 = math.tanh %81 : vector<288x32xf32>
    %83 = arith.mulf %77, %82 : vector<288x32xf32>
    %c0_53 = arith.constant 0 : index
    %c0_54 = arith.constant 0 : index
    %84 = vector.load %arg4[%c0_53, %c0_54] : memref<288x1xf32, #tpu.memory_space<vmem>>, vector<288x1xf32>
    %85 = vector.broadcast %84 : vector<288x1xf32> to vector<288x32xf32>
    %86 = arith.mulf %83, %85 : vector<288x32xf32>
    %c0_55 = arith.constant 0 : index
    %c0_56 = arith.constant 0 : index
    %87 = vector.load %arg9[%c0_55, %c0_56] : memref<288x32xf32, #tpu.memory_space<vmem>>, vector<288x32xf32>
    tpu.vector_store %arg9[%c0_55, %c0_56], %81 {strides = array<i32>} : memref<288x32xf32, #tpu.memory_space<vmem>>, vector<288x32xf32>,
    %c24 = arith.constant 24 : index
    %c0_57 = arith.constant 0 : index
    %88 = vector.load %arg8[%c24, %c0_57] : memref<336x32xf32, #tpu.memory_space<vmem>>, vector<288x32xf32>
    tpu.vector_store %arg8[%c24, %c0_57], %86 {strides = array<i32>} : memref<336x32xf32, #tpu.memory_space<vmem>>, vector<288x32xf32>,
    %c4_i32 = arith.constant 4 : i32
    %89 = arith.cmpi sge, %arg1, %c4_i32 : i32
    %90 = arith.extui %89 : i1 to i32
    %c0_i32_58 = arith.constant 0 : i32
    %91 = arith.cmpi ne, %90, %c0_i32_58 : i32
    scf.if %91 {
      %c0_59 = arith.constant 0 : index
      %c0_60 = arith.constant 0 : index
      %92 = vector.load %arg5[%c0_59, %c0_60] : memref<1x32xf32, #tpu.memory_space<vmem>>, vector<1x32xf32>
      %93 = vector.broadcast %92 : vector<1x32xf32> to vector<288x32xf32>
      %94 = arith.mulf %86, %93 : vector<288x32xf32>
      %cst_61 = arith.constant dense<0.000000e+00> : vector<288xf32>
      %95 = vector.multi_reduction <add>, %94, %cst_61 [1] : vector<288x32xf32> to vector<288xf32>
      %96 = vector.shape_cast %95 : vector<288xf32> to vector<288x1xf32>
      %c0_62 = arith.constant 0 : index
      %c0_63 = arith.constant 0 : index
      %97 = vector.load %arg6[%c0_62, %c0_63] : memref<1x1xf32, #tpu.memory_space<vmem>>, vector<1x1xf32>
      %98 = vector.broadcast %97 : vector<1x1xf32> to vector<288x1xf32>
      %99 = arith.addf %96, %98 : vector<288x1xf32>
      %100 = vector.shape_cast %99 : vector<288x1xf32> to vector<1x1x288x1xf32>
      %c0_64 = arith.constant 0 : index
      %c0_65 = arith.constant 0 : index
      %c0_66 = arith.constant 0 : index
      %c0_67 = arith.constant 0 : index
      %101 = vector.load %arg7[%c0_64, %c0_65, %c0_66, %c0_67] : memref<1x1x288x1xf32, #tpu.memory_space<vmem>>, vector<1x1x288x1xf32>
      tpu.vector_store %arg7[%c0_64, %c0_65, %c0_66, %c0_67], %100 {strides = array<i32>} : memref<1x1x288x1xf32, #tpu.memory_space<vmem>>, vector<1x1x288x1xf32>,
    } else {
    }
    return
  }
  func.func @transform_0(%arg0: i32, %arg1: i32) -> (i32, i32, i32, i32) {
    %c0_i32 = arith.constant 0 : i32
    %c0_i32_0 = arith.constant 0 : i32
    %c0_i32_1 = arith.constant 0 : i32
    return %arg0, %arg1, %c0_i32, %c0_i32_0 : i32, i32, i32, i32
  }
  func.func @transform_1(%arg0: i32, %arg1: i32) -> (i32, i32, i32, i32) {
    %c4_i32 = arith.constant 4 : i32
    %0 = arith.cmpi sge, %arg1, %c4_i32 : i32
    %1 = arith.extui %0 : i1 to i32
    %c0_i32 = arith.constant 0 : i32
    %c0_i32_0 = arith.constant 0 : i32
    %c0_i32_1 = arith.constant 0 : i32
    %c0_i32_2 = arith.constant 0 : i32
    return %1, %c0_i32, %c0_i32_0, %c0_i32_1 : i32, i32, i32, i32
  }
  func.func @transform_2(%arg0: i32, %arg1: i32) -> (i32, i32) {
    %c0_i32 = arith.constant 0 : i32
    %c0_i32_0 = arith.constant 0 : i32
    %c0_i32_1 = arith.constant 0 : i32
    return %c0_i32, %c0_i32_0 : i32, i32
  }
  func.func @transform_3(%arg0: i32, %arg1: i32) -> (i32, i32) {
    %c0_i32 = arith.constant 0 : i32
    %c0_i32_0 = arith.constant 0 : i32
    %c0_i32_1 = arith.constant 0 : i32
    return %c0_i32, %c0_i32_0 : i32, i32
  }
  func.func @transform_4(%arg0: i32, %arg1: i32) -> (i32, i32) {
    %c0_i32 = arith.constant 0 : i32
    %c0_i32_0 = arith.constant 0 : i32
    %c0_i32_1 = arith.constant 0 : i32
    return %c0_i32, %c0_i32_0 : i32, i32
  }
  func.func @transform_5(%arg0: i32, %arg1: i32) -> (i32, i32, i32, i32) {
    %c4_i32 = arith.constant 4 : i32
    %0 = arith.subi %arg1, %c4_i32 : i32
    %c0_i32 = arith.constant 0 : i32
    %1 = arith.maxsi %0, %c0_i32 : i32
    %c0_i32_0 = arith.constant 0 : i32
    %c0_i32_1 = arith.constant 0 : i32
    %c0_i32_2 = arith.constant 0 : i32
    return %arg0, %1, %c0_i32_0, %c0_i32_1 : i32, i32, i32, i32
  }
}

</mosaic_0001>

<bundles_post_ra>
// kernel: encoder_forecaster_forward.1
= control target key start
LH: loop header
LB: loop body
LE: loop exit
PB: predicated region body
PF: predicated region fallthrough
CT: control target
= control target key end

     0   :  { %s7201_s20 = smov 0   ;;  %s7203_s21 = smov 0   ;;  %s9683_s0 = inlined_call_operand.vmem [shape: f32[2,8,288,128], index: 0, kind: input, shape index: {}]   ;;  %s9684_s1 = inlined_call_operand.vmem [shape: bf16[2,9,32,128], index: 1, kind: input, shape index: {}]   ;;  %s9685_s2 = inlined_call_operand.vmem [shape: f32[288,1], index: 2, kind: input, shape index: {}]   ;;  %s9686_s3 = inlined_call_operand.vmem [shape: f32[1,32], index: 3, kind: input, shape index: {}]   ;;  %s9687_s4 = inlined_call_operand.<no memory space> [shape: f32[1,1], index: 4, kind: input, shape index: {}]   ;;  %s9688_s5 = inlined_call_operand.vmem [shape: f32[2,4,288,1], index: 5, kind: output, shape index: {}]  }
   0x1   :  { %v10_v0 = vstv %s9687_s4  ;;  %s7205_s22 = smov 0   ;;  %s7207_s23 = smov 0  }
   0x2   :  { %11 = vst [vmem:[#allocation4] sm:$0x1] %v10_v0  ;;  %s7209_s24 = smov 0  }
   0x3 LB: > { %s26_s4 = sadd.s32 1, %s7151_s22  ;;  %s29_s25 = sadd.s32 1, %s7155_s23  ;;  %s7159_s24 = sphi %s7209_s24, %s17_s24   ;;  %s7155_s23 = sphi %s7207_s23, %s9941_s23   ;;  %s7151_s22 = sphi %s7205_s22, %s9940_s22   ;;  %s7147_s21 = sphi %s7203_s21, %s9939_s21   ;;  %s7143_s20 = sphi %s7201_s20, %s9938_s20  }
   0x4   : > { %p27_p0 = scmp.ge.s32.totalorder %s26_s4, 8  ;;  %p5661_p1 = scmp.ge.s32.totalorder %s7159_s24, 1 }
   0x5   : > { %p233_p2 = scmp.lt.s32.totalorder %s7159_s24, 17 }
   0x6   : > { %s9943_s4 = smov (%p27_p0, %s26_s4), 0  ;;  %s9945_s25 = smov (!%p27_p0, %s29_s25), %s7155_s23 }
   0x7   : > { %p234_p3 = pnand %p5661_p1, %p233_p2  ;;  %p31_p4 = scmp.ge.s32.totalorder %s9945_s25, 2 }
   0x9   : > { %s9947_s25 = smov (%p31_p4, %s9945_s25), 0  ;;  %237 = sbr.rel (%p234_p3) target bundleno = 1522 (0x5f2), region = 40 }
  0x10   : > { %p279_p5 = scmp.lt.s32.totalorder %s7147_s21, 1  ;;  %p281_p6 = scmp.lt.s32.totalorder %s7143_s20, 7 }
  0x11   : > { %p288_p7 = scmp.ge.s32.totalorder %s7143_s20, 4  ;;  %s5664_s26 = sadd.s32 4294967292, %s7143_s20 }
  0x12   : > { %s9949_s21 = smov (!%p279_p5, %s7147_s21), 1  ;;  %p298_p8 = scmp.gt.s32.totalorder %s5664_s26, 0 }
  0x13   : > { %s282_s27 = scalar_select %p281_p6, %s7143_s20, 7 }
  0x14   : > { %s6760_s28 = smul.u32 288, %s9949_s21  ;;  %p5665_p9 = scmp.lt.s32.totalorder %s5664_s26, 3 }
  0x15   : > { %s6759_s29 = smul.u32 36, %s282_s27  ;;  %s9953_s26 = smov (!%p298_p8, %s5664_s26), 0 }
  0x16   : > { %s289_s30 = scalar_select %p288_p7, 1, 0 }
  0x17   : > { %s285_s6 = sadd.s32 %s6760_s28, %s6759_s29  ;;  %s6763_s11 = smul.u32 144, %s9949_s21 }
  0x18   : > { %s5662_s7 = sshll.u32 %s285_s6, 3  ;;  %p290_p10 = scmp.lt.s32.totalorder %s289_s30, 1 }
  0x19   : > { %s7240_s10 = scalar_lea.vmem %s9683_s0, %s5662_s7  ;;  %s9955_s26 = smov (!%p5665_p9, %s9953_s26), 3 }
  0x1a   : > { %s9951_s30 = smov (!%p290_p10, %s289_s30), 1  ;;  %s6762_s16 = smul.u32 36, %s9955_s26 }
  0x1b   : > { %s6761_s12 = smul.u32 144, %s9951_s30  ;;  %p5671_p11 = scmp.ne.s32.totalorder %s7143_s20, 0 }
  0x1c   : > { %s306_s17 = sadd.s32 %s6763_s11, %s6762_s16  ;;  %vm317_vm0 = vcmask (!%p5671_p11), 261120   ;;  %v7161_v1 = vmov (!%p5671_p11), 0.0  }
  0x1d   : > { %s7245_s15 = scalar_lea.vmem %s9684_s1, %s6761_s12  ;;  %s5670_s18 = sshll.u32 %s306_s17, 3  ;;  %318 = vst.msk [vmem:[#allocation2] sm:$0xff] (!%p5671_p11), %vm317_vm0, %v7161_v1  ;;  %319 = vst.msk [vmem:[#allocation2 + $0x8] sm:$0xff] (!%p5671_p11), %vm317_vm0, %v7161_v1 }
  0x1e   : > { %s7250_s28 = scalar_lea.vmem %s9688_s5, %s5670_s18  ;;  %316 = sbr.rel (%p5671_p11) target bundleno = 68 (0x44), region = 44  ;;  %320 = vst.msk [vmem:[#allocation2 + $0x10] sm:$0xff] (!%p5671_p11), %vm317_vm0, %v7161_v1  ;;  %321 = vst.msk [vmem:[#allocation2 + $0x18] sm:$0xff] (!%p5671_p11), %vm317_vm0, %v7161_v1 }
  0x1f   : > { %322 = vst.msk [vmem:[#allocation2 + $0x20] sm:$0xff] (!%p5671_p11), %vm317_vm0, %v7161_v1  ;;  %323 = vst.msk [vmem:[#allocation2 + $0x28] sm:$0xff] (!%p5671_p11), %vm317_vm0, %v7161_v1 }
  0x20   : > { %324 = vst.msk [vmem:[#allocation2 + $0x30] sm:$0xff] (!%p5671_p11), %vm317_vm0, %v7161_v1  ;;  %325 = vst.msk [vmem:[#allocation2 + $0x38] sm:$0xff] (!%p5671_p11), %vm317_vm0, %v7161_v1 }
  0x21   : > { %326 = vst.msk [vmem:[#allocation2 + $0x40] sm:$0xff] (!%p5671_p11), %vm317_vm0, %v7161_v1  ;;  %327 = vst.msk [vmem:[#allocation2 + $0x48] sm:$0xff] (!%p5671_p11), %vm317_vm0, %v7161_v1 }
  0x22   : > { %328 = vst.msk [vmem:[#allocation2 + $0x50] sm:$0xff] (!%p5671_p11), %vm317_vm0, %v7161_v1  ;;  %329 = vst.msk [vmem:[#allocation2 + $0x58] sm:$0xff] (!%p5671_p11), %vm317_vm0, %v7161_v1 }
  0x23   : > { %330 = vst.msk [vmem:[#allocation2 + $0x60] sm:$0xff] (!%p5671_p11), %vm317_vm0, %v7161_v1  ;;  %331 = vst.msk [vmem:[#allocation2 + $0x68] sm:$0xff] (!%p5671_p11), %vm317_vm0, %v7161_v1 }
  0x24   : > { %332 = vst.msk [vmem:[#allocation2 + $0x70] sm:$0xff] (!%p5671_p11), %vm317_vm0, %v7161_v1  ;;  %333 = vst.msk [vmem:[#allocation2 + $0x78] sm:$0xff] (!%p5671_p11), %vm317_vm0, %v7161_v1 }
  0x25   : > { %334 = vst.msk [vmem:[#allocation2 + $0x80] sm:$0xff] %vm317_vm0, %v7161_v1  ;;  %335 = vst.msk [vmem:[#allocation2 + $0x88] sm:$0xff] %vm317_vm0, %v7161_v1 }
  0x26   : > { %336 = vst.msk [vmem:[#allocation2 + $0x90] sm:$0xff] %vm317_vm0, %v7161_v1  ;;  %337 = vst.msk [vmem:[#allocation2 + $0x98] sm:$0xff] %vm317_vm0, %v7161_v1 }
  0x27   : > { %338 = vst.msk [vmem:[#allocation2 + $0xa0] sm:$0xff] %vm317_vm0, %v7161_v1  ;;  %339 = vst.msk [vmem:[#allocation2 + $0xa8] sm:$0xff] %vm317_vm0, %v7161_v1 }
  0x28   : > { %340 = vst.msk [vmem:[#allocation2 + $0xb0] sm:$0xff] %vm317_vm0, %v7161_v1  ;;  %341 = vst.msk [vmem:[#allocation2 + $0xb8] sm:$0xff] %vm317_vm0, %v7161_v1 }
  0x29   : > { %342 = vst.msk [vmem:[#allocation2 + $0xc0] sm:$0xff] %vm317_vm0, %v7161_v1  ;;  %343 = vst.msk [vmem:[#allocation2 + $0xc8] sm:$0xff] %vm317_vm0, %v7161_v1 }
  0x2a   : > { %344 = vst.msk [vmem:[#allocation2 + $0xd0] sm:$0xff] %vm317_vm0, %v7161_v1  ;;  %345 = vst.msk [vmem:[#allocation2 + $0xd8] sm:$0xff] %vm317_vm0, %v7161_v1 }
  0x2b   : > { %346 = vst.msk [vmem:[#allocation2 + $0xe0] sm:$0xff] %vm317_vm0, %v7161_v1  ;;  %347 = vst.msk [vmem:[#allocation2 + $0xe8] sm:$0xff] %vm317_vm0, %v7161_v1 }
  0x2c   : > { %348 = vst.msk [vmem:[#allocation2 + $0xf0] sm:$0xff] %vm317_vm0, %v7161_v1  ;;  %349 = vst.msk [vmem:[#allocation2 + $0xf8] sm:$0xff] %vm317_vm0, %v7161_v1 }
  0x2d   : > { %350 = vst.msk [vmem:[#allocation2 + $0x100] sm:$0xff] %vm317_vm0, %v7161_v1  ;;  %351 = vst.msk [vmem:[#allocation2 + $0x108] sm:$0xff] %vm317_vm0, %v7161_v1 }
  0x2e   : > { %352 = vst.msk [vmem:[#allocation2 + $0x110] sm:$0xff] %vm317_vm0, %v7161_v1  ;;  %353 = vst.msk [vmem:[#allocation2 + $0x118] sm:$0xff] %vm317_vm0, %v7161_v1 }
  0x2f   : > { %354 = vst.msk [vmem:[#allocation2 + $0x120] sm:$0xff] %vm317_vm0, %v7161_v1  ;;  %355 = vst.msk [vmem:[#allocation2 + $0x128] sm:$0xff] %vm317_vm0, %v7161_v1 }
  0x30   : > { %356 = vst.msk [vmem:[#allocation2 + $0x130] sm:$0xff] %vm317_vm0, %v7161_v1  ;;  %357 = vst.msk [vmem:[#allocation2 + $0x138] sm:$0xff] %vm317_vm0, %v7161_v1 }
  0x31   : > { %358 = vst.msk [vmem:[#allocation2 + $0x140] sm:$0xff] %vm317_vm0, %v7161_v1  ;;  %359 = vst.msk [vmem:[#allocation2 + $0x148] sm:$0xff] %vm317_vm0, %v7161_v1 }
  0x32   : > { %360 = vst.msk [vmem:[#allocation3] sm:$0xff] %vm317_vm0, %v7161_v1  ;;  %361 = vst.msk [vmem:[#allocation3 + $0x8] sm:$0xff] %vm317_vm0, %v7161_v1 }
  0x33   : > { %362 = vst.msk [vmem:[#allocation3 + $0x10] sm:$0xff] %vm317_vm0, %v7161_v1  ;;  %363 = vst.msk [vmem:[#allocation3 + $0x18] sm:$0xff] %vm317_vm0, %v7161_v1 }
  0x34   : > { %364 = vst.msk [vmem:[#allocation3 + $0x20] sm:$0xff] %vm317_vm0, %v7161_v1  ;;  %365 = vst.msk [vmem:[#allocation3 + $0x28] sm:$0xff] %vm317_vm0, %v7161_v1 }
  0x35   : > { %366 = vst.msk [vmem:[#allocation3 + $0x30] sm:$0xff] %vm317_vm0, %v7161_v1  ;;  %367 = vst.msk [vmem:[#allocation3 + $0x38] sm:$0xff] %vm317_vm0, %v7161_v1 }
  0x36   : > { %368 = vst.msk [vmem:[#allocation3 + $0x40] sm:$0xff] %vm317_vm0, %v7161_v1  ;;  %369 = vst.msk [vmem:[#allocation3 + $0x48] sm:$0xff] %vm317_vm0, %v7161_v1 }
  0x37   : > { %370 = vst.msk [vmem:[#allocation3 + $0x50] sm:$0xff] %vm317_vm0, %v7161_v1  ;;  %371 = vst.msk [vmem:[#allocation3 + $0x58] sm:$0xff] %vm317_vm0, %v7161_v1 }
  0x38   : > { %372 = vst.msk [vmem:[#allocation3 + $0x60] sm:$0xff] %vm317_vm0, %v7161_v1  ;;  %373 = vst.msk [vmem:[#allocation3 + $0x68] sm:$0xff] %vm317_vm0, %v7161_v1 }
  0x39   : > { %374 = vst.msk [vmem:[#allocation3 + $0x70] sm:$0xff] %vm317_vm0, %v7161_v1  ;;  %375 = vst.msk [vmem:[#allocation3 + $0x78] sm:$0xff] %vm317_vm0, %v7161_v1 }
  0x3a   : > { %376 = vst.msk [vmem:[#allocation3 + $0x80] sm:$0xff] %vm317_vm0, %v7161_v1  ;;  %377 = vst.msk [vmem:[#allocation3 + $0x88] sm:$0xff] %vm317_vm0, %v7161_v1 }
  0x3b   : > { %378 = vst.msk [vmem:[#allocation3 + $0x90] sm:$0xff] %vm317_vm0, %v7161_v1  ;;  %379 = vst.msk [vmem:[#allocation3 + $0x98] sm:$0xff] %vm317_vm0, %v7161_v1 }
  0x3c   : > { %380 = vst.msk [vmem:[#allocation3 + $0xa0] sm:$0xff] %vm317_vm0, %v7161_v1  ;;  %381 = vst.msk [vmem:[#allocation3 + $0xa8] sm:$0xff] %vm317_vm0, %v7161_v1 }
  0x3d   : > { %382 = vst.msk [vmem:[#allocation3 + $0xb0] sm:$0xff] %vm317_vm0, %v7161_v1  ;;  %383 = vst.msk [vmem:[#allocation3 + $0xb8] sm:$0xff] %vm317_vm0, %v7161_v1 }
  0x3e   : > { %384 = vst.msk [vmem:[#allocation3 + $0xc0] sm:$0xff] %vm317_vm0, %v7161_v1  ;;  %385 = vst.msk [vmem:[#allocation3 + $0xc8] sm:$0xff] %vm317_vm0, %v7161_v1 }
  0x3f   : > { %386 = vst.msk [vmem:[#allocation3 + $0xd0] sm:$0xff] %vm317_vm0, %v7161_v1  ;;  %387 = vst.msk [vmem:[#allocation3 + $0xd8] sm:$0xff] %vm317_vm0, %v7161_v1 }
  0x40   : > { %388 = vst.msk [vmem:[#allocation3 + $0xe0] sm:$0xff] %vm317_vm0, %v7161_v1  ;;  %389 = vst.msk [vmem:[#allocation3 + $0xe8] sm:$0xff] %vm317_vm0, %v7161_v1 }
  0x41   : > { %390 = vst.msk [vmem:[#allocation3 + $0xf0] sm:$0xff] %vm317_vm0, %v7161_v1  ;;  %391 = vst.msk [vmem:[#allocation3 + $0xf8] sm:$0xff] %vm317_vm0, %v7161_v1 }
  0x42   : > { %392 = vst.msk [vmem:[#allocation3 + $0x100] sm:$0xff] %vm317_vm0, %v7161_v1  ;;  %393 = vst.msk [vmem:[#allocation3 + $0x108] sm:$0xff] %vm317_vm0, %v7161_v1 }
  0x43   : > { %394 = vst.msk [vmem:[#allocation3 + $0x110] sm:$0xff] %vm317_vm0, %v7161_v1  ;;  %395 = vst.msk [vmem:[#allocation3 + $0x118] sm:$0xff] %vm317_vm0, %v7161_v1 }
  0x44 PF: > { %v6813_v2 = vld [vmem:[%s7245_s15] sm:$0xff]   ;;  %v6815_v4 = vld [vmem:[%s7245_s15 + $0x8] sm:$0xff]   ;;  %v398_v8 = vld [vmem:[#allocation2 + $0x10] sm:$0xff]  ;;  %vm682_vm1 = vcmask 261120   ;;  %vm499_vm2 = vsmask.f32 5376 }
  0x45   : > { %v6814_v3 = vld [vmem:[%s7245_s15 + $0x40] sm:$0xff]   ;;  %6071 = vmatprep.subr.bf16.mxu1 %v6813_v2  ;;  %v6816_v5 = vld [vmem:[%s7245_s15 + $0x48] sm:$0xff]   ;;  %v399_v9 = vld [vmem:[#allocation2 + $0x18] sm:$0xff]  ;;  %vm1899_vm3 = vcmask 1043456   ;;  %vm2221_vm4 = vsmask.f32 3328 }
  0x46   : > { %6231 = vmatprep.subr.bf16.mxu0 %v6814_v3  ;;  %6072 = vmatpush3.bf16.msra.mxu1 %v6813_v2  ;;  %v396_v6 = vld [vmem:[#allocation2] sm:$0xff]  ;;  %v397_v7 = vld [vmem:[#allocation2 + $0x8] sm:$0xff]  ;;  %v7415_v13 = vpack.c.bf16 %v399_v9, %v398_v8  ;;  %v402_v15 = vld [vmem:[#allocation2 + $0x30] sm:$0xff]  ;;  %vm974_vm5 = vcmask 1044480   ;;  %vm1296_vm6 = vsmask.f32 4352 }
  0x47   : > { %6232 = vmatpush3.bf16.msra.mxu0 %v6814_v3  ;;  %6073 = vmatprep.subr.bf16.mxu1 %v6815_v4  ;;  %v7413_v10 = vpack.c.bf16 %v397_v7, %v396_v6  ;;  %v400_v11 = vld [vmem:[#allocation2 + $0x20] sm:$0xff]  ;;  %v401_v12 = vld [vmem:[#allocation2 + $0x28] sm:$0xff]  ;;  %v403_v16 = vld [vmem:[#allocation2 + $0x38] sm:$0xff]  ;;  %vm2824_vm7 = vcmask 1042432   ;;  %s7162_s21 = smov 32   ;;  %s7164_s8 = smov 64  }
  0x48   : > { %6233 = vmatprep.subr.bf16.mxu0 %v6816_v5  ;;  %v7417_v14 = vpack.c.bf16 %v401_v12, %v400_v11  ;;  %v7421_v19 = vpack.c.bf16 %v403_v16, %v402_v15  ;;  %v6817_v20 = vld [vmem:[%s7245_s15 + $0x50] sm:$0xff]   ;;  %v7425_v21 = vshrl.u32 %v7415_v13, 16  ;;  %v7428_v22 = vshll.u32 %v7415_v13, 16  ;;  %v404_v25 = vld [vmem:[#allocation2 + $0x40] sm:$0xff]  ;;  %v405_v30 = vld [vmem:[#allocation2 + $0x48] sm:$0xff]  ;;  %p5884_p12 = scmp.lt.s32.totalorder %s7143_s20, 4 }
  0x49   : > { %v9691_v17 = vshrl.u32 %v7413_v10, 16  ;;  %v9690_v18 = vshll.u32 %v7413_v10, 16  ;;  %v1900_v23 = vrot.slane %v7415_v13, 4  ;;  %v406_v31 = vld [vmem:[#allocation2 + $0x50] sm:$0xff]  ;;  %v407_v36 = vld [vmem:[#allocation2 + $0x58] sm:$0xff]  ;;  %v408_v37 = vld [vmem:[#allocation2 + $0x60] sm:$0xff]  ;;  %v7457_v47 = vpack.c.bf16 %v405_v30, %v404_v25 }
  0x4a   : > { %6074 = vmatpush3.bf16.msra.mxu1 %v6815_v4  ;;  %v1901_v24 = vrot.slane %v7417_v14, 4  ;;  %v7437_v28 = vshrl.u32 %v7417_v14, 16  ;;  %v7440_v29 = vshll.u32 %v7417_v14, 16  ;;  %v511_v32 = vrot.slane %v7425_v21, 2  ;;  %v409_v38 = vld [vmem:[#allocation2 + $0x68] sm:$0xff]  ;;  %v6818_v43 = vld [vmem:[%s7245_s15 + $0x58] sm:$0xff]  }
  0x4b   : > { %6234 = vmatpush3.bf16.msra.mxu0 %v6816_v5  ;;  %v503_v26 = vrot.slane %v9691_v17, 2  ;;  %v506_v27 = vrot.slane %v9690_v18, 3  ;;  %v514_v33 = vrot.slane %v7428_v22, 3  ;;  %v1903_v35 = vrot.slane %v7421_v19, 4  ;;  %v410_v56 = vld [vmem:[#allocation2 + $0x70] sm:$0xff]  ;;  %v411_v57 = vld [vmem:[#allocation2 + $0x78] sm:$0xff] }
  0x4c   : > { %9752 = vst [vmem:[#allocation5_spill] sm:$0xff] %v7437_v28  ;;  %9753 = vst [vmem:[#allocation6_spill] sm:$0xff] %v7440_v29  ;;  %6271 = vmatprep.subr.bf16.mxu0 %v6817_v20  ;;  %v1902_v34 = vsel %vm1899_vm3, %v1900_v23, %v1901_v24  ;;  %v520_v40 = vrot.slane %v7437_v28, 2  ;;  %v523_v41 = vrot.slane %v7440_v29, 3  ;;  %v7450_v42 = vshrl.u32 %v7421_v19, 16  ;;  %v6819_v62 = vld [vmem:[%s7245_s15 + $0x10] sm:$0xff]  }
  0x4d   : > { %v507_v39 = vor.u32 %v506_v27, %v503_v26  ;;  %6235 = vmatprep.mubr.msk.bf16.mxu0 %vm682_vm1, %v1902_v34  ;;  %v515_v44 = vor.u32 %v514_v33, %v511_v32  ;;  %v1904_v45 = vsel %vm1899_vm3, %v1901_v24, %v1903_v35  ;;  %v7455_v46 = vshll.u32 %v7421_v19, 16  ;;  %v412_v3 = vld [vmem:[#allocation2 + $0x80] sm:$0xff]  ;;  %v413_v4 = vld [vmem:[#allocation2 + $0x88] sm:$0xff]  ;;  %6111 = vmatprep.subr.bf16.mxu1 %v6819_v62  ;;  %v414_v30 = vld [vmem:[#allocation2 + $0x90] sm:$0xff]  ;;  %s7166_s11 = smov (!%p5884_p12), 96  }
  0x4e   : > { %9754 = vst [vmem:[#allocation7_spill] sm:$0xff] %v7450_v42  ;;  %v524_v48 = vor.u32 %v523_v41, %v520_v40  ;;  %6236 = vmatmul.mubr.msk.bf16.vlgmr.msra.gmra.mrb[0].mxu0 %vm682_vm1, %v1904_v45  ;;  %v529_v49 = vrot.slane %v7450_v42, 2  ;;  %v7461_v50 = vpack.c.bf16 %v407_v36, %v406_v31  ;;  %v7463_v51 = vpack.c.bf16 %v409_v38, %v408_v37  ;;  %v7493_v9 = vld [vmem:[%s7245_s15 + $0x60] sm:$0xff]   ;;  %v415_v31 = vld [vmem:[#allocation2 + $0x98] sm:$0xff] }
  0x4f   : > { %9755 = vst [vmem:[#allocation8_spill] sm:$0xff] %v7455_v46  ;;  %v516_v52 = vsel %vm499_vm2, %v507_v39, %v515_v44  ;;  %6272 = vmatpush3.bf16.msra.mxu0 %v6817_v20  ;;  %v532_v53 = vrot.slane %v7455_v46, 3  ;;  %v1905_v54 = vrot.slane %v7457_v47, 4  ;;  %v7469_v55 = vshrl.u32 %v7457_v47, 16 }
  0x50   : > { %6075 = vmatprep.mubr.msk.bf16.mxu1 %vm682_vm1, %v516_v52  ;;  %v525_v58 = vsel %vm499_vm2, %v515_v44, %v524_v48  ;;  %v7474_v59 = vshll.u32 %v7457_v47, 16  ;;  %v1907_v60 = vrot.slane %v7461_v50, 4  ;;  %v7478_v61 = vshrl.u32 %v7461_v50, 16  ;;  %6273 = vmatprep.subr.bf16.mxu0 %v6818_v43  ;;  %v416_v52 = vld [vmem:[#allocation2 + $0xa0] sm:$0xff] }
  0x51   : > { %9756 = vst [vmem:[#allocation9_spill] sm:$0xff] %v7469_v55  ;;  %6076 = vmatmul.mubr.msk.bf16.vlgmr.msra.gmra.mrb[0].mxu1 %vm682_vm1, %v525_v58  ;;  %v533_v63 = vor.u32 %v532_v53, %v529_v49  ;;  %v1906_v0 = vsel %vm1899_vm3, %v1903_v35, %v1905_v54  ;;  %v538_v1 = vrot.slane %v7469_v55, 2  ;;  %v7485_v2 = vshll.u32 %v7461_v50, 16  ;;  %v417_v53 = vld [vmem:[#allocation2 + $0xa8] sm:$0xff]  ;;  %v7545_v58 = vld [vmem:[%s7245_s15 + $0x20] sm:$0xff]  }
  0x52   : > { %9757 = vst [vmem:[#allocation10_spill] sm:$0xff] %v7474_v59  ;;  %9758 = vst [vmem:[#allocation11_spill] sm:$0xff] %v7478_v61  ;;  %6239 = vmatprep.mubr.msk.bf16.mxu0 %vm682_vm1, %v1906_v0  ;;  %v541_v5 = vrot.slane %v7474_v59, 3  ;;  %v1908_v6 = vsel %vm1899_vm3, %v1905_v54, %v1907_v60  ;;  %v547_v7 = vrot.slane %v7478_v61, 2  ;;  %v1909_v8 = vrot.slane %v7463_v51, 4  ;;  %6112 = vmatpush3.bf16.msra.mxu1 %v6819_v62 }
  0x53   : > { %9759 = vst [vmem:[#allocation12_spill] sm:$0xff] %v7485_v2  ;;  %v534_v11 = vsel %vm499_vm2, %v524_v48, %v533_v63  ;;  %v550_v12 = vrot.slane %v7485_v2, 3  ;;  %v7498_v15 = vshrl.u32 %v7463_v51, 16  ;;  %v7501_v16 = vshll.u32 %v7463_v51, 16  ;;  %6274 = vmatpush3.bf16.msra.mxu0 %v6818_v43  ;;  %v6821_v43 = vld [vmem:[%s7245_s15 + $0x18] sm:$0xff]  }
  0x54   : > { %6079 = vmatprep.mubr.msk.bf16.mxu1 %vm682_vm1, %v534_v11  ;;  %v542_v20 = vor.u32 %v541_v5, %v538_v1  ;;  %v1910_v23 = vsel %vm1899_vm3, %v1907_v60, %v1909_v8  ;;  %v7505_v24 = vpack.c.bf16 %v411_v57, %v410_v56  ;;  %v7508_v27 = vpack.c.bf16 %v413_v4, %v412_v3  ;;  %v418_v1 = vld [vmem:[#allocation2 + $0xb0] sm:$0xff]  ;;  %v419_v3 = vld [vmem:[#allocation2 + $0xb8] sm:$0xff] }
  0x55   : > { %9760 = vst [vmem:[#allocation13_spill] sm:$0xff] %v7498_v15  ;;  %9761 = vst [vmem:[#allocation14_spill] sm:$0xff] %v7501_v16  ;;  %v551_v25 = vor.u32 %v550_v12, %v547_v7  ;;  %v556_v26 = vrot.slane %v7498_v15, 2  ;;  %6311 = vmatprep.subr.bf16.mxu0 %v7493_v9  ;;  %v559_v33 = vrot.slane %v7501_v16, 3  ;;  %v7526_v41 = vpack.c.bf16 %v415_v31, %v414_v30  ;;  %v421_v30 = vld [vmem:[#allocation2 + $0xc8] sm:$0xff] }
  0x56   : > { %v543_v32 = vsel %vm499_vm2, %v533_v63, %v542_v20  ;;  %6240 = vmatmul.mubr.msk.bf16.gmra.mrb[4].mxu0 %vm682_vm1, %v1908_v6  ;;  %v7515_v34 = vshrl.u32 %v7505_v24, 16  ;;  %v7518_v35 = vshll.u32 %v7505_v24, 16  ;;  %v1911_v37 = vrot.slane %v7505_v24, 4  ;;  %6113 = vmatprep.subr.bf16.mxu1 %v6821_v43 }
  0x57   : > { %v552_v36 = vsel %vm499_vm2, %v542_v20, %v551_v25  ;;  %6243 = vmatprep.mubr.msk.bf16.mxu0 %vm682_vm1, %v1910_v23  ;;  %v1913_v40 = vrot.slane %v7508_v27, 4  ;;  %v7531_v44 = vshrl.u32 %v7508_v27, 16  ;;  %v7534_v45 = vshll.u32 %v7508_v27, 16  ;;  %6114 = vmatpush3.bf16.msra.mxu1 %v6821_v43 }
  0x58   : > { %9762 = vst [vmem:[#allocation15_spill] sm:$0xff] %v7515_v34  ;;  %9763 = vst [vmem:[#allocation16_spill] sm:$0xff] %v7518_v35  ;;  %v565_v38 = vrot.slane %v7515_v34, 2  ;;  %v568_v39 = vrot.slane %v7518_v35, 3  ;;  %v560_v48 = vor.u32 %v559_v33, %v556_v26  ;;  %v7538_v49 = vshrl.u32 %v7526_v41, 16  ;;  %6151 = vmatprep.subr.bf16.mxu1 %v7545_v58  ;;  %v420_v26 = vld [vmem:[#allocation2 + $0xc0] sm:$0xff] }
  0x59   : > { %6080 = vmatmul.mubr.msk.bf16.gmra.mrb[4].mxu1 %vm682_vm1, %v543_v32  ;;  %9764 = vst [vmem:[#allocation17_spill] sm:$0xff] %v7531_v44  ;;  %9765 = vst [vmem:[#allocation18_spill] sm:$0xff] %v7534_v45  ;;  %v1912_v54 = vsel %vm1899_vm3, %v1909_v8, %v1911_v37  ;;  %v7542_v57 = vshll.u32 %v7526_v41, 16  ;;  %v1914_v60 = vsel %vm1899_vm3, %v1911_v37, %v1913_v40  ;;  %v574_v62 = vrot.slane %v7531_v44, 2  ;;  %v422_v33 = vld [vmem:[#allocation2 + $0xd0] sm:$0xff] }
  0x5a   : > { %6083 = vmatprep.mubr.msk.bf16.mxu1 %vm682_vm1, %v552_v36  ;;  %9766 = vst [vmem:[#allocation19_spill] sm:$0xff] %v7538_v49  ;;  %v569_v56 = vor.u32 %v568_v39, %v565_v38  ;;  %v577_v63 = vrot.slane %v7534_v45, 3  ;;  %v7550_v0 = vpack.c.bf16 %v417_v53, %v416_v52  ;;  %v561_v4 = vsel %vm499_vm2, %v551_v25, %v560_v48  ;;  %v423_v36 = vld [vmem:[#allocation2 + $0xd8] sm:$0xff] }
  0x5b   : > { %9767 = vst [vmem:[#allocation20_spill] sm:$0xff] %v7542_v57  ;;  %v1915_v5 = vrot.slane %v7526_v41, 4  ;;  %v583_v7 = vrot.slane %v7538_v49, 2  ;;  %v586_v8 = vrot.slane %v7542_v57, 3  ;;  %v7561_v12 = vpack.c.bf16 %v419_v3, %v418_v1 }
  0x5c   : > { %v570_v6 = vsel %vm499_vm2, %v560_v48, %v569_v56  ;;  %v1917_v11 = vrot.slane %v7550_v0, 4  ;;  %v578_v20 = vor.u32 %v577_v63, %v574_v62  ;;  %v7565_v23 = vshrl.u32 %v7550_v0, 16 }
  0x5d   : > { %v7568_v25 = vshll.u32 %v7550_v0, 16  ;;  %v7572_v31 = vshrl.u32 %v7561_v12, 16  ;;  %v7575_v32 = vshll.u32 %v7561_v12, 16  ;;  %v1916_v37 = vsel %vm1899_vm3, %v1913_v40, %v1915_v5 }
  0x5e   : > { %6244 = vmatmul.mubr.msk.bf16.gmra.mrb[8].mxu0 %vm682_vm1, %v1912_v54  ;;  %9768 = vst [vmem:[#allocation21_spill] sm:$0xff] %v7565_v23  ;;  %v587_v38 = vor.u32 %v586_v8, %v583_v7  ;;  %v2222_v39 = vrot.slane %v7425_v21, 4  ;;  %v2223_v43 = vrot.slane %v7428_v22, 5  ;;  %v1918_v48 = vsel %vm1899_vm3, %v1915_v5, %v1917_v11 }
  0x5f   : > { %6247 = vmatprep.mubr.msk.bf16.mxu0 %vm682_vm1, %v1914_v60  ;;  %9769 = vst [vmem:[#allocation22_spill] sm:$0xff] %v7568_v25  ;;  %v2225_v52 = vrot.slane %v7437_v28, 4  ;;  %v2226_v53 = vrot.slane %v7440_v29, 5  ;;  %v579_v54 = vsel %vm499_vm2, %v569_v56, %v578_v20  ;;  %v9689_v60 = vrot.slane %v7561_v12, 4  ;;  %v433_v28 = vld [vmem:[#allocation2 + $0x128] sm:$0xff] }
  0x60   : > { %v7585_v62 = vpack.c.bf16 %v421_v30, %v420_v26  ;;  %v592_v40 = vrot.slane %v7565_v23, 2  ;;  %v595_v63 = vrot.slane %v7568_v25, 3  ;;  %v601_v1 = vrot.slane %v7572_v31, 2 }
  0x61   : > { %6084 = vmatmul.mubr.msk.bf16.gmra.mrb[8].mxu1 %vm682_vm1, %v561_v4  ;;  %v604_v3 = vrot.slane %v7575_v32, 3  ;;  %v588_v4 = vsel %vm499_vm2, %v578_v20, %v587_v38  ;;  %v7594_v5 = vpack.c.bf16 %v423_v36, %v422_v33  ;;  %v2224_v56 = vor.u32 %v2223_v43, %v2222_v39 }
  0x62   : > { %6087 = vmatprep.mubr.msk.bf16.mxu1 %vm682_vm1, %v570_v6  ;;  %v2227_v6 = vor.u32 %v2226_v53, %v2225_v52  ;;  %v7598_v7 = vshrl.u32 %v7585_v62, 16  ;;  %v7601_v8 = vshll.u32 %v7585_v62, 16  ;;  %v2229_v26 = vrot.slane %v7450_v42, 4  ;;  %v424_v52 = vld [vmem:[#allocation2 + $0xe0] sm:$0xff]  ;;  %v425_v53 = vld [vmem:[#allocation2 + $0xe8] sm:$0xff] }
  0x63   : > { %v2230_v30 = vrot.slane %v7455_v46, 5  ;;  %v596_v20 = vor.u32 %v595_v63, %v592_v40  ;;  %v1920_v33 = vsel %vm1899_vm3, %v1917_v11, %v9689_v60  ;;  %v605_v36 = vor.u32 %v604_v3, %v601_v1  ;;  %v426_v40 = vld [vmem:[#allocation2 + $0xf0] sm:$0xff]  ;;  %v427_v63 = vld [vmem:[#allocation2 + $0xf8] sm:$0xff] }
  0x64   : > { %9770 = vst [vmem:[#allocation23_spill] sm:$0xff] %v7598_v7  ;;  %9771 = vst [vmem:[#allocation24_spill] sm:$0xff] %v7601_v8  ;;  %v7613_v39 = vshll.u32 %v7594_v5, 16  ;;  %v2233_v43 = vrot.slane %v7469_v55, 4  ;;  %v613_v11 = vrot.slane %v7601_v8, 3  ;;  %v7623_v18 = vpack.c.bf16 %v425_v53, %v424_v52  ;;  %v429_v52 = vld [vmem:[#allocation2 + $0x108] sm:$0xff] }
  0x65   : > { %v2231_v1 = vor.u32 %v2230_v30, %v2229_v26  ;;  %v597_v3 = vsel %vm499_vm2, %v587_v38, %v596_v20  ;;  %v606_v60 = vsel %vm499_vm2, %v596_v20, %v605_v36  ;;  %v7628_v55 = vpack.c.bf16 %v427_v63, %v426_v40  ;;  %v430_v40 = vld [vmem:[#allocation2 + $0x110] sm:$0xff] }
  0x66   : > { %6248 = vmatmul.mubr.msk.bf16.gmra.mrb[12].mxu0 %vm682_vm1, %v1916_v37  ;;  %v7610_v37 = vshrl.u32 %v7594_v5, 16  ;;  %9773 = vst [vmem:[#allocation26_spill] sm:$0xff] %v7613_v39  ;;  %v7636_v30 = vshrl.u32 %v7623_v18, 16  ;;  %v7639_v20 = vshll.u32 %v7623_v18, 16  ;;  %v2241_v63 = vrot.slane %v7498_v15, 4 }
  0x67   : > { %6251 = vmatprep.mubr.msk.bf16.mxu0 %vm682_vm1, %v1918_v48  ;;  %v2234_v48 = vrot.slane %v7474_v59, 5  ;;  %v7632_v38 = vsel %vm2221_vm4, %v2227_v6, %v2231_v1  ;;  %vm3146_vm8 = vsmask.f32 2304  ;;  %vm5501_vm9 = vcmask (!%p5884_p12), 7168  }
  0x68   : > { %9772 = vst [vmem:[#allocation25_spill] sm:$0xff] %v7610_v37  ;;  %v619_v17 = vrot.slane %v7610_v37, 2  ;;  %9774 = vst [vmem:[#allocation27_spill] sm:$0xff] %v7636_v30  ;;  %v631_v15 = vrot.slane %v7639_v20, 3 }
  0x69   : > { %6088 = vmatmul.mubr.msk.bf16.gmra.mrb[12].mxu1 %vm682_vm1, %v579_v54  ;;  %v2228_v54 = vsel %vm2221_vm4, %v2224_v56, %v2227_v6  ;;  %v622_v56 = vrot.slane %v7613_v39, 3  ;;  %v2235_v59 = vor.u32 %v2234_v48, %v2233_v43  ;;  %9775 = vst [vmem:[#allocation28_spill] sm:$0xff] %v7639_v20  ;;  %v2238_v43 = vrot.slane %v7485_v2, 5  ;;  %v428_v48 = vld [vmem:[#allocation2 + $0x100] sm:$0xff] }
  0x6a   : > { %6091 = vmatprep.mubr.msk.bf16.mxu1 %vm682_vm1, %v588_v4  ;;  %v610_v4 = vrot.slane %v7598_v7, 2  ;;  %v9710_v2 = vrot.slane %v7415_v13, 3 }
  0x6b   : > { %v623_v53 = vor.u32 %v622_v56, %v619_v17  ;;  %v7644_v6 = vsel %vm2221_vm4, %v2231_v1, %v2235_v59  ;;  %v6822_v17 = vld [vmem:[%s7245_s15 + $0x68] sm:$0xff]   ;;  %v7658_v56 = vpack.c.bf16 %v429_v52, %v428_v48 }
  0x6c   : > { %v614_v26 = vor.u32 %v613_v11, %v610_v4  ;;  %v2242_v4 = vrot.slane %v7501_v16, 5  ;;  %v431_v11 = vld [vmem:[#allocation2 + $0x118] sm:$0xff] }
  0x6d   : > { %v7675_v52 = vpack.c.bf16 %v431_v11, %v430_v40  ;;  %v2245_v40 = vrot.slane %v7515_v34, 4 }
  0x6e   : > { %6252 = vmatmul.mubr.msk.bf16.gmra.mrb[16].mxu0 %vm682_vm1, %v1920_v33  ;;  %v2237_v33 = vrot.slane %v7478_v61, 4  ;;  %v615_v1 = vsel %vm499_vm2, %v605_v36, %v614_v26  ;;  %v628_v61 = vrot.slane %v7636_v30, 2  ;;  %v624_v42 = vsel %vm499_vm2, %v614_v26, %v623_v53 }
  0x6f   : > { %6275 = vmatprep.mubr.msk.bf16.mxu0 %vm682_vm1, %v2228_v54  ;;  %v7647_v54 = vshrl.u32 %v7628_v55, 16  ;;  %9776 = vst [vmem:[#allocation29_spill] sm:$0xff] %v7675_v52  ;;  %v2243_v29 = vor.u32 %v2242_v4, %v2241_v63  ;;  %v2246_v4 = vrot.slane %v7518_v35, 5  ;;  %v7694_v11 = vshrl.u32 %v7675_v52, 16 }
  0x70   : > { %v2239_v46 = vor.u32 %v2238_v43, %v2237_v33  ;;  %v7678_v33 = vld [vmem:[%s7245_s15 + $0x70] sm:$0xff]   ;;  %v7682_v43 = vshrl.u32 %v7658_v56, 16  ;;  %v632_v26 = vor.u32 %v631_v15, %v628_v61  ;;  %v2250_v61 = vrot.slane %v7534_v45, 5 }
  0x71   : > { %6092 = vmatmul.mubr.msk.bf16.gmra.mrb[16].mxu1 %vm682_vm1, %v597_v3  ;;  %v975_v3 = vrot.slane %v7413_v10, 3  ;;  %v637_v36 = vrot.slane %v7647_v54, 2  ;;  %v655_v45 = vrot.slane %v7694_v11, 2 }
  0x72   : > { %6095 = vmatprep.mubr.msk.bf16.mxu1 %vm682_vm1, %v606_v60  ;;  %v7650_v60 = vshll.u32 %v7628_v55, 16  ;;  %v646_v15 = vrot.slane %v7682_v43, 2 }
  0x73   : > { %v7667_v16 = vsel %vm974_vm5, %v975_v3, %v9710_v2  ;;  %v7689_v3 = vsel %vm2221_vm4, %v2235_v59, %v2239_v46  ;;  %v432_v2 = vld [vmem:[#allocation2 + $0x120] sm:$0xff]  ;;  %v2249_v59 = vrot.slane %v7531_v44, 4 }
  0x74   : > { %v640_v48 = vrot.slane %v7650_v60, 3  ;;  %v7710_v35 = vpack.c.bf16 %v433_v28, %v432_v2  ;;  %v2253_v2 = vrot.slane %v7538_v49, 4  ;;  %v1300_v49 = vrot.slane %v7425_v21, 3 }
  0x75   : > { %v2251_v34 = vor.u32 %v2250_v61, %v2249_v59  ;;  %v2257_v61 = vrot.slane %v7565_v23, 4  ;;  %v2261_v23 = vrot.slane %v7572_v31, 4 }
  0x76   : > { %6276 = vmatmul.mubr.msk.bf16.vlgmr.msra.gmra.mrb[0].mxu0 %vm682_vm1, %v7632_v38  ;;  %v641_v63 = vor.u32 %v640_v48, %v637_v36  ;;  %v633_v48 = vsel %vm499_vm2, %v623_v53, %v632_v26  ;;  %v7720_v53 = vshrl.u32 %v7710_v35, 16  ;;  %v7723_v28 = vshll.u32 %v7710_v35, 16 }
  0x77   : > { %6312 = vmatpush3.bf16.msra.mxu0 %v7493_v9  ;;  %6279 = vmatprep.mubr.msk.bf16.mxu0 %vm682_vm1, %v7644_v6  ;;  %v7685_v9 = vshll.u32 %v7658_v56, 16 }
  0x78   : > { %6313 = vmatprep.subr.bf16.mxu0 %v6822_v17  ;;  %9777 = vst [vmem:[#allocation30_spill] sm:$0xff] %v7723_v28 }
  0x79   : > { %6096 = vmatmul.mubr.msk.bf16.gmra.mrb[20].mxu1 %vm682_vm1, %v615_v1  ;;  %v7697_v1 = vshll.u32 %v7675_v52, 16  ;;  %v649_v36 = vrot.slane %v7685_v9, 3 }
  0x7a   : > { %6099 = vmatprep.mubr.msk.bf16.mxu1 %vm682_vm1, %v624_v42  ;;  %v7700_v42 = vsel %vm2221_vm4, %v2239_v46, %v2243_v29  ;;  %v642_v46 = vsel %vm499_vm2, %v632_v26, %v641_v63  ;;  %v2254_v26 = vrot.slane %v7542_v57, 5 }
  0x7b   : > { %6314 = vmatpush3.bf16.msra.mxu0 %v6822_v17  ;;  %v2247_v17 = vor.u32 %v2246_v4, %v2245_v40  ;;  %v658_v44 = vrot.slane %v7697_v1, 3  ;;  %v650_v52 = vor.u32 %v649_v36, %v646_v15  ;;  %v2258_v15 = vrot.slane %v7568_v25, 5 }
  0x7c   : > { %6351 = vmatprep.subr.bf16.mxu0 %v7678_v33  ;;  %v2255_v57 = vor.u32 %v2254_v26, %v2253_v2  ;;  %v9779_v2 = vshll.u32 %v7413_v10, 16  ;;  %v2262_v26 = vrot.slane %v7575_v32, 5 }
  0x7d   : > { %v7728_v40 = vsel %vm2221_vm4, %v2243_v29, %v2247_v17  ;;  %v659_v4 = vor.u32 %v658_v44, %v655_v45  ;;  %v7731_v59 = vsel %vm2221_vm4, %v2247_v17, %v2251_v34  ;;  %v651_v36 = vsel %vm499_vm2, %v641_v63, %v650_v52 }
  0x7e   : > { %6280 = vmatmul.mubr.msk.bf16.gmra.mrb[4].mxu0 %vm682_vm1, %v7689_v3  ;;  %v2259_v44 = vor.u32 %v2258_v15, %v2257_v61  ;;  %v9778_v45 = vshrl.u32 %v7413_v10, 16  ;;  %v7748_v25 = vsel %vm2221_vm4, %v2251_v34, %v2255_v57  ;;  %v2265_v61 = vrot.slane %v7598_v7, 4  ;;  %v434_v15 = vld [vmem:[#allocation2 + $0x130] sm:$0xff] }
  0x7f   : > { %6283 = vmatprep.mubr.msk.bf16.mxu0 %vm682_vm1, %v7700_v42  ;;  %v660_v29 = vsel %vm499_vm2, %v650_v52, %v659_v4  ;;  %v1298_v52 = vrot.slane %v9779_v2, 4  ;;  %v2266_v34 = vrot.slane %v7601_v8, 5  ;;  %v2263_v21 = vor.u32 %v2262_v26, %v2261_v23 }
  0x80   : > { %v1297_v17 = vrot.slane %v9778_v45, 3  ;;  %v1301_v45 = vrot.slane %v7428_v22, 4  ;;  %v980_v26 = vrot.slane %v7421_v19, 3 }
  0x81   : > { %6100 = vmatmul.mubr.msk.bf16.gmra.mrb[24].mxu1 %vm682_vm1, %v633_v48  ;;  %v664_v48 = vrot.slane %v7720_v53, 2  ;;  %v7785_v23 = vsel %vm2221_vm4, %v2259_v44, %v2263_v21 }
  0x82   : > { %6103 = vmatprep.mubr.msk.bf16.mxu1 %vm682_vm1, %v642_v46  ;;  %v667_v46 = vrot.slane %v7723_v28, 3 }
  0x84   : > { %v668_v63 = vor.u32 %v667_v46, %v664_v48  ;;  %v7758_v48 = vsel %vm2221_vm4, %v2255_v57, %v2259_v44  ;;  %v1299_v46 = vor.u32 %v1298_v52, %v1297_v17  ;;  %v2267_v57 = vor.u32 %v2266_v34, %v2265_v61  ;;  %v436_v17 = vld [vmem:[#allocation2 + $0x140] sm:$0xff] }
  0x85   : > { %v2269_v61 = vrot.slane %v7610_v37, 4 }
  0x86   : > { %6284 = vmatmul.mubr.msk.bf16.gmra.mrb[8].mxu0 %vm682_vm1, %v7728_v40  ;;  %v669_v10 = vsel %vm499_vm2, %v659_v4, %v668_v63  ;;  %v437_v4 = vld [vmem:[#allocation2 + $0x148] sm:$0xff] }
  0x87   : > { %6287 = vmatprep.mubr.msk.bf16.mxu0 %vm682_vm1, %v7731_v59  ;;  %v7795_v34 = vpack.c.bf16 %v437_v4, %v436_v17 }
  0x89   : > { %6104 = vmatmul.mubr.msk.bf16.gmra.mrb[28].mxu1 %vm682_vm1, %v651_v36  ;;  %v435_v36 = vld [vmem:[#allocation2 + $0x138] sm:$0xff]  ;;  %9782 = vst [vmem:[#allocation33_spill] sm:$0xff] %v7795_v34  ;;  %v9743_v37 = vshll.u32 %v7795_v34, 16 }
  0x8a   : > { %6107 = vmatprep.mubr.msk.bf16.mxu1 %vm682_vm1, %v660_v29  ;;  %v7761_v29 = vor.u32 %v1301_v45, %v1300_v49  ;;  %v7766_v2 = vpack.c.bf16 %v435_v36, %v434_v15  ;;  %v978_v49 = vrot.slane %v7417_v14, 3  ;;  %v2270_v15 = vrot.slane %v7613_v39, 5 }
  0x8b   : > { %v7791_v36 = vsel %vm2221_vm4, %v2263_v21, %v2267_v57  ;;  %v2274_v45 = vrot.slane %v7639_v20, 5  ;;  %v9744_v21 = vshrl.u32 %v7795_v34, 16 }
  0x8c   : > { %v7772_v22 = vsel %vm1296_vm6, %v1299_v46, %v7761_v29  ;;  %v7779_v63 = vshrl.u32 %v7766_v2, 16  ;;  %v7782_v52 = vshll.u32 %v7766_v2, 16  ;;  %v9783_v46 = vrot.slane %v7415_v13, 3  ;;  %v6825_v13 = vld [vmem:[%s7245_s15 + $0x28] sm:$0xff]  }
  0x8d   : > { %v2271_v17 = vor.u32 %v2270_v15, %v2269_v61  ;;  %v984_v15 = vrot.slane %v7461_v50, 3 }
  0x8e   : > { %6288 = vmatmul.mubr.msk.bf16.gmra.mrb[12].mxu0 %vm682_vm1, %v7748_v25  ;;  %9780 = vst [vmem:[#allocation31_spill] sm:$0xff] %v7779_v63  ;;  %9781 = vst [vmem:[#allocation32_spill] sm:$0xff] %v7782_v52  ;;  %v979_v44 = vsel %vm974_vm5, %v9783_v46, %v978_v49  ;;  %v2294_v39 = vrot.slane %v7782_v52, 5  ;;  %v2584_v46 = vrot.slane %v9744_v21, 4  ;;  %v982_v52 = vrot.slane %v7457_v47, 3 }
  0x8f   : > { %6291 = vmatprep.mubr.msk.bf16.mxu0 %vm682_vm1, %v7758_v48  ;;  %v7819_v61 = vsel %vm2221_vm4, %v2267_v57, %v2271_v17 }
  0x90   : > { %v983_v57 = vsel %vm974_vm5, %v980_v26, %v982_v52 }
  0x91   : > { %6108 = vmatmul.mubr.msk.bf16.gmra.mrb[32].mxu1 %vm682_vm1, %v669_v10  ;;  %v2293_v10 = vrot.slane %v7779_v63, 4  ;;  %v2587_v63 = vrot.slane %v9743_v37, 5  ;;  %v7825_v37 = vld [vmem:[%s7245_s15 + $0x30] sm:$0xff]  }
  0x92   : > { %6115 = vmatprep.mubr.msk.bf16.mxu1 %vm682_vm1, %v7667_v16  ;;  %v2273_v16 = vrot.slane %v7636_v30, 4  ;;  %v981_v30 = vsel %vm974_vm5, %v978_v49, %v980_v26 }
  0x93   : > { %v2295_v49 = vor.u32 %v2294_v39, %v2293_v10  ;;  %v2588_v20 = vor.u32 %v2587_v63, %v2584_v46  ;;  %v2281_v39 = vrot.slane %v7682_v43, 4  ;;  %v2286_v46 = vrot.slane %v7697_v1, 5 }
  0x94   : > { %v2275_v4 = vor.u32 %v2274_v45, %v2273_v16  ;;  %v2277_v16 = vrot.slane %v7647_v54, 4  ;;  %v2278_v45 = vrot.slane %v7650_v60, 5 }
  0x95   : > { %v7833_v63 = vsel %vm2221_vm4, %v2295_v49, %v2588_v20  ;;  %v986_v20 = vrot.slane %v7463_v51, 3 }
  0x96   : > { %6292 = vmatmul.mubr.msk.bf16.gmra.mrb[16].mxu0 %vm682_vm1, %v7785_v23  ;;  %v2279_v10 = vor.u32 %v2278_v45, %v2277_v16  ;;  %v2289_v45 = vrot.slane %v7720_v53, 4 }
  0x97   : > { %6295 = vmatprep.mubr.msk.bf16.mxu0 %vm682_vm1, %v7791_v36 }
  0x98   : > { %v7846_v26 = vsel %vm2221_vm4, %v2275_v4, %v2279_v10 }
  0x99   : > { %6116 = vmatmul.mubr.msk.bf16.vlgmr.msra.gmra.mrb[0].mxu1 %vm682_vm1, %v979_v44  ;;  %v985_v44 = vsel %vm974_vm5, %v982_v52, %v984_v15  ;;  %v2285_v52 = vrot.slane %v7694_v11, 4 }
  0x9a   : > { %6119 = vmatprep.mubr.msk.bf16.mxu1 %vm682_vm1, %v981_v30  ;;  %6152 = vmatpush3.bf16.msra.mxu1 %v7545_v58  ;;  %v7828_v30 = vsel %vm2221_vm4, %v2271_v17, %v2275_v4  ;;  %v2282_v58 = vrot.slane %v7685_v9, 5 }
  0x9b   : > { %6153 = vmatprep.subr.bf16.mxu1 %v6825_v13 }
  0x9c   : > { %v2283_v17 = vor.u32 %v2282_v58, %v2281_v39  ;;  %v2290_v39 = vrot.slane %v7723_v28, 5  ;;  %v987_v58 = vsel %vm974_vm5, %v984_v15, %v986_v20  ;;  %v992_v15 = vrot.slane %v7526_v41, 3 }
  0x9e   : > { %6296 = vmatmul.mubr.msk.bf16.gmra.mrb[20].mxu0 %vm682_vm1, %v7819_v61  ;;  %6154 = vmatpush3.bf16.msra.mxu1 %v6825_v13  ;;  %v988_v13 = vrot.slane %v7505_v24, 3  ;;  %v7852_v16 = vsel %vm2221_vm4, %v2279_v10, %v2283_v17  ;;  %v990_v10 = vrot.slane %v7508_v27, 3 }
  0x9f   : > { %6299 = vmatprep.mubr.msk.bf16.mxu0 %vm682_vm1, %v7828_v30  ;;  %6191 = vmatprep.subr.bf16.mxu1 %v7825_v37 }
  0xa0   : > { %v989_v4 = vsel %vm974_vm5, %v986_v20, %v988_v13  ;;  %v991_v20 = vsel %vm974_vm5, %v988_v13, %v990_v10  ;;  %v996_v13 = vrot.slane %v7561_v12, 3 }
  0xa1   : > { %6120 = vmatmul.mubr.msk.bf16.gmra.mrb[4].mxu1 %vm682_vm1, %v983_v57  ;;  %v2287_v57 = vor.u32 %v2286_v46, %v2285_v52  ;;  %v993_v52 = vsel %vm974_vm5, %v990_v10, %v992_v15  ;;  %v1002_v10 = vrot.slane %v7623_v18, 3 }
  0xa2   : > { %6123 = vmatprep.mubr.msk.bf16.mxu1 %vm682_vm1, %v985_v44  ;;  %v2291_v44 = vor.u32 %v2290_v39, %v2289_v45 }
  0xa3   : > { %v7866_v21 = vsel %vm2221_vm4, %v2283_v17, %v2287_v57  ;;  %v994_v17 = vrot.slane %v7550_v0, 3 }
  0xa4   : > { %v7870_v28 = vsel %vm2221_vm4, %v2287_v57, %v2291_v44  ;;  %v7882_v46 = vsel %vm2221_vm4, %v2291_v44, %v2295_v49  ;;  %v998_v49 = vrot.slane %v7585_v62, 3 }
  0xa5   : > { %v995_v45 = vsel %vm974_vm5, %v992_v15, %v994_v17  ;;  %v997_v39 = vsel %vm974_vm5, %v994_v17, %v996_v13  ;;  %v1004_v15 = vrot.slane %v7628_v55, 3  ;;  %v1006_v17 = vrot.slane %v7658_v56, 3 }
  0xa6   : > { %6300 = vmatmul.mubr.msk.bf16.gmra.mrb[24].mxu0 %vm682_vm1, %v7846_v26  ;;  %v999_v57 = vsel %vm974_vm5, %v996_v13, %v998_v49  ;;  %v9785_v13 = vld [vmem:[#allocation29_spill] sm:$0xff] }
  0xa7   : > { %6303 = vmatprep.mubr.msk.bf16.mxu0 %vm682_vm1, %v7852_v16 }
  0xa9   : > { %6124 = vmatmul.mubr.msk.bf16.gmra.mrb[8].mxu1 %vm682_vm1, %v987_v58  ;;  %v1000_v58 = vrot.slane %v7594_v5, 3 }
  0xaa   : > { %6127 = vmatprep.mubr.msk.bf16.mxu1 %vm682_vm1, %v989_v4  ;;  %v6826_v4 = vld [vmem:[%s7245_s15 + $0x78] sm:$0xff]  }
  0xab   : > { %v1001_v44 = vsel %vm974_vm5, %v998_v49, %v1000_v58  ;;  %v3753_v49 = vld [vmem:[#allocation3] sm:$0xff] }
  0xac   : > { %3825 = vrot.lane.b32.xlu0 %v3753_v49, %s7162_s21 }
  0xae   : > { %6304 = vmatmul.mubr.msk.bf16.gmra.mrb[28].mxu0 %vm682_vm1, %v7866_v21 }
  0xaf   : > { %6307 = vmatprep.mubr.msk.bf16.mxu0 %vm682_vm1, %v7870_v28 }
  0xb1   : > { %6128 = vmatmul.mubr.msk.bf16.gmra.mrb[12].mxu1 %vm682_vm1, %v991_v20  ;;  %v1005_v20 = vsel %vm974_vm5, %v1002_v10, %v1004_v15 }
  0xb2   : > { %6131 = vmatprep.mubr.msk.bf16.mxu1 %vm682_vm1, %v993_v52 }
  0xb6   : > { %6308 = vmatmul.mubr.msk.bf16.gmra.mrb[32].mxu0 %vm682_vm1, %v7882_v46 }
  0xb7   : > { %6315 = vmatprep.mubr.msk.bf16.mxu0 %vm682_vm1, %v7632_v38  ;;  %v7904_v38 = vld [vmem:[%s7245_s15 + $0x80] sm:$0xff]  }
  0xb9   : > { %6132 = vmatmul.mubr.msk.bf16.gmra.mrb[16].mxu1 %vm682_vm1, %v995_v45  ;;  %v1008_v45 = vrot.slane %v9785_v13, 3 }
  0xba   : > { %6135 = vmatprep.mubr.msk.bf16.mxu1 %vm682_vm1, %v997_v39  ;;  %v3755_v39 = vld [vmem:[#allocation3 + $0x10] sm:$0xff] }
  0xbb   : > { %3829 = vrot.lane.b32.xlu1 %v3755_v39, %s7162_s21  ;;  %v3759_v39 = vld [vmem:[#allocation3 + $0x30] sm:$0xff] }
  0xbe   : > { %6316 = vmatmul.mubr.msk.bf16.vlgmr.msra.gmra.mrb[0].mxu0 %vm682_vm1, %v7644_v6  ;;  %v9747_v6 = vrot.slane %v7766_v2, 5 }
  0xbf   : > { %6352 = vmatpush3.bf16.msra.mxu0 %v7678_v33  ;;  %6319 = vmatprep.mubr.msk.bf16.mxu0 %vm682_vm1, %v7689_v3  ;;  %v2860_v33 = vrot.slane %v7795_v34, 5  ;;  %v1003_v3 = vsel %vm974_vm5, %v1000_v58, %v1002_v10  ;;  %v1010_v58 = vrot.slane %v7710_v35, 3  ;;  %v9787_v10 = vld [vmem:[#allocation6_spill] sm:$0xff] }
  0xc0   : > { %6353 = vmatprep.subr.bf16.mxu0 %v6826_v4 }
  0xc1   : > { %6136 = vmatmul.mubr.msk.bf16.gmra.mrb[20].mxu1 %vm682_vm1, %v999_v57  ;;  %v7922_v52 = vsel %vm2824_vm7, %v9747_v6, %v2860_v33  ;;  %v1011_v57 = vsel %vm974_vm5, %v1008_v45, %v1010_v58  ;;  %v9788_v33 = vld [vmem:[#allocation7_spill] sm:$0xff]  ;;  %v9790_v58 = vld [vmem:[#allocation9_spill] sm:$0xff] }
  0xc2   : > { %6139 = vmatprep.mubr.msk.bf16.mxu1 %vm682_vm1, %v1001_v44  ;;  %9784 = vst [vmem:[#allocation34_spill] sm:$0xff] %v7922_v52  ;;  %v9794_v6 = vld [vmem:[#allocation13_spill] sm:$0xff] }
  0xc3   : > { %6354 = vmatpush3.bf16.msra.mxu0 %v6826_v4  ;;  %v3756_v4 = vld [vmem:[#allocation3 + $0x18] sm:$0xff]  ;;  %v1320_v34 = vrot.slane %v9794_v6, 3  ;;  %v9799_v6 = vld [vmem:[#allocation18_spill] sm:$0xff] }
  0xc4   : > { %6391 = vmatprep.subr.bf16.mxu0 %v7904_v38  ;;  %3831 = vrot.lane.b32.xlu1 %v3756_v4, %s7162_s21  ;;  %v1312_v4 = vrot.slane %v9790_v58, 3  ;;  %v1329_v52 = vrot.slane %v9799_v6, 4 }
  0xc6   : > { %6320 = vmatmul.mubr.msk.bf16.gmra.mrb[4].mxu0 %vm682_vm1, %v7700_v42  ;;  %v1007_v42 = vsel %vm974_vm5, %v1004_v15, %v1006_v17  ;;  %v1305_v15 = vrot.slane %v9787_v10, 4 }
  0xc7   : > { %6323 = vmatprep.mubr.msk.bf16.mxu0 %vm682_vm1, %v7728_v40  ;;  %v1009_v40 = vsel %vm974_vm5, %v1006_v17, %v1008_v45  ;;  %v3758_v45 = vld [vmem:[#allocation3 + $0x28] sm:$0xff] }
  0xc8   : > { %3835 = vrot.lane.b32.xlu1 %v3758_v45, %s7162_s21  ;;  %v3761_v45 = vld [vmem:[#allocation3 + $0x40] sm:$0xff] }
  0xc9   : > { %6140 = vmatmul.mubr.msk.bf16.gmra.mrb[24].mxu1 %vm682_vm1, %v1003_v3  ;;  %v1308_v3 = vrot.slane %v9788_v33, 3 }
  0xca   : > { %6143 = vmatprep.mubr.msk.bf16.mxu1 %vm682_vm1, %v1005_v20  ;;  %v9789_v20 = vld [vmem:[#allocation8_spill] sm:$0xff] }
  0xcb   : > { %v1309_v17 = vrot.slane %v9789_v20, 4 }
  0xce   : > { %6324 = vmatmul.mubr.msk.bf16.gmra.mrb[8].mxu0 %vm682_vm1, %v7731_v59  ;;  %v3754_v59 = vld [vmem:[#allocation3 + $0x8] sm:$0xff] }
  0xcf   : > { %6327 = vmatprep.mubr.msk.bf16.mxu0 %vm682_vm1, %v7748_v25  ;;  %v9786_v25 = vld [vmem:[#allocation5_spill] sm:$0xff]  ;;  %3827 = vrot.lane.b32.xlu0 %v3754_v59, %s7162_s21  ;;  %v9791_v59 = vld [vmem:[#allocation10_spill] sm:$0xff] }
  0xd0   : > { %v1304_v44 = vrot.slane %v9786_v25, 3 }
  0xd1   : > { %6144 = vmatmul.mubr.msk.bf16.gmra.mrb[28].mxu1 %vm682_vm1, %v1007_v42  ;;  %v3757_v42 = vld [vmem:[#allocation3 + $0x20] sm:$0xff] }
  0xd2   : > { %6147 = vmatprep.mubr.msk.bf16.mxu1 %vm682_vm1, %v1009_v40  ;;  %v1310_v40 = vor.u32 %v1309_v17, %v1308_v3  ;;  %v9793_v3 = vld [vmem:[#allocation12_spill] sm:$0xff]  ;;  %v6829_v17 = vld [vmem:[%s7245_s15 + $0x38] sm:$0xff]  }
  0xd3   : > { %3833 = vrot.lane.b32.xlu0 %v3757_v42, %s7162_s21 }
  0xd6   : > { %6328 = vmatmul.mubr.msk.bf16.gmra.mrb[12].mxu0 %vm682_vm1, %v7758_v48  ;;  %v1306_v48 = vor.u32 %v1305_v15, %v1304_v44  ;;  %v9792_v44 = vld [vmem:[#allocation11_spill] sm:$0xff] }
  0xd7   : > { %6331 = vmatprep.mubr.msk.bf16.mxu0 %vm682_vm1, %v7785_v23  ;;  %v3760_v23 = vld [vmem:[#allocation3 + $0x38] sm:$0xff]  ;;  %v1316_v15 = vrot.slane %v9792_v44, 3  ;;  %3837 = vrot.lane.b32.xlu0 %v3759_v39, %s7162_s21 }
  0xd8   : > { %v7957_v49 = vsel %vm1296_vm6, %v7761_v29, %v1306_v48  ;;  %3839 = vrot.lane.b32.xlu1 %v3760_v23, %s7162_s21  ;;  %v1317_v29 = vrot.slane %v9793_v3, 4  ;;  %v3763_v23 = vld [vmem:[#allocation3 + $0x50] sm:$0xff] }
  0xd9   : > { %6148 = vmatmul.mubr.msk.bf16.gmra.mrb[32].mxu1 %vm682_vm1, %v1011_v57  ;;  %v7965_v57 = vsel %vm1296_vm6, %v1306_v48, %v1310_v40  ;;  %v3764_v48 = vld [vmem:[#allocation3 + $0x58] sm:$0xff] }
  0xda   : > { %6155 = vmatprep.mubr.msk.bf16.mxu1 %vm682_vm1, %v7772_v22  ;;  %v1313_v22 = vrot.slane %v9791_v59, 4 }
  0xdb   : > { %3841 = vrot.lane.b32.xlu0 %v3761_v45, %s7162_s21 }
  0xdc   : > { %v1314_v42 = vor.u32 %v1313_v22, %v1312_v4  ;;  %v9795_v4 = vld [vmem:[#allocation14_spill] sm:$0xff] }
  0xdd   : > { %v1321_v22 = vrot.slane %v9795_v4, 4 }
  0xde   : > { %6332 = vmatmul.mubr.msk.bf16.gmra.mrb[16].mxu0 %vm682_vm1, %v7791_v36  ;;  %v3762_v36 = vld [vmem:[#allocation3 + $0x48] sm:$0xff]  ;;  %v7981_v39 = vsel %vm1296_vm6, %v1310_v40, %v1314_v42  ;;  %v7995_v40 = vld [vmem:[%s7245_s15 + $0x40] sm:$0xff]  }
  0xdf   : > { %6335 = vmatprep.mubr.msk.bf16.mxu0 %vm682_vm1, %v7819_v61  ;;  %v1318_v61 = vor.u32 %v1317_v29, %v1316_v15  ;;  %3843 = vrot.lane.b32.xlu1 %v3762_v36, %s7162_s21  ;;  %v9796_v15 = vld [vmem:[#allocation15_spill] sm:$0xff]  ;;  %v9797_v36 = vld [vmem:[#allocation16_spill] sm:$0xff] }
  0xe0   : > { %v1324_v29 = vrot.slane %v9796_v15, 3  ;;  %v1325_v45 = vrot.slane %v9797_v36, 4  ;;  %3845 = vrot.lane.b32.xlu0 %v3763_v23, %s7162_s21  ;;  %v3768_v36 = vld [vmem:[#allocation3 + $0x78] sm:$0xff]  ;;  %v3767_v15 = vld [vmem:[#allocation3 + $0x70] sm:$0xff]  ;;  %v9798_v23 = vld [vmem:[#allocation17_spill] sm:$0xff] }
  0xe1   : > { %6156 = vmatmul.mubr.msk.bf16.vlgmr.msra.gmra.mrb[0].mxu1 %vm682_vm1, %v7957_v49  ;;  %v1328_v4 = vrot.slane %v9798_v23, 3 }
  0xe2   : > { %6159 = vmatprep.mubr.msk.bf16.mxu1 %vm682_vm1, %v7965_v57  ;;  %6192 = vmatpush3.bf16.msra.mxu1 %v7825_v37  ;;  %v7988_v37 = vsel %vm1296_vm6, %v1314_v42, %v1318_v61  ;;  %v1326_v42 = vor.u32 %v1325_v45, %v1324_v29  ;;  %v9801_v29 = vld [vmem:[#allocation20_spill] sm:$0xff] }
  0xe3   : > { %6193 = vmatprep.subr.bf16.mxu1 %v6829_v17  ;;  %3847 = vrot.lane.b32.xlu1 %v3764_v48, %s7162_s21  ;;  %v1333_v45 = vrot.slane %v9801_v29, 4 }
  0xe6   : > { %6336 = vmatmul.mubr.msk.bf16.gmra.mrb[20].mxu0 %vm682_vm1, %v7828_v30  ;;  %6194 = vmatpush3.bf16.msra.mxu1 %v6829_v17  ;;  %v3766_v30 = vld [vmem:[#allocation3 + $0x68] sm:$0xff]  ;;  %v3765_v17 = vld [vmem:[#allocation3 + $0x60] sm:$0xff] }
  0xe7   : > { %6339 = vmatprep.mubr.msk.bf16.mxu0 %vm682_vm1, %v7846_v26  ;;  %6431 = vmatprep.subr.bf16.mxu1 %v7995_v40  ;;  %v1322_v26 = vor.u32 %v1321_v22, %v1320_v34  ;;  %v9800_v34 = vld [vmem:[#allocation19_spill] sm:$0xff] }
  0xe8   : > { %3851 = vrot.lane.b32.xlu1 %v3766_v30, %s7162_s21  ;;  %3849 = vrot.lane.b32.xlu0 %v3765_v17, %s7162_s21  ;;  %v1332_v22 = vrot.slane %v9800_v34, 3  ;;  %v1330_v30 = vor.u32 %v1329_v52, %v1328_v4  ;;  %v9803_v34 = vld [vmem:[#allocation22_spill] sm:$0xff]  ;;  %v1340_v52 = vrot.slane %v7572_v31, 3  ;;  %v1341_v4 = vrot.slane %v7575_v32, 4 }
  0xe9   : > { %6160 = vmatmul.mubr.msk.bf16.gmra.mrb[4].mxu1 %vm682_vm1, %v7981_v39  ;;  %v8007_v48 = vsel %vm1296_vm6, %v1318_v61, %v1322_v26  ;;  %v8014_v3 = vsel %vm1296_vm6, %v1322_v26, %v1326_v42  ;;  %v3769_v61 = vld [vmem:[#allocation3 + $0x80] sm:$0xff]  ;;  %v3771_v26 = vld [vmem:[#allocation3 + $0x90] sm:$0xff]  ;;  %v1337_v6 = vrot.slane %v9803_v34, 4 }
  0xea   : > { %6163 = vmatprep.mubr.msk.bf16.mxu1 %vm682_vm1, %v7988_v37  ;;  %v1334_v17 = vor.u32 %v1333_v45, %v1332_v22  ;;  %v2826_v22 = vrot.slane %v7421_v19, 5  ;;  %v3773_v45 = vld [vmem:[#allocation3 + $0xa0] sm:$0xff]  ;;  %v3775_v19 = vld [vmem:[#allocation3 + $0xb0] sm:$0xff] }
  0xec   : > { %3855 = vrot.lane.b32.xlu1 %v3768_v36, %s7162_s21  ;;  %3853 = vrot.lane.b32.xlu0 %v3767_v15, %s7162_s21  ;;  %v8029_v36 = vsel %vm1296_vm6, %v1326_v42, %v1330_v30  ;;  %v9802_v15 = vld [vmem:[#allocation21_spill] sm:$0xff]  ;;  %v8036_v23 = vsel %vm1296_vm6, %v1330_v30, %v1334_v17  ;;  %v2825_v42 = vrot.slane %v7417_v14, 5  ;;  %v3776_v14 = vld [vmem:[#allocation3 + $0xb8] sm:$0xff] }
  0xed   : > { %v1336_v29 = vrot.slane %v9802_v15, 3 }
  0xee   : > { %6340 = vmatmul.mubr.msk.bf16.gmra.mrb[24].mxu0 %vm682_vm1, %v7852_v16  ;;  %v3770_v16 = vld [vmem:[#allocation3 + $0x88] sm:$0xff] }
  0xef   : > { %6343 = vmatprep.mubr.msk.bf16.mxu0 %vm682_vm1, %v7866_v21  ;;  %v3772_v21 = vld [vmem:[#allocation3 + $0x98] sm:$0xff] }
  0xf0   : > { %3859 = vrot.lane.b32.xlu1 %v3770_v16, %s7162_s21  ;;  %3857 = vrot.lane.b32.xlu0 %v3769_v61, %s7162_s21  ;;  %v1342_v16 = vor.u32 %v1341_v4, %v1340_v52  ;;  %v2827_v61 = vsel %vm2824_vm7, %v2825_v42, %v2826_v22  ;;  %v9804_v52 = vld [vmem:[#allocation25_spill] sm:$0xff]  ;;  %v9805_v42 = vld [vmem:[#allocation26_spill] sm:$0xff] }
  0xf1   : > { %6164 = vmatmul.mubr.msk.bf16.gmra.mrb[8].mxu1 %vm682_vm1, %v8007_v48  ;;  %v1348_v4 = vrot.slane %v9804_v52, 3  ;;  %v6830_v52 = vld [vmem:[%s7245_s15 + $0x88] sm:$0xff]  }
  0xf2   : > { %6167 = vmatprep.mubr.msk.bf16.mxu1 %vm682_vm1, %v8014_v3 }
  0xf4   : > { %3863 = vrot.lane.b32.xlu1 %v3772_v21, %s7162_s21  ;;  %3861 = vrot.lane.b32.xlu0 %v3771_v26, %s7162_s21  ;;  %v1344_v21 = vrot.slane %v7598_v7, 3  ;;  %v1345_v26 = vrot.slane %v7601_v8, 4  ;;  %v9807_v7 = vld [vmem:[#allocation28_spill] sm:$0xff] }
  0xf6   : > { %6344 = vmatmul.mubr.msk.bf16.gmra.mrb[28].mxu0 %vm682_vm1, %v7870_v28  ;;  %v3774_v28 = vld [vmem:[#allocation3 + $0xa8] sm:$0xff] }
  0xf7   : > { %6347 = vmatprep.mubr.msk.bf16.mxu0 %vm682_vm1, %v7882_v46  ;;  %v1338_v46 = vor.u32 %v1337_v6, %v1336_v29  ;;  %v2828_v29 = vrot.slane %v7457_v47, 5 }
  0xf8   : > { %3867 = vrot.lane.b32.xlu1 %v3774_v28, %s7162_s21  ;;  %3865 = vrot.lane.b32.xlu0 %v3773_v45, %s7162_s21  ;;  %v2830_v28 = vrot.slane %v7461_v50, 5  ;;  %v3777_v45 = vld [vmem:[#allocation3 + $0xc0] sm:$0xff]  ;;  %v3780_v50 = vld [vmem:[#allocation3 + $0xd8] sm:$0xff] }
  0xf9   : > { %6168 = vmatmul.mubr.msk.bf16.gmra.mrb[12].mxu1 %vm682_vm1, %v8029_v36  ;;  %v8054_v30 = vsel %vm1296_vm6, %v1334_v17, %v1338_v46  ;;  %v8061_v6 = vsel %vm1296_vm6, %v1338_v46, %v1342_v16  ;;  %v1349_v17 = vrot.slane %v9805_v42, 4  ;;  %v1346_v46 = vor.u32 %v1345_v26, %v1344_v21  ;;  %v3779_v26 = vld [vmem:[#allocation3 + $0xd0] sm:$0xff] }
  0xfa   : > { %6171 = vmatprep.mubr.msk.bf16.mxu1 %vm682_vm1, %v8036_v23  ;;  %v2829_v47 = vsel %vm2824_vm7, %v2826_v22, %v2828_v29  ;;  %v2831_v42 = vsel %vm2824_vm7, %v2828_v29, %v2830_v28  ;;  %v1353_v21 = vrot.slane %v9807_v7, 4  ;;  %v2832_v29 = vrot.slane %v7463_v51, 5  ;;  %v3781_v51 = vld [vmem:[#allocation3 + $0xe0] sm:$0xff] }
  0xfc   : > { %3871 = vrot.lane.b32.xlu1 %v3776_v14, %s7162_s21  ;;  %3869 = vrot.lane.b32.xlu0 %v3775_v19, %s7162_s21  ;;  %v8080_v14 = vsel %vm1296_vm6, %v1342_v16, %v1346_v46  ;;  %v9806_v19 = vld [vmem:[#allocation27_spill] sm:$0xff]  ;;  %v1357_v16 = vrot.slane %v7650_v60, 4 }
  0xfd   : > { %v1352_v8 = vrot.slane %v9806_v19, 3 }
  0xfe   : > { %6348 = vmatmul.mubr.msk.bf16.gmra.mrb[32].mxu0 %vm682_vm1, %v7833_v63  ;;  %v3778_v63 = vld [vmem:[#allocation3 + $0xc8] sm:$0xff] }
  0xff   : > { %6355 = vmatprep.mubr.msk.bf16.mxu0 %vm682_vm1, %v2827_v61  ;;  %v1350_v61 = vor.u32 %v1349_v17, %v1348_v4  ;;  %v1356_v4 = vrot.slane %v7647_v54, 3  ;;  %v2834_v17 = vrot.slane %v7505_v24, 5 }
 0x100   : > { %3875 = vrot.lane.b32.xlu1 %v3778_v63, %s7162_s21  ;;  %3873 = vrot.lane.b32.xlu0 %v3777_v45, %s7162_s21  ;;  %v2833_v63 = vsel %vm2824_vm7, %v2830_v28, %v2832_v29 }
 0x101   : > { %6172 = vmatmul.mubr.msk.bf16.gmra.mrb[16].mxu1 %vm682_vm1, %v8054_v30  ;;  %v8087_v22 = vsel %vm1296_vm6, %v1346_v46, %v1350_v61  ;;  %v1358_v45 = vor.u32 %v1357_v16, %v1356_v4  ;;  %v2835_v24 = vsel %vm2824_vm7, %v2832_v29, %v2834_v17  ;;  %v3784_v46 = vld [vmem:[#allocation3 + $0xf8] sm:$0xff]  ;;  %v1365_v29 = vrot.slane %v7697_v1, 4  ;;  %v3786_v16 = vld [vmem:[#allocation3 + $0x108] sm:$0xff] }
 0x102   : > { %6175 = vmatprep.mubr.msk.bf16.mxu1 %vm682_vm1, %v8061_v6  ;;  %v2838_v4 = vrot.slane %v7526_v41, 5  ;;  %v3788_v41 = vld [vmem:[#allocation3 + $0x118] sm:$0xff] }
 0x104   : > { %3879 = vrot.lane.b32.xlu1 %v3780_v50, %s7162_s21  ;;  %3877 = vrot.lane.b32.xlu0 %v3779_v26, %s7162_s21  ;;  %v1360_v50 = vrot.slane %v7682_v43, 3  ;;  %v1364_v26 = vrot.slane %v7694_v11, 3 }
 0x106   : > { %6356 = vmatmul.mubr.msk.bf16.vlgmr.msra.gmra.mrb[0].mxu0 %vm682_vm1, %v2829_v47 }
 0x107   : > { %6392 = vmatpush3.bf16.msra.mxu0 %v7904_v38  ;;  %6359 = vmatprep.mubr.msk.bf16.mxu0 %vm682_vm1, %v2831_v42  ;;  %v3782_v38 = vld [vmem:[#allocation3 + $0xe8] sm:$0xff]  ;;  %v1354_v42 = vor.u32 %v1353_v21, %v1352_v8  ;;  %v1361_v8 = vrot.slane %v7685_v9, 4  ;;  %v3783_v21 = vld [vmem:[#allocation3 + $0xf0] sm:$0xff] }
 0x108   : > { %6393 = vmatprep.subr.bf16.mxu0 %v6830_v52  ;;  %3883 = vrot.lane.b32.xlu1 %v3782_v38, %s7162_s21  ;;  %v3785_v38 = vld [vmem:[#allocation3 + $0x100] sm:$0xff] }
 0x109   : > { %6176 = vmatmul.mubr.msk.bf16.gmra.mrb[20].mxu1 %vm682_vm1, %v8080_v14  ;;  %3881 = vrot.lane.b32.xlu0 %v3781_v51, %s7162_s21  ;;  %v8105_v47 = vsel %vm1296_vm6, %v1350_v61, %v1354_v42  ;;  %v8111_v28 = vsel %vm1296_vm6, %v1354_v42, %v1358_v45  ;;  %v7163_v61 = vmov 0   ;;  %v1366_v51 = vor.u32 %v1365_v29, %v1364_v26 }
 0x10a   : > { %6179 = vmatprep.mubr.msk.bf16.mxu1 %vm682_vm1, %v8087_v22  ;;  %6812 = vset.pattern.permute.xlu1 %v7163_v61  ;;  %v2842_v26 = vrot.slane %v7561_v12, 5 }
 0x10b   : > { %6394 = vmatpush3.bf16.msra.mxu0 %v6830_v52  ;;  %v2836_v52 = vrot.slane %v7508_v27, 5  ;;  %6811 = vset.pattern.permute.xlu0 %v7163_v61  ;;  %v1362_v27 = vor.u32 %v1361_v8, %v1360_v50  ;;  %v3787_v8 = vld [vmem:[#allocation3 + $0x110] sm:$0xff] }
 0x10c   : > { %3887 = vrot.lane.b32.xlu1 %v3784_v46, %s7162_s21  ;;  %v1368_v46 = vrot.slane %v7720_v53, 3 }
 0x10d   : > { %3885 = vrot.lane.b32.xlu0 %v3783_v21, %s7162_s21  ;;  %v2837_v42 = vsel %vm2824_vm7, %v2834_v17, %v2836_v52  ;;  %v9808_v21 = vld [vmem:[#allocation30_spill] sm:$0xff]  ;;  %v8135_v17 = vsel %vm1296_vm6, %v1362_v27, %v1366_v51 }
 0x10e   : > { %6360 = vmatmul.mubr.msk.bf16.gmra.mrb[4].mxu0 %vm682_vm1, %v2833_v63  ;;  %v2839_v63 = vsel %vm2824_vm7, %v2836_v52, %v2838_v4  ;;  %v1369_v50 = vrot.slane %v9808_v21, 4  ;;  %v2840_v52 = vrot.slane %v7550_v0, 5  ;;  %v4545_v0 = vld [vmem:[%s9685_s2] sm:$0xff] }
 0x10f   : > { %6363 = vmatprep.mubr.msk.bf16.mxu0 %vm682_vm1, %v2835_v24  ;;  %v8129_v24 = vsel %vm1296_vm6, %v1358_v45, %v1362_v27  ;;  %v4546_v45 = vld [vmem:[%s9685_s2 + $0x8] sm:$0xff]  ;;  %v4547_v27 = vld [vmem:[%s9685_s2 + $0x10] sm:$0xff] }
 0x110   : > { %3891 = vrot.lane.b32.xlu1 %v3786_v16, %s7162_s21  ;;  %v8149_v29 = vor.u32 %v1369_v50, %v1368_v46  ;;  %v2841_v61 = vsel %vm2824_vm7, %v2838_v4, %v2840_v52  ;;  %v2843_v16 = vsel %vm2824_vm7, %v2840_v52, %v2842_v26  ;;  %v2844_v4 = vrot.slane %v7585_v62, 5 }
 0x111   : > { %6180 = vmatmul.mubr.msk.bf16.gmra.mrb[24].mxu1 %vm682_vm1, %v8105_v47  ;;  %3889 = vrot.lane.b32.xlu0 %v3785_v38, %s7162_s21  ;;  %v2848_v52 = vrot.slane %v7623_v18, 5 }
 0x112   : > { %6183 = vmatprep.mubr.msk.bf16.mxu1 %vm682_vm1, %v8111_v28  ;;  %v8161_v38 = vsel %vm1296_vm6, %v1366_v51, %v8149_v29  ;;  %v4549_v51 = vld [vmem:[%s9685_s2 + $0x20] sm:$0xff]  ;;  %v2845_v46 = vsel %vm2824_vm7, %v2842_v26, %v2844_v4  ;;  %v2850_v26 = vrot.slane %v7628_v55, 5 }
 0x114   : > { %3895 = vrot.lane.b32.xlu1 %v3788_v41, %s7162_s21  ;;  %v4550_v41 = vld [vmem:[%s9685_s2 + $0x28] sm:$0xff] }
 0x115   : > { %3893 = vrot.lane.b32.xlu0 %v3787_v8, %s7162_s21  ;;  %v4551_v8 = vld [vmem:[%s9685_s2 + $0x30] sm:$0xff] }
 0x116   : > { %6364 = vmatmul.mubr.msk.bf16.gmra.mrb[8].mxu0 %vm682_vm1, %v2837_v42  ;;  %v4548_v42 = vld [vmem:[%s9685_s2 + $0x18] sm:$0xff] }
 0x117   : > { %6367 = vmatprep.mubr.msk.bf16.mxu0 %vm682_vm1, %v2839_v63  ;;  %v2846_v63 = vrot.slane %v7594_v5, 5 }
 0x118   : > { %4588 = vperm.xlu1 %6812, %v4546_v45   ;;  %v4553_v45 = vld [vmem:[%s9685_s2 + $0x40] sm:$0xff] }
 0x119   : > { %6184 = vmatmul.mubr.msk.bf16.gmra.mrb[28].mxu1 %vm682_vm1, %v8129_v24  ;;  %4583 = vperm.xlu0 %6811, %v4545_v0   ;;  %v2847_v50 = vsel %vm2824_vm7, %v2844_v4, %v2846_v63  ;;  %v4554_v0 = vld [vmem:[%s9685_s2 + $0x48] sm:$0xff]  ;;  %v4557_v4 = vld [vmem:[%s9685_s2 + $0x60] sm:$0xff] }
 0x11a   : > { %6187 = vmatprep.mubr.msk.bf16.mxu1 %vm682_vm1, %v8135_v17 }
 0x11c   : > { %4593 = vperm.xlu1 %6812, %v4547_v27   ;;  %v4555_v27 = vld [vmem:[%s9685_s2 + $0x50] sm:$0xff] }
 0x11d   : > { %4598 = vperm.xlu0 %6811, %v4548_v42   ;;  %v2854_v42 = vrot.slane %v9785_v13, 5 }
 0x11e   : > { %6368 = vmatmul.mubr.msk.bf16.gmra.mrb[12].mxu0 %vm682_vm1, %v2841_v61  ;;  %v2849_v61 = vsel %vm2824_vm7, %v2846_v63, %v2848_v52  ;;  %v4558_v63 = vld [vmem:[%s9685_s2 + $0x68] sm:$0xff] }
 0x11f   : > { %6371 = vmatprep.mubr.msk.bf16.mxu0 %vm682_vm1, %v2843_v16  ;;  %v7120_v16 = vld [vmem:[%s7245_s15 + $0x48] sm:$0xff]   ;;  %s7167_s15 = smov (!%p5884_p12), 32  }
 0x120   : > { %4603 = vperm.xlu1 %6812, %v4549_v51  }
 0x121   : > { %6188 = vmatmul.mubr.msk.bf16.gmra.mrb[32].mxu1 %vm682_vm1, %v8161_v38  ;;  %4608 = vperm.xlu0 %6811, %v4550_v41  }
 0x122   : > { %6195 = vmatprep.mubr.msk.bf16.mxu1 %vm682_vm1, %v7957_v49  ;;  %v4552_v49 = vld [vmem:[%s9685_s2 + $0x38] sm:$0xff] }
 0x124   : > { %4613 = vperm.xlu1 %6812, %v4551_v8   ;;  %v4562_v8 = vld [vmem:[%s9685_s2 + $0x88] sm:$0xff] }
 0x125   : > { %4618 = vperm.xlu0 %6811, %v4552_v49  }
 0x126   : > { %6372 = vmatmul.mubr.msk.bf16.gmra.mrb[16].mxu0 %vm682_vm1, %v2845_v46  ;;  %v2856_v46 = vrot.slane %v7710_v35, 5 }
 0x127   : > { %6375 = vmatprep.mubr.msk.bf16.mxu0 %vm682_vm1, %v2847_v50  ;;  %v4561_v50 = vld [vmem:[%s9685_s2 + $0x80] sm:$0xff] }
 0x128   : > { %4623 = vperm.xlu1 %6812, %v4553_v45   ;;  %v2857_v49 = vsel %vm2824_vm7, %v2854_v42, %v2856_v46  ;;  %v3148_v45 = vrot.slane %v9787_v10, 6 }
 0x129   : > { %6196 = vmatmul.mubr.msk.bf16.vlgmr.msra.gmra.mrb[0].mxu1 %vm682_vm1, %v7965_v57  ;;  %v2851_v57 = vsel %vm2824_vm7, %v2848_v52, %v2850_v26  ;;  %4628 = vperm.xlu0 %6811, %v4554_v0   ;;  %v9809_v52 = vrot.slane %v7766_v2, 5  ;;  %v3150_v0 = vrot.slane %v9788_v33, 5  ;;  %v4565_v33 = vld [vmem:[%s9685_s2 + $0xa0] sm:$0xff] }
 0x12a   : > { %6199 = vmatprep.mubr.msk.bf16.mxu1 %vm682_vm1, %v7981_v39  ;;  %6433 = vmatpush3.bf16.msra.mxu1 %v7995_v40  ;;  %v4556_v39 = vld [vmem:[%s9685_s2 + $0x58] sm:$0xff]  ;;  %v2852_v40 = vrot.slane %v7658_v56, 5 }
 0x12b   : > { %6432 = vmatprep.subr.bf16.mxu1 %v7120_v16 }
 0x12c   : > { %4633 = vperm.xlu1 %6812, %v4555_v27   ;;  %v2853_v51 = vsel %vm2824_vm7, %v2850_v26, %v2852_v40  ;;  %v2855_v41 = vsel %vm2824_vm7, %v2852_v40, %v2854_v42  ;;  %v2859_v26 = vsel %vm2824_vm7, %v2856_v46, %v9809_v52  ;;  %v3155_v27 = vrot.slane %v9791_v59, 6  ;;  %v9810_v40 = vld [vmem:[#allocation12_spill] sm:$0xff]  ;;  %v9813_v46 = vld [vmem:[#allocation14_spill] sm:$0xff] }
 0x12d   : > { %4638 = vperm.xlu0 %6811, %v4556_v39   ;;  %v3159_v42 = vrot.slane %v9810_v40, 6  ;;  %v9815_v52 = vld [vmem:[#allocation16_spill] sm:$0xff]  ;;  %v4576_v40 = vld [vmem:[%s9685_s2 + $0xf8] sm:$0xff] }
 0x12e   : > { %6376 = vmatmul.mubr.msk.bf16.gmra.mrb[20].mxu0 %vm682_vm1, %v2849_v61  ;;  %6434 = vmatpush3.bf16.msra.mxu1 %v7120_v16  ;;  %v3151_v61 = vrot.slane %v9789_v20, 6  ;;  %v4564_v16 = vld [vmem:[%s9685_s2 + $0x98] sm:$0xff]  ;;  %v4566_v20 = vld [vmem:[%s9685_s2 + $0xa8] sm:$0xff] }
 0x12f   : > { %6379 = vmatprep.mubr.msk.bf16.mxu0 %vm682_vm1, %v2851_v57  ;;  %v3154_v57 = vrot.slane %v9790_v58, 5  ;;  %v4568_v58 = vld [vmem:[%s9685_s2 + $0xb8] sm:$0xff] }
 0x130   : > { %4643 = vperm.xlu1 %6812, %v4557_v4   ;;  %v3152_v10 = vor.u32 %v3151_v61, %v3150_v0  ;;  %v9811_v4 = vld [vmem:[#allocation34_spill] sm:$0xff] }
 0x131   : > { %6200 = vmatmul.mubr.msk.bf16.gmra.mrb[4].mxu1 %vm682_vm1, %v7988_v37  ;;  %4648 = vperm.xlu0 %6811, %v4558_v63   ;;  %v4559_v37 = vld [vmem:[%s9685_s2 + $0x70] sm:$0xff]  ;;  %v3156_v59 = vor.u32 %v3155_v27, %v3154_v57  ;;  %v4573_v61 = vld [vmem:[%s9685_s2 + $0xe0] sm:$0xff] }
 0x132   : > { %6203 = vmatprep.mubr.msk.bf16.mxu1 %vm682_vm1, %v8007_v48  ;;  %v4560_v48 = vld [vmem:[%s9685_s2 + $0x78] sm:$0xff]  ;;  %v9818_v57 = vld [vmem:[#allocation19_spill] sm:$0xff] }
 0x133   : > { %v3174_v27 = vrot.slane %v9818_v57, 5  ;;  %v3198_v57 = vrot.slane %v7647_v54, 5 }
 0x134   : > { %4653 = vperm.xlu1 %6812, %v4559_v37   ;;  %v9812_v37 = vld [vmem:[#allocation13_spill] sm:$0xff] }
 0x135   : > { %4658 = vperm.xlu0 %6811, %v4560_v48   ;;  %v3162_v48 = vrot.slane %v9812_v37, 5  ;;  %v9820_v37 = vld [vmem:[#allocation31_spill] sm:$0xff] }
 0x136   : > { %6380 = vmatmul.mubr.msk.bf16.gmra.mrb[24].mxu0 %vm682_vm1, %v2853_v51  ;;  %v4570_v51 = vld [vmem:[%s9685_s2 + $0xc8] sm:$0xff] }
 0x137   : > { %6383 = vmatprep.mubr.msk.bf16.mxu0 %vm682_vm1, %v2855_v41  ;;  %v3157_v41 = vsel %vm3146_vm8, %v3152_v10, %v3156_v59 }
 0x138   : > { %4663 = vperm.xlu1 %6812, %v4561_v50   ;;  %v3163_v50 = vrot.slane %v9813_v46, 6  ;;  %v9821_v46 = vld [vmem:[#allocation32_spill] sm:$0xff] }
 0x139   : > { %6204 = vmatmul.mubr.msk.bf16.gmra.mrb[8].mxu1 %vm682_vm1, %v8014_v3  ;;  %v3147_v3 = vrot.slane %v9786_v25, 5  ;;  %4668 = vperm.xlu0 %6811, %v4562_v8   ;;  %v9814_v8 = vld [vmem:[#allocation15_spill] sm:$0xff] }
 0x13a   : > { %6207 = vmatprep.mubr.msk.bf16.mxu1 %vm682_vm1, %v8029_v36  ;;  %v4563_v36 = vld [vmem:[%s9685_s2 + $0x90] sm:$0xff] }
 0x13b   : > { %v3149_v25 = vor.u32 %v3148_v45, %v3147_v3  ;;  %v4572_v3 = vld [vmem:[%s9685_s2 + $0xd8] sm:$0xff]  ;;  %v3164_v45 = vor.u32 %v3163_v50, %v3162_v48  ;;  %v1659_v48 = vrot.slane %v9820_v37, 3 }
 0x13c   : > { %4673 = vperm.xlu1 %6812, %v4563_v36   ;;  %v4574_v36 = vld [vmem:[%s9685_s2 + $0xe8] sm:$0xff] }
 0x13d   : > { %4678 = vperm.xlu0 %6811, %v4564_v16   ;;  %v3153_v39 = vsel %vm3146_vm8, %v3149_v25, %v3152_v10  ;;  %v9816_v25 = vld [vmem:[#allocation17_spill] sm:$0xff] }
 0x13e   : > { %6384 = vmatmul.mubr.msk.bf16.gmra.mrb[28].mxu0 %vm682_vm1, %v2857_v49  ;;  %v3166_v49 = vrot.slane %v9814_v8, 5  ;;  %v3170_v10 = vrot.slane %v9816_v25, 5  ;;  %v1921_v8 = vrot.slane %v7585_v62, 4 }
 0x13f   : > { %6387 = vmatprep.mubr.msk.bf16.mxu0 %vm682_vm1, %v2859_v26  ;;  %v3167_v26 = vrot.slane %v9815_v52, 6 }
 0x140   : > { %4683 = vperm.xlu1 %6812, %v4565_v33   ;;  %v9817_v33 = vld [vmem:[#allocation18_spill] sm:$0xff] }
 0x141   : > { %6208 = vmatmul.mubr.msk.bf16.gmra.mrb[12].mxu1 %vm682_vm1, %v8036_v23  ;;  %v3158_v23 = vrot.slane %v9792_v44, 5  ;;  %4688 = vperm.xlu0 %6811, %v4566_v20   ;;  %v4569_v44 = vld [vmem:[%s9685_s2 + $0xc0] sm:$0xff]  ;;  %v3168_v0 = vor.u32 %v3167_v26, %v3166_v49  ;;  %v3171_v20 = vrot.slane %v9817_v33, 6  ;;  %v9823_v26 = vld [vmem:[#allocation24_spill] sm:$0xff] }
 0x142   : > { %6211 = vmatprep.mubr.msk.bf16.mxu1 %vm682_vm1, %v8054_v30  ;;  %v4567_v30 = vld [vmem:[%s9685_s2 + $0xb0] sm:$0xff]  ;;  %v9822_v49 = vld [vmem:[#allocation23_spill] sm:$0xff] }
 0x143   : > { %v3160_v63 = vor.u32 %v3159_v42, %v3158_v23  ;;  %v3172_v42 = vor.u32 %v3171_v20, %v3170_v10  ;;  %v3186_v52 = vrot.slane %v9822_v49, 5  ;;  %v1923_v10 = vrot.slane %v7594_v5, 4 }
 0x144   : > { %4693 = vperm.xlu1 %6812, %v4567_v30   ;;  %v3194_v20 = vrot.slane %v9806_v19, 5  ;;  %v3202_v19 = vrot.slane %v7682_v43, 5  ;;  %v1931_v43 = vrot.slane %v9785_v13, 4 }
 0x145   : > { %4698 = vperm.xlu0 %6811, %v4568_v58   ;;  %v3165_v16 = vsel %vm3146_vm8, %v3160_v63, %v3164_v45  ;;  %v4578_v58 = vld [vmem:[%s9685_s2 + $0x108] sm:$0xff] }
 0x146   : > { %6388 = vmatmul.mubr.msk.bf16.gmra.mrb[32].mxu0 %vm682_vm1, %v9811_v4  ;;  %v4577_v4 = vld [vmem:[%s9685_s2 + $0x100] sm:$0xff] }
 0x147   : > { %6395 = vmatprep.mubr.msk.bf16.mxu0 %vm682_vm1, %v3153_v39  ;;  %v9819_v39 = vld [vmem:[#allocation20_spill] sm:$0xff] }
 0x148   : > { %4703 = vperm.xlu1 %6812, %v4569_v44   ;;  %v3175_v23 = vrot.slane %v9819_v39, 6  ;;  %v3179_v44 = vrot.slane %v9803_v34, 6  ;;  %v4580_v34 = vld [vmem:[%s9685_s2 + $0x118] sm:$0xff]  ;;  %v1924_v39 = vsel %vm1899_vm3, %v1921_v8, %v1923_v10 }
 0x149   : > { %6212 = vmatmul.mubr.msk.bf16.gmra.mrb[16].mxu1 %vm682_vm1, %v8061_v6  ;;  %v3161_v6 = vsel %vm3146_vm8, %v3156_v59, %v3160_v63  ;;  %4708 = vperm.xlu0 %6811, %v4570_v51   ;;  %v3173_v59 = vsel %vm3146_vm8, %v3168_v0, %v3172_v42  ;;  %v3178_v63 = vrot.slane %v9802_v15, 5  ;;  %v3182_v51 = vrot.slane %v7572_v31, 5 }
 0x14a   : > { %6215 = vmatprep.mubr.msk.bf16.mxu1 %vm682_vm1, %v8080_v14  ;;  %v4571_v14 = vld [vmem:[%s9685_s2 + $0xd0] sm:$0xff]  ;;  %v3176_v30 = vor.u32 %v3175_v23, %v3174_v27  ;;  %v1662_v15 = vrot.slane %v9821_v46, 4  ;;  %v3199_v27 = vrot.slane %v7650_v60, 6  ;;  %v1929_v60 = vrot.slane %v7658_v56, 4 }
 0x14b   : > { %v3180_v31 = vor.u32 %v3179_v44, %v3178_v63  ;;  %v3214_v44 = vrot.slane %v9820_v37, 5 }
 0x14c   : > { %4713 = vperm.xlu1 %6812, %v4571_v14   ;;  %v1663_v50 = vor.u32 %v1662_v15, %v1659_v48  ;;  %v3187_v14 = vrot.slane %v9823_v26, 6 }
 0x14d   : > { %4718 = vperm.xlu0 %6811, %v4572_v3  }
 0x14e   : > { %6396 = vmatmul.mubr.msk.bf16.vlgmr.msra.gmra.mrb[0].mxu0 %vm682_vm1, %v3157_v41  ;;  %v3183_v41 = vrot.slane %v7575_v32, 6  ;;  %v3188_v62 = vor.u32 %v3187_v14, %v3186_v52 }
 0x14f   : > { %6399 = vmatprep.mubr.msk.bf16.mxu0 %vm682_vm1, %v3161_v6  ;;  %v3181_v6 = vsel %vm3146_vm8, %v3176_v30, %v3180_v31 }
 0x150   : > { %4723 = vperm.xlu1 %6812, %v4573_v61   ;;  %v3184_v32 = vor.u32 %v3183_v41, %v3182_v51  ;;  %v9825_v61 = vld [vmem:[#allocation26_spill] sm:$0xff]  ;;  %v1932_v51 = vsel %vm1899_vm3, %v1929_v60, %v1931_v43 }
 0x151   : > { %6216 = vmatmul.mubr.msk.bf16.gmra.mrb[20].mxu1 %vm682_vm1, %v8087_v22  ;;  %v3169_v22 = vsel %vm3146_vm8, %v3164_v45, %v3168_v0  ;;  %4728 = vperm.xlu0 %6811, %v4574_v36   ;;  %v9824_v45 = vld [vmem:[#allocation25_spill] sm:$0xff]  ;;  %v3191_v36 = vrot.slane %v9825_v61, 6 }
 0x152   : > { %6219 = vmatprep.mubr.msk.bf16.mxu1 %vm682_vm1, %v8105_v47  ;;  %v4575_v47 = vld [vmem:[%s9685_s2 + $0xf0] sm:$0xff]  ;;  %v3185_v3 = vsel %vm3146_vm8, %v3180_v31, %v3184_v32  ;;  %v3190_v0 = vrot.slane %v9824_v45, 5  ;;  %v3189_v33 = vsel %vm3146_vm8, %v3184_v32, %v3188_v62 }
 0x154   : > { %4733 = vperm.xlu1 %6812, %v4575_v47   ;;  %v3192_v25 = vor.u32 %v3191_v36, %v3190_v0  ;;  %v3203_v47 = vrot.slane %v7685_v9, 6 }
 0x155   : > { %4738 = vperm.xlu0 %6811, %v4576_v40  }
 0x156   : > { %6400 = vmatmul.mubr.msk.bf16.gmra.mrb[4].mxu0 %vm682_vm1, %v3165_v16 }
 0x157   : > { %6403 = vmatprep.mubr.msk.bf16.mxu0 %vm682_vm1, %v3169_v22  ;;  %v3193_v22 = vsel %vm3146_vm8, %v3188_v62, %v3192_v25 }
 0x158   : > { %4743 = vperm.xlu1 %6812, %v4577_v4  }
 0x159   : > { %6220 = vmatmul.mubr.msk.bf16.gmra.mrb[24].mxu1 %vm682_vm1, %v8111_v28  ;;  %v3177_v28 = vsel %vm3146_vm8, %v3172_v42, %v3176_v30  ;;  %4748 = vperm.xlu0 %6811, %v4578_v58   ;;  %v3206_v42 = vrot.slane %v7694_v11, 5  ;;  %v3207_v30 = vrot.slane %v7697_v1, 6  ;;  %v3204_v58 = vor.u32 %v3203_v47, %v3202_v19 }
 0x15a   : > { %6223 = vmatprep.mubr.msk.bf16.mxu1 %vm682_vm1, %v8129_v24  ;;  %v4579_v24 = vld [vmem:[%s9685_s2 + $0x110] sm:$0xff]  ;;  %v1933_v11 = vrot.slane %v7710_v35, 4  ;;  %v3210_v1 = vrot.slane %v7720_v53, 5  ;;  %v1935_v53 = vrot.slane %v7766_v2, 4 }
 0x15b   : > { %v3208_v56 = vor.u32 %v3207_v30, %v3206_v42 }
 0x15c   : > { %4753 = vperm.xlu1 %6812, %v4579_v24   ;;  %v1934_v13 = vsel %vm1899_vm3, %v1931_v43, %v1933_v11  ;;  %v9827_v24 = vld [vmem:[#allocation33_spill] sm:$0xff]  ;;  %v1936_v31 = vsel %vm1899_vm3, %v1933_v11, %v1935_v53  ;;  %v460_v53 = vld [vmem:[%s7240_s10 + $0x8] sm:$0xff] }
 0x15d   : > { %4758 = vperm.xlu0 %6811, %v4580_v34   ;;  %v3209_v63 = vsel %vm3146_vm8, %v3204_v58, %v3208_v56  ;;  %v9828_v37 = vshrl.u32 %v9827_v24, 16 }
 0x15e   : > { %6404 = vmatmul.mubr.msk.bf16.gmra.mrb[8].mxu0 %vm682_vm1, %v3173_v59  ;;  %v3211_v59 = vrot.slane %v9808_v21, 6 }
 0x15f   : > { %6407 = vmatprep.mubr.msk.bf16.mxu0 %vm682_vm1, %v3177_v28  ;;  %v3215_v28 = vrot.slane %v9821_v46, 6  ;;  %v3218_v48 = vrot.slane %v9828_v37, 5  ;;  %v9829_v46 = vshll.u32 %v9827_v24, 16 }
 0x160   : > { %v3212_v41 = vor.u32 %v3211_v59, %v3210_v1  ;;  %v461_v59 = vld [vmem:[%s7240_s10 + $0x10] sm:$0xff] }
 0x161   : > { %6224 = vmatmul.mubr.msk.bf16.gmra.mrb[28].mxu1 %vm682_vm1, %v8135_v17  ;;  %v1664_v17 = vsel %vm1296_vm6, %v8149_v29, %v1663_v50  ;;  %v1925_v29 = vrot.slane %v7623_v18, 4  ;;  %v3200_v18 = vor.u32 %v3199_v27, %v3198_v57  ;;  %v3216_v35 = vor.u32 %v3215_v28, %v3214_v44  ;;  %v8436_v50 = vpop.permute.xlu0 %3825  ;;  %v459_v44 = vld [vmem:[%s7240_s10] sm:$0xff] }
 0x162   : > { %6227 = vmatprep.mubr.msk.bf16.mxu1 %vm682_vm1, %v8161_v38  ;;  %v9826_v38 = vrot.slane %v7561_v12, 4  ;;  %v3195_v12 = vrot.slane %v9807_v7, 6  ;;  %v1927_v7 = vrot.slane %v7628_v55, 4  ;;  %v3213_v21 = vsel %vm3146_vm8, %v3208_v56, %v3212_v41 }
 0x163   : > { %v1926_v5 = vsel %vm1899_vm3, %v1923_v10, %v1925_v29  ;;  %v3205_v9 = vsel %vm3146_vm8, %v3200_v18, %v3204_v58  ;;  %v3219_v15 = vrot.slane %v9829_v46, 6  ;;  %v3217_v34 = vsel %vm3146_vm8, %v3212_v41, %v3216_v35 }
 0x164   : > { %v1922_v16 = vsel %vm1899_vm3, %v9826_v38, %v1921_v8  ;;  %v3196_v23 = vor.u32 %v3195_v12, %v3194_v20  ;;  %v1928_v4 = vsel %vm1899_vm3, %v1925_v29, %v1927_v7  ;;  %v1930_v55 = vsel %vm1899_vm3, %v1927_v7, %v1929_v60 }
 0x165   : > { %v3220_v32 = vor.u32 %v3219_v15, %v3218_v48  ;;  %v8440_v8 = vpop.permute.xlu0 %3827 }
 0x166   : > { %6408 = vmatmul.mubr.msk.bf16.gmra.mrb[12].mxu0 %vm682_vm1, %v3181_v6  ;;  %v3197_v54 = vsel %vm3146_vm8, %v3192_v25, %v3196_v23  ;;  %v3201_v40 = vsel %vm3146_vm8, %v3196_v23, %v3200_v18  ;;  %v8438_v6 = vpop.permute.xlu1 %3829 }
 0x167   : > { %6411 = vmatprep.mubr.msk.bf16.mxu0 %vm682_vm1, %v3185_v3  ;;  %v3221_v2 = vsel %vm3146_vm8, %v3216_v35, %v3220_v32 }
 0x169   : > { %6228 = vmatmul.mubr.msk.bf16.gmra.mrb[32].mxu1 %vm682_vm1, %v1664_v17  ;;  %v8444_v52 = vpop.permute.xlu0 %3833 }
 0x16a   : > { %6255 = vmatprep.mubr.msk.bf16.mxu1 %vm682_vm1, %v1922_v16  ;;  %v8442_v49 = vpop.permute.xlu1 %3831 }
 0x16d   : > { %v8448_v14 = vpop.permute.xlu0 %3837 }
 0x16e   : > { %6412 = vmatmul.mubr.msk.bf16.gmra.mrb[16].mxu0 %vm682_vm1, %v3189_v33  ;;  %v8446_v26 = vpop.permute.xlu1 %3835 }
 0x16f   : > { %6415 = vmatprep.mubr.msk.bf16.mxu0 %vm682_vm1, %v3193_v22 }
 0x171   : > { %6256 = vmatmul.mubr.msk.bf16.vlgmr.msra.gmra.mrb[20].mxu1 %vm682_vm1, %v1924_v39  ;;  %v8452_v45 = vpop.permute.xlu0 %3841 }
 0x172   : > { %6259 = vmatprep.mubr.msk.bf16.mxu1 %vm682_vm1, %v1926_v5  ;;  %v8450_v3 = vpop.permute.xlu1 %3839 }
 0x175   : > { %v8456_v61 = vpop.permute.xlu0 %3845 }
 0x176   : > { %6416 = vmatmul.mubr.msk.bf16.gmra.mrb[20].mxu0 %vm682_vm1, %v3197_v54  ;;  %v8454_v0 = vpop.permute.xlu1 %3843 }
 0x177   : > { %6419 = vmatprep.mubr.msk.bf16.mxu0 %vm682_vm1, %v3201_v40 }
 0x179   : > { %6260 = vmatmul.mubr.msk.bf16.gmra.mrb[24].mxu1 %vm682_vm1, %v1928_v4  ;;  %v8460_v17 = vpop.permute.xlu0 %3849 }
 0x17a   : > { %6263 = vmatprep.mubr.msk.bf16.mxu1 %vm682_vm1, %v1930_v55  ;;  %v8458_v36 = vpop.permute.xlu1 %3847  ;;  %9830 = vst [vmem:[#allocation29_spill] sm:$0xff] %v8460_v17 }
 0x17d   : > { %v8464_v16 = vpop.permute.xlu0 %3853 }
 0x17e   : > { %6420 = vmatmul.mubr.msk.bf16.gmra.mrb[24].mxu0 %vm682_vm1, %v3205_v9  ;;  %v8462_v38 = vpop.permute.xlu1 %3851 }
 0x17f   : > { %6423 = vmatprep.mubr.msk.bf16.mxu0 %vm682_vm1, %v3209_v63  ;;  %9831 = vst [vmem:[#allocation5_spill] sm:$0xff] %v8462_v38 }
 0x181   : > { %6264 = vmatmul.mubr.msk.bf16.gmra.mrb[28].mxu1 %vm682_vm1, %v1932_v51  ;;  %v8468_v25 = vpop.permute.xlu0 %3857  ;;  %v462_v51 = vld [vmem:[%s7240_s10 + $0x18] sm:$0xff] }
 0x182   : > { %6267 = vmatprep.mubr.msk.bf16.mxu1 %vm682_vm1, %v1934_v13  ;;  %v8466_v62 = vpop.permute.xlu1 %3855  ;;  %9833 = vst [vmem:[#allocation7_spill] sm:$0xff] %v8468_v25 }
 0x183   : > { %9832 = vst [vmem:[#allocation6_spill] sm:$0xff] %v8466_v62 }
 0x185   : > { %v8472_v22 = vpop.permute.xlu0 %3861 }
 0x186   : > { %6424 = vmatmul.mubr.msk.bf16.gmra.mrb[28].mxu0 %vm682_vm1, %v3213_v21  ;;  %v8470_v33 = vpop.permute.xlu1 %3859  ;;  %9835 = vst [vmem:[#allocation9_spill] sm:$0xff] %v8472_v22  ;;  %v492_v22 = vld [vmem:[%s7240_s10 + $0x108] sm:$0xff] }
 0x187   : > { %6427 = vmatprep.mubr.msk.bf16.mxu0 %vm682_vm1, %v3217_v34  ;;  %9834 = vst [vmem:[#allocation8_spill] sm:$0xff] %v8470_v33 }
 0x189   : > { %6268 = vmatmul.mubr.msk.bf16.gmra.mrb[32].mxu1 %vm682_vm1, %v1936_v31  ;;  %v8476_v23 = vpop.permute.xlu0 %3865 }
 0x18a   : > { %v8474_v57 = vpop.permute.xlu1 %3863  ;;  %9837 = vst [vmem:[#allocation11_spill] sm:$0xff] %v8476_v23 }
 0x18b   : > { %9836 = vst [vmem:[#allocation10_spill] sm:$0xff] %v8474_v57 }
 0x18d   : > { %v8482_v60 = vpop.permute.xlu0 %3869 }
 0x18e   : > { %6428 = vmatmul.mubr.msk.bf16.gmra.mrb[32].mxu0 %vm682_vm1, %v3221_v2  ;;  %v8478_v7 = vpop.permute.xlu1 %3867  ;;  %9839 = vst [vmem:[#allocation22_spill] sm:$0xff] %v8482_v60 }
 0x18f   : > { %9838 = vst [vmem:[#allocation21_spill] sm:$0xff] %v8478_v7 }
 0x191   : > { %v8492_v30 = vpop.permute.xlu0 %3873 }
 0x192   : > { %v8488_v40 = vpop.permute.xlu1 %3871  ;;  %9841 = vst [vmem:[#allocation28_spill] sm:$0xff] %v8492_v30  ;;  %v480_v30 = vld [vmem:[%s7240_s10 + $0xa8] sm:$0xff] }
 0x193   : > { %9840 = vst [vmem:[#allocation27_spill] sm:$0xff] %v8488_v40 }
 0x195   : > { %v8504_v9 = vpop.permute.xlu0 %3877 }
 0x196   : > { %v8496_v55 = vpop.permute.xlu1 %3875  ;;  %9843 = vst [vmem:[#allocation12_spill] sm:$0xff] %v8504_v9 }
 0x197   : > { %9842 = vst [vmem:[#allocation30_spill] sm:$0xff] %v8496_v55 }
 0x199   : > { %v8517_v13 = vpop.permute.xlu0 %3881 }
 0x19a   : > { %v8506_v11 = vpop.permute.xlu1 %3879  ;;  %9845 = vst [vmem:[#allocation13_spill] sm:$0xff] %v8517_v13 }
 0x19b   : > { %9844 = vst [vmem:[#allocation34_spill] sm:$0xff] %v8506_v11 }
 0x19e   : > { %v8522_v24 = vpop.permute.xlu1 %3883 }
 0x19f   : > { %9846 = vst [vmem:[#allocation14_spill] sm:$0xff] %v8522_v24  ;;  %v463_v24 = vld [vmem:[%s7240_s10 + $0x20] sm:$0xff] }
 0x1fc   : > { %v6197_v10 = vpop.f32.mrb[0].mxu1 }
 0x1fd   : > { %v1714_v29 = vpop.f32.mrb[1].mxu1  ;;  %v6435_v35 = vadd.f32 %v6197_v10, %v461_v59  ;;  %v465_v59 = vld [vmem:[%s7240_s10 + $0x30] sm:$0xff] }
 0x1fe   : > { %v6198_v20 = vpop.f32.mrb[2].mxu1  ;;  %v6437_v21 = vadd.f32 %v1714_v29, %v459_v44  ;;  %v8532_v29 = vpop.permute.xlu0 %3885 }
 0x1ff   : > { %v1717_v12 = vpop.f32.mrb[3].mxu1  ;;  %v6439_v48 = vadd.f32 %v6198_v20, %v462_v51  ;;  %9847 = vst [vmem:[#allocation15_spill] sm:$0xff] %v8532_v29  ;;  %v466_v20 = vld [vmem:[%s7240_s10 + $0x38] sm:$0xff]  ;;  %v8539_v51 = vpop.permute.xlu1 %3887 }
 0x200   : > { %v6441_v34 = vadd.f32 %v1717_v12, %v460_v53  ;;  %9848 = vst [vmem:[#allocation16_spill] sm:$0xff] %v8539_v51 }
 0x204   : > { %v6201_v27 = vpop.f32.mrb[4].mxu1 }
 0x205   : > { %v1730_v39 = vpop.f32.mrb[5].mxu1  ;;  %v6443_v12 = vadd.f32 %v6201_v27, %v465_v59 }
 0x206   : > { %v6202_v5 = vpop.f32.mrb[6].mxu1  ;;  %v6445_v53 = vadd.f32 %v1730_v39, %v463_v24  ;;  %v469_v24 = vld [vmem:[%s7240_s10 + $0x50] sm:$0xff] }
 0x207   : > { %v1733_v18 = vpop.f32.mrb[7].mxu1 }
 0x20c   : > { %v8480_v54 = vpop.f32.mrb[8].mxu1 }
 0x20d   : > { %v8484_v19 = vpop.f32.mrb[9].mxu1 }
 0x20e   : > { %v8486_v47 = vpop.f32.mrb[10].mxu1 }
 0x20f   : > { %v8490_v42 = vpop.f32.mrb[11].mxu1 }
 0x214   : > { %v8494_v4 = vpop.f32.mrb[12].mxu1 }
 0x215   : > { %v8498_v58 = vpop.f32.mrb[13].mxu1 }
 0x216   : > { %v8500_v56 = vpop.f32.mrb[14].mxu1 }
 0x217   : > { %v8502_v43 = vpop.f32.mrb[15].mxu1 }
 0x21c   : > { %v8508_v1 = vpop.f32.mrb[16].mxu1 }
 0x21d   : > { %v8511_v63 = vpop.f32.mrb[17].mxu1 }
 0x21e   : > { %v8514_v28 = vpop.f32.mrb[18].mxu1 }
 0x21f   : > { %v8519_v41 = vpop.f32.mrb[19].mxu1 }
 0x221   : > { %v6397_v37 = vpop.f32.mrb[0].mxu0 }
 0x222   : > { %v8524_v46 = vadd.f32 %v6435_v35, %v6397_v37  ;;  %v3322_v15 = vpop.f32.mrb[1].mxu0  ;;  %v464_v35 = vld [vmem:[%s7240_s10 + $0x28] sm:$0xff]  ;;  %v6447_v37 = vadd.f32 %v6202_v5, %v466_v20  ;;  %v8554_v5 = vpop.permute.xlu1 %3891 }
 0x223   : > { %v8526_v31 = vadd.f32 %v6437_v21, %v3322_v15  ;;  %v6398_v32 = vpop.f32.mrb[2].mxu0  ;;  %9850 = vst [vmem:[#allocation18_spill] sm:$0xff] %v8554_v5 }
 0x224   : > { %6831 = vtanh.f32 %v8524_v46  ;;  %v8529_v2 = vadd.f32 %v6439_v48, %v6398_v32  ;;  %v3325_v10 = vpop.f32.mrb[3].mxu0  ;;  %v8546_v32 = vpop.permute.xlu0 %3889 }
 0x225   : > { %v8534_v44 = vadd.f32 %v6441_v34, %v3325_v10  ;;  %v6449_v34 = vadd.f32 %v1733_v18, %v464_v35  ;;  %9849 = vst [vmem:[#allocation17_spill] sm:$0xff] %v8546_v32  ;;  %v470_v18 = vld [vmem:[%s7240_s10 + $0x58] sm:$0xff] }
 0x226   : > { %6833 = vtanh.f32 %v8529_v2  ;;  %v6455_v5 = vadd.f32 %v8486_v47, %v470_v18  ;;  %v8574_v32 = vpop.permute.xlu1 %3895 }
 0x227   : > { %6835 = vtanh.f32 %v8526_v31  ;;  %9852 = vst [vmem:[#allocation20_spill] sm:$0xff] %v8574_v32  ;;  %v474_v32 = vld [vmem:[%s7240_s10 + $0x78] sm:$0xff] }
 0x228   : > { %6837 = vtanh.f32 %v8534_v44 }
 0x229   : > { %v6401_v21 = vpop.f32.mrb[4].mxu0 }
 0x22a   : > { %v8544_v48 = vadd.f32 %v6443_v12, %v6401_v21  ;;  %v3338_v15 = vpop.f32.mrb[5].mxu0  ;;  %v467_v21 = vld [vmem:[%s7240_s10 + $0x40] sm:$0xff] }
 0x22b   : > { %v8548_v10 = vadd.f32 %v6445_v53, %v3338_v15  ;;  %v6402_v27 = vpop.f32.mrb[6].mxu0  ;;  %v6451_v53 = vadd.f32 %v8480_v54, %v469_v24  ;;  %v468_v15 = vld [vmem:[%s7240_s10 + $0x48] sm:$0xff] }
 0x22c   : > { %6839 = vtanh.f32 %v8544_v48  ;;  %v8551_v59 = vadd.f32 %v6447_v37, %v6402_v27  ;;  %v3341_v39 = vpop.f32.mrb[7].mxu0  ;;  %v6453_v37 = vadd.f32 %v8484_v19, %v467_v21  ;;  %v8566_v27 = vpop.permute.xlu0 %3893  ;;  %v6457_v24 = vadd.f32 %v8490_v42, %v468_v15  ;;  %v471_v15 = vld [vmem:[%s7240_s10 + $0x60] sm:$0xff] }
 0x22d   : > { %v8556_v20 = vadd.f32 %v6449_v34, %v3341_v39  ;;  %9851 = vst [vmem:[#allocation19_spill] sm:$0xff] %v8566_v27  ;;  %v472_v27 = vld [vmem:[%s7240_s10 + $0x68] sm:$0xff] }
 0x22e   : > { %v6832_v12 = vpop.eup %6831  ;;  %6841 = vtanh.f32 %v8551_v59 }
 0x22f   : > { %4009 = vrot.lane.b32.xlu0 %v6832_v12, %s7164_s8  ;;  %6843 = vtanh.f32 %v8548_v10 }
 0x230   : > { %v6834_v35 = vpop.eup %6833  ;;  %6845 = vtanh.f32 %v8556_v20 }
 0x231   : > { %v6405_v34 = vpop.f32.mrb[8].mxu0  ;;  %4011 = vrot.lane.b32.xlu1 %v6834_v35, %s7164_s8  ;;  %v6836_v39 = vpop.eup %6835 }
 0x232   : > { %v8571_v12 = vadd.f32 %v6451_v53, %v6405_v34  ;;  %v3354_v54 = vpop.f32.mrb[9].mxu0  ;;  %v6838_v35 = vpop.eup %6837  ;;  %v473_v53 = vld [vmem:[%s7240_s10 + $0x70] sm:$0xff] }
 0x233   : > { %v8576_v19 = vadd.f32 %v6453_v37, %v3354_v54  ;;  %v6406_v21 = vpop.f32.mrb[10].mxu0  ;;  %4005 = vrot.lane.b32.xlu0 %v6836_v39, %s7164_s8  ;;  %v8588_v37 = vpop.permute.xlu0 %4583  ;;  %v6459_v39 = vadd.f32 %v8494_v4, %v473_v53 }
 0x234   : > { %6847 = vtanh.f32 %v8571_v12  ;;  %v8580_v47 = vadd.f32 %v6455_v5, %v6406_v21  ;;  %v3357_v18 = vpop.f32.mrb[11].mxu0  ;;  %9853 = vst [vmem:[#allocation31_spill] sm:$0xff] %v8588_v37  ;;  %v6461_v5 = vadd.f32 %v8498_v58, %v471_v15  ;;  %v8594_v21 = vpop.permute.xlu1 %4588  ;;  %v6465_v37 = vadd.f32 %v8502_v43, %v472_v27  ;;  %v475_v27 = vld [vmem:[%s7240_s10 + $0x80] sm:$0xff] }
 0x235   : > { %v8583_v34 = vadd.f32 %v6457_v24, %v3357_v18  ;;  %4007 = vrot.lane.b32.xlu1 %v6838_v35, %s7164_s8  ;;  %9854 = vst [vmem:[#allocation32_spill] sm:$0xff] %v8594_v21  ;;  %v6463_v18 = vadd.f32 %v8500_v56, %v474_v32  ;;  %6849 = vtanh.f32 %v8576_v19  ;;  %v477_v21 = vld [vmem:[%s7240_s10 + $0x90] sm:$0xff] }
 0x236   : > { %v6840_v42 = vpop.eup %6839  ;;  %6851 = vtanh.f32 %v8580_v47 }
 0x237   : > { %4017 = vrot.lane.b32.xlu0 %v6840_v42, %s7164_s8  ;;  %v8608_v56 = vpop.permute.xlu0 %4598  ;;  %6853 = vtanh.f32 %v8583_v34 }
 0x238   : > { %v6842_v54 = vpop.eup %6841  ;;  %9855 = vst [vmem:[#allocation23_spill] sm:$0xff] %v8608_v56 }
 0x239   : > { %v6409_v24 = vpop.f32.mrb[12].mxu0  ;;  %4019 = vrot.lane.b32.xlu1 %v6842_v54, %s7164_s8  ;;  %v6844_v35 = vpop.eup %6843 }
 0x23a   : > { %v8598_v51 = vadd.f32 %v6459_v39, %v6409_v24  ;;  %v3370_v42 = vpop.f32.mrb[13].mxu0  ;;  %v6846_v53 = vpop.eup %6845  ;;  %v478_v39 = vld [vmem:[%s7240_s10 + $0x98] sm:$0xff]  ;;  %v6467_v24 = vadd.f32 %v8508_v1, %v477_v21 }
 0x23b   : > { %v8602_v4 = vadd.f32 %v6461_v5, %v3370_v42  ;;  %v6410_v58 = vpop.f32.mrb[14].mxu0  ;;  %4013 = vrot.lane.b32.xlu0 %v6844_v35, %s7164_s8  ;;  %v8615_v5 = vpop.permute.xlu1 %4593  ;;  %v6469_v35 = vadd.f32 %v8511_v63, %v475_v27 }
 0x23c   : > { %v8605_v15 = vadd.f32 %v6463_v18, %v6410_v58  ;;  %v3373_v54 = vpop.f32.mrb[15].mxu0  ;;  %9856 = vst [vmem:[#allocation24_spill] sm:$0xff] %v8615_v5  ;;  %6855 = vtanh.f32 %v8598_v51 }
 0x23d   : > { %v8610_v32 = vadd.f32 %v6465_v37, %v3373_v54  ;;  %4015 = vrot.lane.b32.xlu1 %v6846_v53, %s7164_s8  ;;  %v6471_v37 = vadd.f32 %v8514_v28, %v478_v39  ;;  %v476_v53 = vld [vmem:[%s7240_s10 + $0x88] sm:$0xff]  ;;  %v8625_v54 = vpop.permute.xlu0 %4608  ;;  %v481_v28 = vld [vmem:[%s7240_s10 + $0xb0] sm:$0xff]  ;;  %6857 = vtanh.f32 %v8602_v4 }
 0x23e   : > { %v6848_v43 = vpop.eup %6847  ;;  %9857 = vst [vmem:[#allocation25_spill] sm:$0xff] %v8625_v54  ;;  %6859 = vtanh.f32 %v8605_v15 }
 0x23f   : > { %4025 = vrot.lane.b32.xlu0 %v6848_v43, %s7164_s8  ;;  %v6850_v27 = vpop.eup %6849  ;;  %v8632_v5 = vpop.permute.xlu1 %4603  ;;  %6861 = vtanh.f32 %v8610_v32 }
 0x240   : > { %9858 = vst [vmem:[#allocation26_spill] sm:$0xff] %v8632_v5 }
 0x241   : > { %v6413_v18 = vpop.f32.mrb[16].mxu0 }
 0x242   : > { %v8622_v42 = vadd.f32 %v6467_v24, %v6413_v18  ;;  %v3386_v58 = vpop.f32.mrb[17].mxu0  ;;  %v6473_v24 = vadd.f32 %v8519_v41, %v476_v53  ;;  %v479_v18 = vld [vmem:[%s7240_s10 + $0xa0] sm:$0xff]  ;;  %v6852_v53 = vpop.eup %6851 }
 0x243   : > { %v8627_v56 = vadd.f32 %v6469_v35, %v3386_v58  ;;  %v6414_v43 = vpop.f32.mrb[18].mxu0  ;;  %4021 = vrot.lane.b32.xlu0 %v6850_v27, %s7164_s8  ;;  %v482_v58 = vld [vmem:[%s7240_s10 + $0xb8] sm:$0xff]  ;;  %v8647_v27 = vpop.permute.xlu1 %4613  ;;  %4027 = vrot.lane.b32.xlu1 %v6852_v53, %s7164_s8  ;;  %v484_v53 = vld [vmem:[%s7240_s10 + $0xc8] sm:$0xff] }
 0x244   : > { %v6257_v1 = vpop.f32.mrb[20].mxu1  ;;  %v8630_v63 = vadd.f32 %v6471_v37, %v6414_v43  ;;  %v3389_v21 = vpop.f32.mrb[19].mxu0  ;;  %9860 = vst [vmem:[#allocation35_spill] sm:$0xff] %v8647_v27  ;;  %6863 = vtanh.f32 %v8622_v42 }
 0x245   : > { %v2117_v39 = vpop.f32.mrb[21].mxu1  ;;  %v6475_v13 = vadd.f32 %v6257_v1, %v481_v28  ;;  %v8640_v37 = vadd.f32 %v6473_v24, %v3389_v21  ;;  %v8642_v43 = vpop.permute.xlu0 %4618  ;;  %6865 = vtanh.f32 %v8627_v56 }
 0x246   : > { %v6258_v35 = vpop.f32.mrb[22].mxu1  ;;  %9859 = vst [vmem:[#allocation33_spill] sm:$0xff] %v8642_v43  ;;  %v6477_v29 = vadd.f32 %v2117_v39, %v479_v18  ;;  %v6854_v18 = vpop.eup %6853  ;;  %6867 = vtanh.f32 %v8630_v63 }
 0x247   : > { %v2120_v54 = vpop.f32.mrb[23].mxu1  ;;  %v6479_v55 = vadd.f32 %v6258_v35, %v482_v58  ;;  %v483_v58 = vld [vmem:[%s7240_s10 + $0xc0] sm:$0xff]  ;;  %v6856_v27 = vpop.eup %6855  ;;  %4023 = vrot.lane.b32.xlu1 %v6854_v18, %s7164_s8  ;;  %6869 = vtanh.f32 %v8640_v37 }
 0x248   : > { %v6481_v35 = vadd.f32 %v2120_v54, %v480_v30  ;;  %4033 = vrot.lane.b32.xlu0 %v6856_v27, %s7164_s8  ;;  %v8667_v7 = vpop.permute.xlu1 %4623 }
 0x249   : > { %v6417_v5 = vpop.f32.mrb[20].mxu0  ;;  %v8658_v9 = vpop.permute.xlu0 %4628  ;;  %9862 = vst [vmem:[#allocation37_spill] sm:$0xff] %v8667_v7 }
 0x24a   : > { %v8645_v11 = vadd.f32 %v6475_v13, %v6417_v5  ;;  %v3402_v41 = vpop.f32.mrb[21].mxu0  ;;  %v485_v5 = vld [vmem:[%s7240_s10 + $0xd0] sm:$0xff]  ;;  %9861 = vst [vmem:[#allocation36_spill] sm:$0xff] %v8658_v9 }
 0x24b   : > { %v8650_v1 = vadd.f32 %v6477_v29, %v3402_v41  ;;  %v6418_v21 = vpop.f32.mrb[22].mxu0  ;;  %v486_v29 = vld [vmem:[%s7240_s10 + $0xd8] sm:$0xff] }
 0x24c   : > { %v6261_v28 = vpop.f32.mrb[24].mxu1  ;;  %v8654_v39 = vadd.f32 %v6479_v55, %v6418_v21  ;;  %v3405_v13 = vpop.f32.mrb[23].mxu0  ;;  %6871 = vtanh.f32 %v8645_v11 }
 0x24d   : > { %v2133_v24 = vpop.f32.mrb[25].mxu1  ;;  %v6483_v55 = vadd.f32 %v6261_v28, %v485_v5  ;;  %v8665_v21 = vadd.f32 %v6481_v35, %v3405_v13  ;;  %v6858_v28 = vpop.eup %6857  ;;  %6873 = vtanh.f32 %v8650_v1 }
 0x24e   : > { %v6262_v43 = vpop.f32.mrb[26].mxu1  ;;  %v6485_v30 = vadd.f32 %v2133_v24, %v483_v58  ;;  %v8676_v24 = vpop.permute.xlu0 %4638  ;;  %4029 = vrot.lane.b32.xlu0 %v6858_v28, %s7164_s8  ;;  %6875 = vtanh.f32 %v8654_v39 }
 0x24f   : > { %v2136_v41 = vpop.f32.mrb[27].mxu1  ;;  %v6487_v9 = vadd.f32 %v6262_v43, %v486_v29  ;;  %9863 = vst [vmem:[#allocation38_spill] sm:$0xff] %v8676_v24  ;;  %v489_v43 = vld [vmem:[%s7240_s10 + $0xf0] sm:$0xff]  ;;  %6877 = vtanh.f32 %v8665_v21 }
 0x250   : > { %v6489_v60 = vadd.f32 %v2136_v41, %v484_v53  ;;  %v8684_v53 = vpop.permute.xlu1 %4633 }
 0x251   : > { %v6421_v54 = vpop.f32.mrb[24].mxu0  ;;  %9864 = vst [vmem:[#allocation39_spill] sm:$0xff] %v8684_v53 }
 0x252   : > { %v8670_v40 = vadd.f32 %v6483_v55, %v6421_v54  ;;  %v3418_v23 = vpop.f32.mrb[25].mxu0  ;;  %v6860_v55 = vpop.eup %6859 }
 0x253   : > { %v8672_v18 = vadd.f32 %v6485_v30, %v3418_v23  ;;  %v6422_v27 = vpop.f32.mrb[26].mxu0  ;;  %v487_v23 = vld [vmem:[%s7240_s10 + $0xe0] sm:$0xff]  ;;  %4035 = vrot.lane.b32.xlu1 %v6860_v55, %s7164_s8  ;;  %v6862_v24 = vpop.eup %6861 }
 0x254   : > { %v6265_v13 = vpop.f32.mrb[28].mxu1  ;;  %v8674_v5 = vadd.f32 %v6487_v9, %v6422_v27  ;;  %v3421_v35 = vpop.f32.mrb[27].mxu0  ;;  %v490_v9 = vld [vmem:[%s7240_s10 + $0xf8] sm:$0xff]  ;;  %v488_v27 = vld [vmem:[%s7240_s10 + $0xe8] sm:$0xff]  ;;  %6879 = vtanh.f32 %v8670_v40 }
 0x255   : > { %v2149_v58 = vpop.f32.mrb[29].mxu1  ;;  %v8680_v29 = vadd.f32 %v6489_v60, %v3421_v35  ;;  %v6491_v54 = vadd.f32 %v6265_v13, %v489_v43  ;;  %v8692_v57 = vpop.permute.xlu0 %4648  ;;  %6881 = vtanh.f32 %v8672_v18 }
 0x256   : > { %v6266_v41 = vpop.f32.mrb[30].mxu1  ;;  %v6493_v28 = vadd.f32 %v2149_v58, %v487_v23  ;;  %9865 = vst [vmem:[#allocation40_spill] sm:$0xff] %v8692_v57  ;;  %v6864_v43 = vpop.eup %6863  ;;  %6883 = vtanh.f32 %v8674_v5 }
 0x257   : > { %v2152_v30 = vpop.f32.mrb[31].mxu1  ;;  %v6495_v60 = vadd.f32 %v6266_v41, %v490_v9  ;;  %4031 = vrot.lane.b32.xlu1 %v6862_v24, %s7164_s8  ;;  %v8700_v41 = vpop.permute.xlu1 %4643  ;;  %4041 = vrot.lane.b32.xlu0 %v6864_v43, %s7164_s8  ;;  %v493_v9 = vld [vmem:[%s7240_s10 + $0x110] sm:$0xff]  ;;  %v491_v24 = vld [vmem:[%s7240_s10 + $0x100] sm:$0xff]  ;;  %6885 = vtanh.f32 %v8680_v29 }
 0x258   : > { %v6497_v55 = vadd.f32 %v2152_v30, %v488_v27  ;;  %9866 = vst [vmem:[#allocation41_spill] sm:$0xff] %v8700_v41  ;;  %v494_v30 = vld [vmem:[%s7240_s10 + $0x118] sm:$0xff]  ;;  %s7165_s10 = smov 96  }
 0x259   : > { %v6425_v7 = vpop.f32.mrb[28].mxu0 }
 0x25a   : > { %v8690_v35 = vadd.f32 %v6491_v54, %v6425_v7  ;;  %v3434_v33 = vpop.f32.mrb[29].mxu0 }
 0x25b   : > { %v8696_v53 = vadd.f32 %v6493_v28, %v3434_v33  ;;  %v6426_v13 = vpop.f32.mrb[30].mxu0  ;;  %v6866_v28 = vpop.eup %6865 }
 0x25c   : > { %v6269_v58 = vpop.f32.mrb[32].mxu1  ;;  %v8698_v23 = vadd.f32 %v6495_v60, %v6426_v13  ;;  %v3437_v7 = vpop.f32.mrb[31].mxu0  ;;  %4037 = vrot.lane.b32.xlu0 %v6866_v28, %s7164_s8  ;;  %6887 = vtanh.f32 %v8690_v35 }
 0x25d   : > { %v2165_v54 = vpop.f32.mrb[33].mxu1  ;;  %v8704_v57 = vadd.f32 %v6497_v55, %v3437_v7  ;;  %v6499_v25 = vadd.f32 %v6269_v58, %v493_v9  ;;  %v6868_v60 = vpop.eup %6867  ;;  %6889 = vtanh.f32 %v8696_v53 }
 0x25e   : > { %v6270_v33 = vpop.f32.mrb[34].mxu1  ;;  %v8710_v13 = vpop.permute.xlu0 %4658  ;;  %v6501_v41 = vadd.f32 %v2165_v54, %v491_v24  ;;  %4043 = vrot.lane.b32.xlu1 %v6868_v60, %s7164_s8  ;;  %6891 = vtanh.f32 %v8698_v23 }
 0x25f   : > { %v2168_v27 = vpop.f32.mrb[35].mxu1  ;;  %9867 = vst [vmem:[#allocation42_spill] sm:$0xff] %v8710_v13  ;;  %v6503_v55 = vadd.f32 %v6270_v33, %v494_v30  ;;  %v8717_v62 = vpop.permute.xlu1 %4653  ;;  %6893 = vtanh.f32 %v8704_v57 }
 0x260   : > { %v6505_v17 = vadd.f32 %v2168_v27, %v492_v22  ;;  %v6870_v24 = vpop.eup %6869 }
 0x261   : > { %v6429_v43 = vpop.f32.mrb[32].mxu0 }
 0x262   : > { %v8715_v7 = vadd.f32 %v6499_v25, %v6429_v43  ;;  %v3450_v38 = vpop.f32.mrb[33].mxu0  ;;  %4039 = vrot.lane.b32.xlu1 %v6870_v24, %s7164_s8  ;;  %v8727_v33 = vpop.permute.xlu0 %4668 }
 0x263   : > { %v8719_v58 = vadd.f32 %v6501_v41, %v3450_v38  ;;  %v6430_v9 = vpop.f32.mrb[34].mxu0  ;;  %v6872_v25 = vpop.eup %6871 }
 0x264   : > { %v8722_v13 = vadd.f32 %v6503_v55, %v6430_v9  ;;  %v3453_v54 = vpop.f32.mrb[35].mxu0  ;;  %v8730_v30 = vpop.permute.xlu1 %4663  ;;  %4049 = vrot.lane.b32.xlu0 %v6872_v25, %s7164_s8  ;;  %6895 = vtanh.f32 %v8715_v7 }
 0x265   : > { %v8724_v28 = vadd.f32 %v6505_v17, %v3453_v54  ;;  %v6874_v38 = vpop.eup %6873 }
 0x266   : > { %v8734_v22 = vpop.permute.xlu0 %4678  ;;  %v6876_v17 = vpop.eup %6875 }
 0x267   : > { %4051 = vrot.lane.b32.xlu1 %v6876_v17, %s7164_s8  ;;  %v6878_v27 = vpop.eup %6877 }
 0x268   : > { %4045 = vrot.lane.b32.xlu0 %v6874_v38, %s7164_s8  ;;  %v8738_v41 = vpop.permute.xlu1 %4673  ;;  %v6880_v43 = vpop.eup %6879  ;;  %v3503_v38 = vsub.f32 0.0, %v8524_v46 }
 0x269   : > { %v6882_v9 = vpop.eup %6881 }
 0x26a   : > { %v8742_v60 = vpop.permute.xlu0 %4688  ;;  %v6884_v24 = vpop.eup %6883 }
 0x26b   : > { %9868 = vst [vmem:[#allocation43_spill] sm:$0xff] %v8742_v60  ;;  %4047 = vrot.lane.b32.xlu1 %v6878_v27, %s7164_s8  ;;  %v6886_v17 = vpop.eup %6885  ;;  %v3504_v27 = vsub.f32 0.0, %v8529_v2 }
 0x26c   : > { %v8746_v55 = vpop.permute.xlu1 %4683  ;;  %4057 = vrot.lane.b32.xlu0 %v6880_v43, %s7164_s8 }
 0x26d   : > { %9869 = vst [vmem:[#allocation44_spill] sm:$0xff] %v8746_v55  ;;  %v6888_v55 = vpop.eup %6887  ;;  %v3543_v46 = vmul.f32 1.442695, %v3504_v27  ;;  %v3505_v27 = vsub.f32 0.0, %v8548_v10 }
 0x26e   : > { %v8750_v54 = vpop.permute.xlu0 %4698  ;;  %v6890_v2 = vpop.eup %6889 }
 0x26f   : > { %9870 = vst [vmem:[#allocation45_spill] sm:$0xff] %v8750_v54  ;;  %4059 = vrot.lane.b32.xlu1 %v6884_v24, %s7164_s8  ;;  %v3501_v24 = vsub.f32 0.0, %v8526_v31 }
 0x270   : > { %4053 = vrot.lane.b32.xlu0 %v6882_v9, %s7164_s8  ;;  %v8754_v25 = vpop.permute.xlu1 %4693  ;;  %v3541_v9 = vmul.f32 1.442695, %v3503_v38  ;;  %v3507_v38 = vsub.f32 0.0, %v8544_v48 }
 0x271   : > { %9871 = vst [vmem:[#allocation46_spill] sm:$0xff] %v8754_v25  ;;  %v3502_v25 = vsub.f32 0.0, %v8534_v44  ;;  %v3537_v54 = vmul.f32 1.442695, %v3501_v24  ;;  %v3508_v44 = vsub.f32 0.0, %v8551_v59  ;;  %v3506_v24 = vsub.f32 0.0, %v8556_v20 }
 0x272   : > { %v8760_v43 = vpop.permute.xlu0 %4708  ;;  %6897 = vpow2.f32 %v3541_v9 }
 0x273   : > { %9872 = vst [vmem:[#allocation47_spill] sm:$0xff] %v8760_v43  ;;  %4055 = vrot.lane.b32.xlu1 %v6886_v17, %s7164_s8  ;;  %v6892_v17 = vpop.eup %6891  ;;  %6899 = vtanh.f32 %v8719_v58  ;;  %v3547_v10 = vmul.f32 1.442695, %v3506_v24 }
 0x274   : > { %v8764_v60 = vpop.permute.xlu1 %4703  ;;  %4065 = vrot.lane.b32.xlu0 %v6888_v55, %s7164_s8  ;;  %6901 = vpow2.f32 %v3543_v46  ;;  %v3539_v55 = vmul.f32 1.442695, %v3502_v25  ;;  %v6894_v9 = vpop.eup %6893  ;;  %v3551_v46 = vmul.f32 1.442695, %v3508_v44 }
 0x275   : > { %9873 = vst [vmem:[#allocation48_spill] sm:$0xff] %v8764_v60  ;;  %6903 = vtanh.f32 %v8722_v13  ;;  %v6896_v25 = vpop.eup %6895 }
 0x276   : > { %v8770_v43 = vpop.permute.xlu0 %4718  ;;  %6905 = vpow2.f32 %v3537_v54  ;;  %v3511_v54 = vsub.f32 0.0, %v8571_v12  ;;  %v3509_v12 = vsub.f32 0.0, %v8576_v19 }
 0x277   : > { %9874 = vst [vmem:[#allocation49_spill] sm:$0xff] %v8770_v43  ;;  %4067 = vrot.lane.b32.xlu1 %v6892_v17, %s7164_s8  ;;  %6907 = vpow2.f32 %v3539_v55  ;;  %v3545_v17 = vmul.f32 1.442695, %v3505_v27 }
 0x278   : > { %4061 = vrot.lane.b32.xlu0 %v6890_v2, %s7164_s8  ;;  %v8775_v31 = vpop.permute.xlu1 %4713  ;;  %v3549_v2 = vmul.f32 1.442695, %v3507_v38  ;;  %6909 = vtanh.f32 %v8724_v28  ;;  %v3557_v27 = vmul.f32 1.442695, %v3511_v54  ;;  %v3553_v54 = vmul.f32 1.442695, %v3509_v12 }
 0x279   : > { %9875 = vst [vmem:[#allocation50_spill] sm:$0xff] %v8775_v31 }
 0x27a   : > { %v8782_v48 = vpop.permute.xlu0 %4728  ;;  %6911 = vpow2.f32 %v3549_v2 }
 0x27b   : > { %9876 = vst [vmem:[#allocation51_spill] sm:$0xff] %v8782_v48  ;;  %4063 = vrot.lane.b32.xlu1 %v6894_v9, %s7164_s8  ;;  %6913 = vpow2.f32 %v3551_v46 }
 0x27c   : > { %v8786_v59 = vpop.permute.xlu1 %4723  ;;  %4073 = vrot.lane.b32.xlu0 %v6896_v25, %s7164_s8  ;;  %v6898_v38 = vpop.eup %6897  ;;  %6915 = vpow2.f32 %v3545_v17 }
 0x27d   : > { %9877 = vst [vmem:[#allocation52_spill] sm:$0xff] %v8786_v59  ;;  %v6900_v20 = vpop.eup %6899  ;;  %6917 = vpow2.f32 %v3547_v10  ;;  %v3611_v9 = vadd.f32 1.0, %v6898_v38  ;;  %v3512_v38 = vsub.f32 0.0, %v8580_v47 }
 0x27e   : > { %v6902_v55 = vpop.eup %6901  ;;  %v8790_v48 = vpop.permute.xlu0 %4738  ;;  %6919 = vpow2.f32 %v3557_v27 }
 0x27f   : > { %9878 = vst [vmem:[#allocation53_spill] sm:$0xff] %v8790_v48  ;;  %v6904_v44 = vpop.eup %6903  ;;  %v3612_v25 = vadd.f32 1.0, %v6902_v55  ;;  %6921 = vrcp.f32 %v3611_v9  ;;  %v3559_v27 = vmul.f32 1.442695, %v3512_v38  ;;  %v3510_v9 = vsub.f32 0.0, %v8583_v34 }
 0x280   : > { %4069 = vrot.lane.b32.xlu0 %v6900_v20, %s7164_s8  ;;  %v8793_v59 = vpop.permute.xlu1 %4733  ;;  %4075 = vrot.lane.b32.xlu1 %v6904_v44, %s7164_s8  ;;  %v6906_v2 = vpop.eup %6905 }
 0x281   : > { %9879 = vst [vmem:[#allocation54_spill] sm:$0xff] %v8793_v59  ;;  %v6908_v24 = vpop.eup %6907  ;;  %v3609_v17 = vadd.f32 1.0, %v6906_v2  ;;  %6923 = vrcp.f32 %v3612_v25 }
 0x282   : > { %v6910_v46 = vpop.eup %6909  ;;  %v8797_v48 = vpop.permute.xlu0 %4748  ;;  %v3610_v20 = vadd.f32 1.0, %v6908_v24 }
 0x283   : > { %9880 = vst [vmem:[#allocation55_spill] sm:$0xff] %v8797_v48  ;;  %6925 = vrcp.f32 %v3609_v17  ;;  %v3555_v17 = vmul.f32 1.442695, %v3510_v9 }
 0x284   : > { %4071 = vrot.lane.b32.xlu1 %v6910_v46, %s7164_s8  ;;  %v6912_v10 = vpop.eup %6911  ;;  %v8801_v44 = vpop.permute.xlu1 %4743  ;;  %6927 = vpow2.f32 %v3553_v54  ;;  %v3515_v46 = vsub.f32 0.0, %v8598_v51 }
 0x285   : > { %9881 = vst [vmem:[#allocation56_spill] sm:$0xff] %v8801_v44  ;;  %v6914_v59 = vpop.eup %6913  ;;  %v3615_v55 = vadd.f32 1.0, %v6912_v10  ;;  %6929 = vrcp.f32 %v3610_v20  ;;  %v3513_v20 = vsub.f32 0.0, %v8602_v4 }
 0x286   : > { %v6916_v19 = vpop.eup %6915  ;;  %v3616_v2 = vadd.f32 1.0, %v6914_v59  ;;  %v8805_v12 = vpop.permute.xlu0 %4758  ;;  %v3565_v54 = vmul.f32 1.442695, %v3515_v46 }
 0x287   : > { %v6918_v60 = vpop.eup %6917  ;;  %9882 = vst [vmem:[#allocation57_spill] sm:$0xff] %v8805_v12  ;;  %v3613_v47 = vadd.f32 1.0, %v6916_v19  ;;  %6931 = vrcp.f32 %v3615_v55  ;;  %v3561_v4 = vmul.f32 1.442695, %v3513_v20  ;;  %v3517_v12 = vsub.f32 0.0, %v8627_v56 }
 0x288   : > { %v3614_v24 = vadd.f32 1.0, %v6918_v60  ;;  %v8807_v25 = vpop.permute.xlu1 %4753  ;;  %v6920_v44 = vpop.eup %6919  ;;  %6933 = vpow2.f32 %v3559_v27 }
 0x289   : > { %9883 = vst [vmem:[#allocation58_spill] sm:$0xff] %v8807_v25  ;;  %v8809_v10 = vpop.eup %6921  ;;  %6935 = vrcp.f32 %v3616_v2  ;;  %v3619_v51 = vadd.f32 1.0, %v6920_v44  ;;  %v3516_v2 = vsub.f32 0.0, %v8605_v15  ;;  %v3514_v15 = vsub.f32 0.0, %v8610_v32 }
 0x28a   : > { %6937 = vrcp.f32 %v3613_v47  ;;  %v3569_v56 = vmul.f32 1.442695, %v3517_v12 }
 0x28b   : > { %v8812_v59 = vpop.eup %6923  ;;  %6939 = vrcp.f32 %v3614_v24 }
 0x28c   : > { %6941 = vpow2.f32 %v3555_v17 }
 0x28d   : > { %v8817_v55 = vpop.eup %6925  ;;  %6943 = vpow2.f32 %v3565_v54 }
 0x28e   : > { %v6928_v9 = vpop.eup %6927  ;;  %6945 = vrcp.f32 %v3619_v51 }
 0x28f   : > { %v8822_v44 = vpop.eup %6929  ;;  %v3617_v54 = vadd.f32 1.0, %v6928_v9  ;;  %6947 = vpow2.f32 %v3561_v4 }
 0x291   : > { %v8826_v17 = vpop.eup %6931  ;;  %6949 = vrcp.f32 %v3617_v54 }
 0x2a1   : > { %v4010_v38 = vpop.permute.xlu0 %4009 }
 0x2a2   : > { %v4115_v34 = vmul.f32 %v8809_v10, %v4010_v38 }
 0x2a3   : > { %v4012_v60 = vpop.permute.xlu1 %4011 }
 0x2a4   : > { %v4116_v19 = vmul.f32 %v8812_v59, %v4012_v60  ;;  %4189 = vrot.lane.b32.xlu0 %v4115_v34, %s7162_s21  ;;  %v6934_v34 = vpop.eup %6933  ;;  %v3567_v60 = vmul.f32 1.442695, %v3516_v2 }
 0x2a5   : > { %v4006_v27 = vpop.permute.xlu0 %4005  ;;  %v3620_v25 = vadd.f32 1.0, %v6934_v34 }
 0x2a6   : > { %v4113_v46 = vmul.f32 %v8817_v55, %v4006_v27  ;;  %4191 = vrot.lane.b32.xlu1 %v4116_v19, %s7162_s21  ;;  %v8831_v19 = vpop.eup %6935  ;;  %6951 = vpow2.f32 %v3567_v60 }
 0x2a7   : > { %v4008_v47 = vpop.permute.xlu1 %4007  ;;  %v8833_v20 = vpop.eup %6937 }
 0x2a8   : > { %v4114_v24 = vmul.f32 %v8822_v44, %v4008_v47  ;;  %4185 = vrot.lane.b32.xlu0 %v4113_v46, %s7162_s21  ;;  %v3519_v46 = vsub.f32 0.0, %v8622_v42  ;;  %v8838_v9 = vpop.eup %6939 }
 0x2a9   : > { %v4018_v38 = vpop.permute.xlu0 %4017  ;;  %v6942_v2 = vpop.eup %6941 }
 0x2aa   : > { %v4119_v27 = vmul.f32 %v8826_v17, %v4018_v38  ;;  %4187 = vrot.lane.b32.xlu1 %v4114_v24, %s7162_s21  ;;  %v3563_v38 = vmul.f32 1.442695, %v3514_v15  ;;  %v6944_v4 = vpop.eup %6943  ;;  %v3573_v48 = vmul.f32 1.442695, %v3519_v46  ;;  %v3618_v60 = vadd.f32 1.0, %v6942_v2 }
 0x2ab   : > { %v4020_v51 = vpop.permute.xlu1 %4019  ;;  %v8846_v54 = vpop.eup %6945  ;;  %v3623_v31 = vadd.f32 1.0, %v6944_v4  ;;  %v3518_v46 = vsub.f32 0.0, %v8640_v37  ;;  %v3521_v37 = vsub.f32 0.0, %v8650_v1 }
 0x2ac   : > { %v4120_v47 = vmul.f32 %v8831_v19, %v4020_v51  ;;  %4197 = vrot.lane.b32.xlu0 %v4119_v27, %s7162_s21  ;;  %v3520_v51 = vsub.f32 0.0, %v8630_v63  ;;  %6953 = vpow2.f32 %v3563_v38  ;;  %v6948_v63 = vpop.eup %6947 }
 0x2ad   : > { %v4014_v32 = vpop.permute.xlu0 %4013  ;;  %6955 = vrcp.f32 %v3620_v25  ;;  %v3621_v38 = vadd.f32 1.0, %v6948_v63  ;;  %v3571_v25 = vmul.f32 1.442695, %v3518_v46  ;;  %v3577_v63 = vmul.f32 1.442695, %v3521_v37 }
 0x2ae   : > { %v4117_v24 = vmul.f32 %v8833_v20, %v4014_v32  ;;  %4199 = vrot.lane.b32.xlu1 %v4120_v47, %s7162_s21  ;;  %6957 = vpow2.f32 %v3573_v48  ;;  %v3575_v34 = vmul.f32 1.442695, %v3520_v51  ;;  %v8852_v32 = vpop.eup %6949 }
 0x2af   : > { %v4016_v42 = vpop.permute.xlu1 %4015  ;;  %6959 = vrcp.f32 %v3618_v60  ;;  %v3524_v60 = vsub.f32 0.0, %v8654_v39 }
 0x2b0   : > { %v4118_v27 = vmul.f32 %v8838_v9, %v4016_v42  ;;  %4193 = vrot.lane.b32.xlu0 %v4117_v24, %s7162_s21  ;;  %6961 = vrcp.f32 %v3623_v31  ;;  %v6952_v2 = vpop.eup %6951  ;;  %v3523_v24 = vsub.f32 0.0, %v8645_v11 }
 0x2b1   : > { %v4026_v15 = vpop.permute.xlu0 %4025  ;;  %6963 = vpow2.f32 %v3569_v56  ;;  %v3624_v12 = vadd.f32 1.0, %v6952_v2 }
 0x2b2   : > { %v4123_v47 = vmul.f32 %v8846_v54, %v4026_v15  ;;  %4195 = vrot.lane.b32.xlu1 %v4118_v27, %s7162_s21  ;;  %6965 = vpow2.f32 %v3575_v34  ;;  %v3581_v51 = vmul.f32 1.442695, %v3523_v24  ;;  %v3522_v24 = vsub.f32 0.0, %v8665_v21 }
 0x2b3   : > { %6967 = vrcp.f32 %v3621_v38  ;;  %v3583_v38 = vmul.f32 1.442695, %v3524_v60 }
 0x2b4   : > { %4205 = vrot.lane.b32.xlu0 %v4123_v47, %s7162_s21  ;;  %6969 = vpow2.f32 %v3571_v25  ;;  %v3579_v21 = vmul.f32 1.442695, %v3522_v24 }
 0x2b5   : > { %v4022_v4 = vpop.permute.xlu0 %4021  ;;  %v4028_v15 = vpop.permute.xlu1 %4027  ;;  %6971 = vrcp.f32 %v3624_v12 }
 0x2b6   : > { %v4121_v48 = vmul.f32 %v8852_v32, %v4022_v4  ;;  %v6954_v42 = vpop.eup %6953  ;;  %6973 = vpow2.f32 %v3581_v51 }
 0x2b7   : > { %v8858_v31 = vpop.eup %6955  ;;  %v3622_v47 = vadd.f32 1.0, %v6954_v42  ;;  %v3527_v42 = vsub.f32 0.0, %v8670_v40 }
 0x2b8   : > { %4201 = vrot.lane.b32.xlu0 %v4121_v48, %s7162_s21  ;;  %v6958_v27 = vpop.eup %6957  ;;  %v4124_v56 = vmul.f32 %v8858_v31, %v4028_v15 }
 0x2b9   : > { %v8861_v11 = vpop.eup %6959  ;;  %v3627_v2 = vadd.f32 1.0, %v6958_v27  ;;  %v4024_v39 = vpop.permute.xlu1 %4023  ;;  %6975 = vrcp.f32 %v3622_v47  ;;  %v3589_v15 = vmul.f32 1.442695, %v3527_v42  ;;  %v3525_v47 = vsub.f32 0.0, %v8672_v18 }
 0x2ba   : > { %v8864_v34 = vpop.eup %6961  ;;  %4207 = vrot.lane.b32.xlu1 %v4124_v56, %s7162_s21  ;;  %v4034_v4 = vpop.permute.xlu0 %4033  ;;  %v4122_v25 = vmul.f32 %v8861_v11, %v4024_v39  ;;  %6977 = vpow2.f32 %v3577_v63 }
 0x2bb   : > { %v6964_v46 = vpop.eup %6963  ;;  %v4127_v48 = vmul.f32 %v8864_v34, %v4034_v4  ;;  %6979 = vrcp.f32 %v3627_v2  ;;  %v3585_v24 = vmul.f32 1.442695, %v3525_v47 }
 0x2bc   : > { %v6966_v1 = vpop.eup %6965  ;;  %v3625_v12 = vadd.f32 1.0, %v6964_v46  ;;  %6981 = vpow2.f32 %v3583_v38 }
 0x2bd   : > { %v3628_v51 = vadd.f32 1.0, %v6966_v1  ;;  %4213 = vrot.lane.b32.xlu0 %v4127_v48, %s7162_s21  ;;  %v8873_v37 = vpop.eup %6967  ;;  %v3528_v1 = vsub.f32 0.0, %v8674_v5 }
 0x2be   : > { %4203 = vrot.lane.b32.xlu1 %v4122_v25, %s7162_s21  ;;  %v6970_v27 = vpop.eup %6969  ;;  %6983 = vrcp.f32 %v3625_v12  ;;  %v3526_v12 = vsub.f32 0.0, %v8680_v29 }
 0x2bf   : > { %v8877_v63 = vpop.eup %6971  ;;  %6985 = vrcp.f32 %v3628_v51  ;;  %v3626_v2 = vadd.f32 1.0, %v6970_v27  ;;  %v3591_v48 = vmul.f32 1.442695, %v3528_v1  ;;  %v3531_v27 = vsub.f32 0.0, %v8690_v35 }
 0x2c0   : > { %v4030_v60 = vpop.permute.xlu0 %4029  ;;  %v6974_v46 = vpop.eup %6973  ;;  %6987 = vpow2.f32 %v3579_v21  ;;  %v3529_v35 = vsub.f32 0.0, %v8696_v53 }
 0x2c1   : > { %v4125_v56 = vmul.f32 %v8873_v37, %v4030_v60  ;;  %6989 = vpow2.f32 %v3589_v15  ;;  %v3631_v39 = vadd.f32 1.0, %v6974_v46  ;;  %v3597_v1 = vmul.f32 1.442695, %v3531_v27 }
 0x2c2   : > { %6991 = vrcp.f32 %v3626_v2  ;;  %v3593_v53 = vmul.f32 1.442695, %v3529_v35 }
 0x2c3   : > { %4209 = vrot.lane.b32.xlu0 %v4125_v56, %s7162_s21  ;;  %v8883_v18 = vpop.eup %6975  ;;  %6993 = vpow2.f32 %v3585_v24  ;;  %v3587_v56 = vmul.f32 1.442695, %v3526_v12 }
 0x2c4   : > { %v6978_v25 = vpop.eup %6977  ;;  %6995 = vrcp.f32 %v3631_v39 }
 0x2c5   : > { %v4036_v40 = vpop.permute.xlu1 %4035  ;;  %v8887_v5 = vpop.eup %6979  ;;  %v3629_v15 = vadd.f32 1.0, %v6978_v25  ;;  %6997 = vpow2.f32 %v3591_v48  ;;  %v3532_v25 = vsub.f32 0.0, %v8698_v23 }
 0x2c6   : > { %v4128_v38 = vmul.f32 %v8877_v63, %v4036_v40  ;;  %v6982_v21 = vpop.eup %6981 }
 0x2c7   : > { %v3632_v40 = vadd.f32 1.0, %v6982_v21  ;;  %6999 = vrcp.f32 %v3629_v15  ;;  %v3530_v15 = vsub.f32 0.0, %v8704_v57 }
 0x2c8   : > { %4215 = vrot.lane.b32.xlu1 %v4128_v38, %s7162_s21  ;;  %v8892_v47 = vpop.eup %6983  ;;  %7001 = vpow2.f32 %v3587_v56 }
 0x2c9   : > { %v4032_v4 = vpop.permute.xlu1 %4031  ;;  %v4042_v51 = vpop.permute.xlu0 %4041  ;;  %7003 = vrcp.f32 %v3632_v40  ;;  %v3595_v35 = vmul.f32 1.442695, %v3530_v15 }
 0x2ca   : > { %v4126_v42 = vmul.f32 %v8883_v18, %v4032_v4  ;;  %v4131_v60 = vmul.f32 %v8887_v5, %v4042_v51  ;;  %v8895_v29 = vpop.eup %6985  ;;  %7005 = vpow2.f32 %v3597_v1 }
 0x2cb   : > { %v6988_v2 = vpop.eup %6987 }
 0x2cc   : > { %4211 = vrot.lane.b32.xlu1 %v4126_v42, %s7162_s21  ;;  %4221 = vrot.lane.b32.xlu0 %v4131_v60, %s7162_s21  ;;  %v6990_v4 = vpop.eup %6989  ;;  %v3630_v48 = vadd.f32 1.0, %v6988_v2  ;;  %v3599_v60 = vmul.f32 1.442695, %v3532_v25  ;;  %v3533_v25 = vsub.f32 0.0, %v8719_v58 }
 0x2cd   : > { %v8903_v12 = vpop.eup %6991  ;;  %v3635_v51 = vadd.f32 1.0, %v6990_v4 }
 0x2ce   : > { %v4038_v46 = vpop.permute.xlu0 %4037  ;;  %v6994_v27 = vpop.eup %6993  ;;  %7007 = vrcp.f32 %v3630_v48 }
 0x2cf   : > { %v4129_v24 = vmul.f32 %v8892_v47, %v4038_v46  ;;  %v8907_v56 = vpop.eup %6995  ;;  %7009 = vpow2.f32 %v3593_v53  ;;  %v3535_v46 = vsub.f32 0.0, %v8715_v7  ;;  %v3633_v1 = vadd.f32 1.0, %v6994_v27 }
 0x2d0   : > { %v4044_v38 = vpop.permute.xlu1 %4043  ;;  %v6998_v40 = vpop.eup %6997  ;;  %7011 = vrcp.f32 %v3635_v51  ;;  %v3536_v51 = vsub.f32 0.0, %v8722_v13 }
 0x2d1   : > { %v4132_v39 = vmul.f32 %v8895_v29, %v4044_v38  ;;  %4217 = vrot.lane.b32.xlu0 %v4129_v24, %s7162_s21  ;;  %7013 = vpow2.f32 %v3599_v60  ;;  %v8913_v38 = vpop.eup %6999  ;;  %v3636_v57 = vadd.f32 1.0, %v6998_v40  ;;  %v3605_v4 = vmul.f32 1.442695, %v3535_v46 }
 0x2d2   : > { %7015 = vrcp.f32 %v3633_v1  ;;  %v3601_v60 = vmul.f32 1.442695, %v3533_v25  ;;  %v3607_v46 = vmul.f32 1.442695, %v3536_v51 }
 0x2d3   : > { %4223 = vrot.lane.b32.xlu1 %v4132_v39, %s7162_s21  ;;  %v7002_v39 = vpop.eup %7001  ;;  %7017 = vpow2.f32 %v3595_v35 }
 0x2d4   : > { %v4040_v42 = vpop.permute.xlu1 %4039  ;;  %v8917_v53 = vpop.eup %7003  ;;  %7019 = vrcp.f32 %v3636_v57  ;;  %v3634_v27 = vadd.f32 1.0, %v7002_v39 }
 0x2d5   : > { %v4130_v21 = vmul.f32 %v8903_v12, %v4040_v42  ;;  %v7006_v42 = vpop.eup %7005  ;;  %7021 = vpow2.f32 %v3605_v4 }
 0x2d6   : > { %v4050_v23 = vpop.permute.xlu0 %4049  ;;  %v3639_v15 = vadd.f32 1.0, %v7006_v42  ;;  %7023 = vrcp.f32 %v3634_v27 }
 0x2d7   : > { %4219 = vrot.lane.b32.xlu1 %v4130_v21, %s7162_s21  ;;  %v4135_v2 = vmul.f32 %v8907_v56, %v4050_v23  ;;  %7025 = vpow2.f32 %v3601_v60 }
 0x2d8   : > { %v8923_v58 = vpop.eup %7007  ;;  %7027 = vrcp.f32 %v3639_v15 }
 0x2d9   : > { %4229 = vrot.lane.b32.xlu0 %v4135_v2, %s7162_s21  ;;  %v4052_v7 = vpop.permute.xlu1 %4051  ;;  %v7010_v40 = vpop.eup %7009  ;;  %v3534_v2 = vsub.f32 0.0, %v8724_v28  ;;  %7029 = vpow2.f32 %v3607_v46 }
 0x2da   : > { %v4046_v24 = vpop.permute.xlu0 %4045  ;;  %v4136_v21 = vmul.f32 %v8917_v53, %v4052_v7  ;;  %v8927_v1 = vpop.eup %7011  ;;  %v3637_v39 = vadd.f32 1.0, %v7010_v40 }
 0x2db   : > { %v4133_v48 = vmul.f32 %v8913_v38, %v4046_v24  ;;  %v7014_v57 = vpop.eup %7013  ;;  %v3603_v4 = vmul.f32 1.442695, %v3534_v2 }
 0x2dc   : > { %4231 = vrot.lane.b32.xlu1 %v4136_v21, %s7162_s21  ;;  %v8932_v25 = vpop.eup %7015  ;;  %v3640_v28 = vadd.f32 1.0, %v7014_v57  ;;  %7031 = vrcp.f32 %v3637_v39 }
 0x2dd   : > { %4225 = vrot.lane.b32.xlu0 %v4133_v48, %s7162_s21  ;;  %v4048_v23 = vpop.permute.xlu1 %4047  ;;  %v7018_v7 = vpop.eup %7017  ;;  %7033 = vpow2.f32 %v3603_v4 }
 0x2de   : > { %v4134_v13 = vmul.f32 %v8923_v58, %v4048_v23  ;;  %v4058_v35 = vpop.permute.xlu0 %4057  ;;  %v8935_v51 = vpop.eup %7019  ;;  %7035 = vrcp.f32 %v3640_v28  ;;  %v3638_v15 = vadd.f32 1.0, %v7018_v7 }
 0x2df   : > { %v4139_v24 = vmul.f32 %v8927_v1, %v4058_v35  ;;  %v7022_v27 = vpop.eup %7021 }
 0x2e0   : > { %4227 = vrot.lane.b32.xlu1 %v4134_v13, %s7162_s21  ;;  %v8940_v23 = vpop.eup %7023  ;;  %v3643_v40 = vadd.f32 1.0, %v7022_v27  ;;  %7037 = vrcp.f32 %v3638_v15 }
 0x2e1   : > { %4237 = vrot.lane.b32.xlu0 %v4139_v24, %s7162_s21  ;;  %v4060_v21 = vpop.permute.xlu1 %4059  ;;  %v7026_v2 = vpop.eup %7025 }
 0x2e2   : > { %v4054_v48 = vpop.permute.xlu0 %4053  ;;  %v4140_v60 = vmul.f32 %v8935_v51, %v4060_v21  ;;  %v8943_v35 = vpop.eup %7027  ;;  %7039 = vrcp.f32 %v3643_v40  ;;  %v3641_v4 = vadd.f32 1.0, %v7026_v2 }
 0x2e3   : > { %v4137_v42 = vmul.f32 %v8932_v25, %v4054_v48  ;;  %v7030_v24 = vpop.eup %7029 }
 0x2e4   : > { %4239 = vrot.lane.b32.xlu1 %v4140_v60, %s7162_s21  ;;  %v3644_v48 = vadd.f32 1.0, %v7030_v24  ;;  %7041 = vrcp.f32 %v3641_v4 }
 0x2e5   : > { %4233 = vrot.lane.b32.xlu0 %v4137_v42, %s7162_s21  ;;  %v4056_v46 = vpop.permute.xlu1 %4055 }
 0x2e6   : > { %v4138_v13 = vmul.f32 %v8940_v23, %v4056_v46  ;;  %v4066_v57 = vpop.permute.xlu0 %4065  ;;  %v8948_v28 = vpop.eup %7031  ;;  %7043 = vrcp.f32 %v3644_v48 }
 0x2e7   : > { %v4143_v39 = vmul.f32 %v8943_v35, %v4066_v57  ;;  %v7034_v42 = vpop.eup %7033 }
 0x2e8   : > { %4235 = vrot.lane.b32.xlu1 %v4138_v13, %s7162_s21  ;;  %v8951_v27 = vpop.eup %7035  ;;  %v3642_v40 = vadd.f32 1.0, %v7034_v42 }
 0x2e9   : > { %4245 = vrot.lane.b32.xlu0 %v4143_v39, %s7162_s21  ;;  %v4068_v60 = vpop.permute.xlu1 %4067 }
 0x2ea   : > { %v4062_v7 = vpop.permute.xlu0 %4061  ;;  %v4144_v15 = vmul.f32 %v8951_v27, %v4068_v60  ;;  %v8956_v46 = vpop.eup %7037  ;;  %7045 = vrcp.f32 %v3642_v40 }
 0x2eb   : > { %v4141_v21 = vmul.f32 %v8948_v28, %v4062_v7 }
 0x2ec   : > { %4247 = vrot.lane.b32.xlu1 %v4144_v15, %s7162_s21  ;;  %v8959_v57 = vpop.eup %7039 }
 0x2ed   : > { %4241 = vrot.lane.b32.xlu0 %v4141_v21, %s7162_s21  ;;  %v4064_v2 = vpop.permute.xlu1 %4063 }
 0x2ee   : > { %v4142_v13 = vmul.f32 %v8956_v46, %v4064_v2  ;;  %v4074_v24 = vpop.permute.xlu0 %4073  ;;  %v8964_v4 = vpop.eup %7041 }
 0x2ef   : > { %v4147_v39 = vmul.f32 %v8959_v57, %v4074_v24 }
 0x2f0   : > { %4243 = vrot.lane.b32.xlu1 %v4142_v13, %s7162_s21  ;;  %v8967_v42 = vpop.eup %7043  ;;  %v3935_v13 = vmul.f32 %v8809_v10, %v8438_v6  ;;  %v3934_v6 = vmul.f32 %v8822_v44, %v8440_v8  ;;  %v3937_v8 = vmul.f32 %v8833_v20, %v8444_v52 }
 0x2f1   : > { %4253 = vrot.lane.b32.xlu0 %v4147_v39, %s7162_s21 }
 0x2f2   : > { %v4070_v48 = vpop.permute.xlu0 %4069  ;;  %v4076_v21 = vpop.permute.xlu1 %4075 }
 0x2f3   : > { %v4145_v7 = vmul.f32 %v8964_v4, %v4070_v48  ;;  %v4148_v60 = vmul.f32 %v8967_v42, %v4076_v21  ;;  %v3936_v48 = vmul.f32 %v8812_v59, %v8442_v49  ;;  %v3939_v49 = vmul.f32 %v8826_v17, %v8448_v14 }
 0x2f4   : > { %v8972_v15 = vpop.eup %7045 }
 0x2f5   : > { %4249 = vrot.lane.b32.xlu0 %v4145_v7, %s7162_s21  ;;  %4255 = vrot.lane.b32.xlu1 %v4148_v60, %s7162_s21  ;;  %v3933_v7 = vmul.f32 %v8817_v55, %v8436_v50  ;;  %v3940_v50 = vmul.f32 %v8831_v19, %v8450_v3  ;;  %v3938_v3 = vmul.f32 %v8838_v9, %v8446_v26 }
 0x2f6   : > { %v4072_v40 = vpop.permute.xlu1 %4071 }
 0x2f7   : > { %v4146_v2 = vmul.f32 %v8972_v15, %v4072_v40 }
 0x2f9   : > { %4251 = vrot.lane.b32.xlu1 %v4146_v2, %s7162_s21 }
 0x316   : > { %v4190_v24 = vpop.permute.xlu0 %4189 }
 0x317   : > { %v4295_v39 = vadd.f32 %v4190_v24, %v3935_v13 }
 0x318   : > { %v4192_v21 = vpop.permute.xlu1 %4191 }
 0x319   : > { %v4296_v43 = vadd.f32 %v4192_v21, %v3936_v48  ;;  %4837 = vrot.lane.b32.xlu1 %v4295_v39, %s7165_s10  ;;  %7047 = vtanh.f32 %v4295_v39 }
 0x31a   : > { %v4186_v60 = vpop.permute.xlu0 %4185 }
 0x31b   : > { %v4293_v40 = vadd.f32 %v4186_v60, %v3933_v7  ;;  %4839 = vrot.lane.b32.xlu0 %v4296_v43, %s7165_s10  ;;  %7049 = vtanh.f32 %v4296_v43 }
 0x31c   : > { %v4188_v2 = vpop.permute.xlu1 %4187 }
 0x31d   : > { %v4294_v13 = vadd.f32 %v4188_v2, %v3934_v6  ;;  %4833 = vrot.lane.b32.xlu1 %v4293_v40, %s7165_s10 }
 0x31e   : > { %v4198_v24 = vpop.permute.xlu0 %4197 }
 0x31f   : > { %v4299_v48 = vadd.f32 %v4198_v24, %v3939_v49  ;;  %4835 = vrot.lane.b32.xlu0 %v4294_v13, %s7165_s10  ;;  %7051 = vtanh.f32 %v4294_v13 }
 0x320   : > { %v4200_v21 = vpop.permute.xlu1 %4199  ;;  %7053 = vtanh.f32 %v4293_v40  ;;  %v3943_v40 = vmul.f32 %v8846_v54, %v8456_v61 }
 0x321   : > { %v4300_v7 = vadd.f32 %v4200_v21, %v3940_v50  ;;  %4845 = vrot.lane.b32.xlu1 %v4299_v48, %s7165_s10  ;;  %v3941_v50 = vmul.f32 %v8852_v32, %v8452_v45  ;;  %v3944_v21 = vmul.f32 %v8858_v31, %v8458_v36  ;;  %v3942_v45 = vmul.f32 %v8861_v11, %v8454_v0 }
 0x322   : > { %v4194_v39 = vpop.permute.xlu0 %4193 }
 0x323   : > { %v4297_v60 = vadd.f32 %v4194_v39, %v3937_v8  ;;  %4847 = vrot.lane.b32.xlu0 %v4300_v7, %s7165_s10  ;;  %v7048_v14 = vpop.eup %7047  ;;  %7055 = vtanh.f32 %v4300_v7 }
 0x324   : > { %v4196_v43 = vpop.permute.xlu1 %4195  ;;  %7057 = vtanh.f32 %v4299_v48 }
 0x325   : > { %4841 = vrot.lane.b32.xlu1 %v4297_v60, %s7165_s10  ;;  %v7050_v6 = vpop.eup %7049  ;;  %v4298_v2 = vadd.f32 %v4196_v43, %v3938_v3 }
 0x326   : > { %v4206_v52 = vpop.permute.xlu0 %4205 }
 0x327   : > { %4405 = vrot.lane.b32.xlu0 %v7048_v14, %s7164_s8  ;;  %v4303_v24 = vadd.f32 %v4206_v52, %v3943_v40  ;;  %7059 = vtanh.f32 %v4298_v2  ;;  %v9884_v40 = vld [vmem:[#allocation29_spill] sm:$0xff] }
 0x328   : > { %7061 = vtanh.f32 %v4297_v60  ;;  %v3945_v0 = vmul.f32 %v8873_v37, %v9884_v40  ;;  %v9889_v40 = vld [vmem:[#allocation10_spill] sm:$0xff] }
 0x329   : > { %4407 = vrot.lane.b32.xlu1 %v7050_v6, %s7164_s8  ;;  %v7052_v13 = vpop.eup %7051  ;;  %v3947_v6 = vmul.f32 %v8864_v34, %v8464_v16 }
 0x32a   : > { %v7054_v49 = vpop.eup %7053  ;;  %v4202_v26 = vpop.permute.xlu0 %4201 }
 0x32b   : > { %4843 = vrot.lane.b32.xlu0 %v4298_v2, %s7165_s10  ;;  %v4301_v61 = vadd.f32 %v4202_v26, %v3941_v50 }
 0x32c   : > { %v4208_v8 = vpop.permute.xlu1 %4207 }
 0x32d   : > { %4403 = vrot.lane.b32.xlu1 %v7052_v13, %s7164_s8  ;;  %v4304_v39 = vadd.f32 %v4208_v8, %v3944_v21  ;;  %v7056_v48 = vpop.eup %7055 }
 0x32e   : > { %v7058_v7 = vpop.eup %7057 }
 0x32f   : > { %4401 = vrot.lane.b32.xlu0 %v7054_v49, %s7164_s8  ;;  %v4214_v43 = vpop.permute.xlu0 %4213  ;;  %7063 = vtanh.f32 %v4304_v39  ;;  %v9885_v49 = vld [vmem:[#allocation6_spill] sm:$0xff] }
 0x330   : > { %v4204_v14 = vpop.permute.xlu1 %4203  ;;  %7065 = vtanh.f32 %v4303_v24  ;;  %v4307_v60 = vadd.f32 %v4214_v43, %v3947_v6  ;;  %v3948_v26 = vmul.f32 %v8877_v63, %v9885_v49  ;;  %v9887_v43 = vld [vmem:[#allocation9_spill] sm:$0xff] }
 0x331   : > { %4853 = vrot.lane.b32.xlu1 %v4303_v24, %s7165_s10  ;;  %v7060_v36 = vpop.eup %7059  ;;  %v4302_v3 = vadd.f32 %v4204_v14, %v3942_v45 }
 0x332   : > { %v7062_v52 = vpop.eup %7061 }
 0x333   : > { %4855 = vrot.lane.b32.xlu0 %v4304_v39, %s7165_s10  ;;  %7067 = vtanh.f32 %v4302_v3  ;;  %v9886_v39 = vld [vmem:[#allocation5_spill] sm:$0xff] }
 0x334   : > { %7069 = vtanh.f32 %v4301_v61 }
 0x335   : > { %4849 = vrot.lane.b32.xlu1 %v4301_v61, %s7165_s10  ;;  %v4210_v2 = vpop.permute.xlu0 %4209 }
 0x336   : > { %v4305_v16 = vadd.f32 %v4210_v2, %v3945_v0  ;;  %v3952_v0 = vmul.f32 %v8895_v29, %v9889_v40 }
 0x337   : > { %4413 = vrot.lane.b32.xlu0 %v7058_v7, %s7164_s8 }
 0x339   : > { %4415 = vrot.lane.b32.xlu1 %v7056_v48, %s7164_s8  ;;  %v7064_v24 = vpop.eup %7063  ;;  %v3946_v48 = vmul.f32 %v8883_v18, %v9886_v39 }
 0x33a   : > { %v4216_v13 = vpop.permute.xlu1 %4215  ;;  %v7066_v21 = vpop.eup %7065 }
 0x33b   : > { %4851 = vrot.lane.b32.xlu0 %v4302_v3, %s7165_s10  ;;  %v4308_v50 = vadd.f32 %v4216_v13, %v3948_v26 }
 0x33d   : > { %4411 = vrot.lane.b32.xlu1 %v7060_v36, %s7164_s8  ;;  %v7068_v14 = vpop.eup %7067  ;;  %v3951_v36 = vmul.f32 %v8887_v5, %v9887_v43  ;;  %7071 = vtanh.f32 %v4308_v50 }
 0x33e   : > { %v4212_v8 = vpop.permute.xlu1 %4211  ;;  %v4222_v7 = vpop.permute.xlu0 %4221  ;;  %7073 = vtanh.f32 %v4307_v60 }
 0x33f   : > { %4409 = vrot.lane.b32.xlu0 %v7062_v52, %s7164_s8  ;;  %v4306_v45 = vadd.f32 %v4212_v8, %v3946_v48  ;;  %v4311_v61 = vadd.f32 %v4222_v7, %v3951_v36  ;;  %v7070_v6 = vpop.eup %7069  ;;  %v9888_v52 = vld [vmem:[#allocation7_spill] sm:$0xff] }
 0x340   : > { %v3949_v13 = vmul.f32 %v8892_v47, %v9888_v52  ;;  %v9893_v52 = vld [vmem:[#allocation27_spill] sm:$0xff] }
 0x341   : > { %4861 = vrot.lane.b32.xlu1 %v4307_v60, %s7165_s10  ;;  %7075 = vtanh.f32 %v4306_v45 }
 0x342   : > { %7077 = vtanh.f32 %v4305_v16 }
 0x343   : > { %4863 = vrot.lane.b32.xlu0 %v4308_v50, %s7165_s10  ;;  %v4218_v3 = vpop.permute.xlu0 %4217 }
 0x344   : > { %v4309_v49 = vadd.f32 %v4218_v3, %v3949_v13  ;;  %v3956_v13 = vmul.f32 %v8917_v53, %v9893_v52 }
 0x345   : > { %4857 = vrot.lane.b32.xlu1 %v4305_v16, %s7165_s10  ;;  %v4224_v2 = vpop.permute.xlu1 %4223 }
 0x346   : > { %v4312_v26 = vadd.f32 %v4224_v2, %v3952_v0 }
 0x347   : > { %4421 = vrot.lane.b32.xlu0 %v7066_v21, %s7164_s8  ;;  %v7072_v50 = vpop.eup %7071  ;;  %v9890_v21 = vld [vmem:[#allocation8_spill] sm:$0xff] }
 0x348   : > { %v3950_v8 = vmul.f32 %v8903_v12, %v9890_v21  ;;  %7079 = vtanh.f32 %v4312_v26 }
 0x349   : > { %4423 = vrot.lane.b32.xlu1 %v7064_v24, %s7164_s8  ;;  %v4220_v60 = vpop.permute.xlu1 %4219  ;;  %v7074_v24 = vpop.eup %7073  ;;  %7081 = vtanh.f32 %v4311_v61 }
 0x34a   : > { %v4310_v7 = vadd.f32 %v4220_v60, %v3950_v8 }
 0x34b   : > { %4859 = vrot.lane.b32.xlu0 %v4306_v45, %s7165_s10  ;;  %v4230_v39 = vpop.permute.xlu0 %4229  ;;  %v7076_v48 = vpop.eup %7075 }
 0x34c   : > { %v7078_v3 = vpop.eup %7077  ;;  %7083 = vtanh.f32 %v4310_v7 }
 0x34d   : > { %4419 = vrot.lane.b32.xlu1 %v7068_v14, %s7164_s8  ;;  %v9891_v14 = vld [vmem:[#allocation22_spill] sm:$0xff]  ;;  %7085 = vtanh.f32 %v4309_v49 }
 0x34e   : > { %v3955_v45 = vmul.f32 %v8907_v56, %v9891_v14  ;;  %v4232_v43 = vpop.permute.xlu1 %4231 }
 0x34f   : > { %4417 = vrot.lane.b32.xlu0 %v7070_v6, %s7164_s8  ;;  %v4226_v36 = vpop.permute.xlu0 %4225  ;;  %v9892_v6 = vld [vmem:[#allocation11_spill] sm:$0xff] }
 0x350   : > { %v4315_v16 = vadd.f32 %v4230_v39, %v3955_v45  ;;  %v3953_v2 = vmul.f32 %v8913_v38, %v9892_v6 }
 0x351   : > { %4869 = vrot.lane.b32.xlu1 %v4311_v61, %s7165_s10 }
 0x352   : > { %v4313_v40 = vadd.f32 %v4226_v36, %v3953_v2  ;;  %v4228_v0 = vpop.permute.xlu1 %4227  ;;  %v7080_v61 = vpop.eup %7079  ;;  %v9897_v2 = vld [vmem:[#allocation34_spill] sm:$0xff] }
 0x353   : > { %4871 = vrot.lane.b32.xlu0 %v4312_v26, %s7165_s10  ;;  %v4316_v26 = vadd.f32 %v4232_v43, %v3956_v13  ;;  %v7082_v60 = vpop.eup %7081  ;;  %v4238_v8 = vpop.permute.xlu0 %4237  ;;  %v3960_v52 = vmul.f32 %v8935_v51, %v9897_v2 }
 0x355   : > { %4865 = vrot.lane.b32.xlu1 %v4309_v49, %s7165_s10  ;;  %7087 = vtanh.f32 %v4316_v26 }
 0x356   : > { %v7084_v39 = vpop.eup %7083  ;;  %7089 = vtanh.f32 %v4315_v16 }
 0x357   : > { %4429 = vrot.lane.b32.xlu0 %v7074_v24, %s7164_s8  ;;  %v9894_v24 = vld [vmem:[#allocation21_spill] sm:$0xff]  ;;  %v4234_v43 = vpop.permute.xlu0 %4233  ;;  %v7086_v36 = vpop.eup %7085 }
 0x358   : > { %v3954_v21 = vmul.f32 %v8923_v58, %v9894_v24  ;;  %v9898_v24 = vld [vmem:[#allocation30_spill] sm:$0xff] }
 0x359   : > { %4431 = vrot.lane.b32.xlu1 %v7072_v50, %s7164_s8  ;;  %v4240_v50 = vpop.permute.xlu1 %4239 }
 0x35b   : > { %4867 = vrot.lane.b32.xlu0 %v4310_v7, %s7165_s10  ;;  %v9895_v7 = vld [vmem:[#allocation12_spill] sm:$0xff] }
 0x35c   : > { %v3959_v14 = vmul.f32 %v8927_v1, %v9895_v7 }
 0x35d   : > { %4427 = vrot.lane.b32.xlu1 %v7076_v48, %s7164_s8  ;;  %v4314_v48 = vadd.f32 %v4228_v0, %v3954_v21  ;;  %v4236_v45 = vpop.permute.xlu1 %4235  ;;  %v4320_v0 = vadd.f32 %v4240_v50, %v3960_v52  ;;  %v3958_v21 = vmul.f32 %v8940_v23, %v9898_v24  ;;  %v9899_v50 = vld [vmem:[#allocation15_spill] sm:$0xff] }
 0x35e   : > { %v4319_v49 = vadd.f32 %v4238_v8, %v3959_v14  ;;  %v3963_v7 = vmul.f32 %v8943_v35, %v9899_v50 }
 0x35f   : > { %4425 = vrot.lane.b32.xlu0 %v7078_v3, %s7164_s8  ;;  %v9896_v3 = vld [vmem:[#allocation28_spill] sm:$0xff]  ;;  %7091 = vtanh.f32 %v4314_v48 }
 0x360   : > { %v3957_v6 = vmul.f32 %v8932_v25, %v9896_v3  ;;  %7093 = vtanh.f32 %v4313_v40 }
 0x361   : > { %4877 = vrot.lane.b32.xlu1 %v4315_v16, %s7165_s10  ;;  %v4246_v16 = vpop.permute.xlu0 %4245  ;;  %7095 = vtanh.f32 %v4320_v0 }
 0x362   : > { %v4317_v13 = vadd.f32 %v4234_v43, %v3957_v6  ;;  %7097 = vtanh.f32 %v4319_v49 }
 0x363   : > { %4879 = vrot.lane.b32.xlu0 %v4316_v26, %s7165_s10  ;;  %v4248_v26 = vpop.permute.xlu1 %4247 }
 0x365   : > { %4873 = vrot.lane.b32.xlu1 %v4313_v40, %s7165_s10  ;;  %v4242_v14 = vpop.permute.xlu0 %4241  ;;  %v4323_v40 = vadd.f32 %v4246_v16, %v3963_v7 }
 0x367   : > { %4437 = vrot.lane.b32.xlu0 %v7082_v60, %s7164_s8  ;;  %v4244_v8 = vpop.permute.xlu1 %4243 }
 0x369   : > { %4439 = vrot.lane.b32.xlu1 %v7080_v61, %s7164_s8  ;;  %v7088_v61 = vpop.eup %7087 }
 0x36a   : > { %v7090_v60 = vpop.eup %7089 }
 0x36b   : > { %4875 = vrot.lane.b32.xlu0 %v4314_v48, %s7165_s10  ;;  %v4318_v48 = vadd.f32 %v4236_v45, %v3958_v21  ;;  %v4256_v6 = vpop.permute.xlu1 %4255  ;;  %v9901_v45 = vld [vmem:[#allocation16_spill] sm:$0xff]  ;;  %v9902_v21 = vld [vmem:[#allocation14_spill] sm:$0xff] }
 0x36c   : > { %v3964_v2 = vmul.f32 %v8951_v27, %v9901_v45 }
 0x36d   : > { %4435 = vrot.lane.b32.xlu1 %v7084_v39, %s7164_s8  ;;  %v7092_v39 = vpop.eup %7091  ;;  %7099 = vtanh.f32 %v4318_v48 }
 0x36e   : > { %v7094_v43 = vpop.eup %7093  ;;  %7101 = vtanh.f32 %v4317_v13 }
 0x36f   : > { %4433 = vrot.lane.b32.xlu0 %v7086_v36, %s7164_s8  ;;  %v9900_v36 = vld [vmem:[#allocation13_spill] sm:$0xff]  ;;  %v7096_v16 = vpop.eup %7095 }
 0x370   : > { %v3961_v3 = vmul.f32 %v8948_v28, %v9900_v36 }
 0x371   : > { %4885 = vrot.lane.b32.xlu1 %v4319_v49, %s7165_s10  ;;  %v4252_v49 = vpop.permute.xlu1 %4251 }
 0x372   : > { %v4321_v52 = vadd.f32 %v4242_v14, %v3961_v3  ;;  %v9904_v3 = vld [vmem:[#allocation20_spill] sm:$0xff] }
 0x373   : > { %4887 = vrot.lane.b32.xlu0 %v4320_v0, %s7165_s10  ;;  %v4324_v0 = vadd.f32 %v4248_v26, %v3964_v2  ;;  %v9903_v26 = vld [vmem:[#allocation19_spill] sm:$0xff]  ;;  %v3968_v45 = vmul.f32 %v8967_v42, %v9904_v3  ;;  %v9905_v2 = vld [vmem:[#allocation17_spill] sm:$0xff] }
 0x374   : > { %v3967_v14 = vmul.f32 %v8959_v57, %v9903_v26 }
 0x375   : > { %4881 = vrot.lane.b32.xlu1 %v4317_v13, %s7165_s10  ;;  %7103 = vtanh.f32 %v4324_v0 }
 0x376   : > { %7105 = vtanh.f32 %v4323_v40 }
 0x377   : > { %4445 = vrot.lane.b32.xlu0 %v7090_v60, %s7164_s8  ;;  %v7098_v60 = vpop.eup %7097 }
 0x378   : > { %v7100_v50 = vpop.eup %7099 }
 0x379   : > { %4447 = vrot.lane.b32.xlu1 %v7088_v61, %s7164_s8  ;;  %v4254_v61 = vpop.permute.xlu0 %4253 }
 0x37b   : > { %4883 = vrot.lane.b32.xlu0 %v4318_v48, %s7165_s10 }
 0x37d   : > { %4443 = vrot.lane.b32.xlu1 %v7092_v39, %s7164_s8  ;;  %v4250_v24 = vpop.permute.xlu0 %4249  ;;  %v3962_v39 = vmul.f32 %v8956_v46, %v9902_v21  ;;  %v9906_v21 = vld [vmem:[#allocation18_spill] sm:$0xff] }
 0x37f   : > { %4441 = vrot.lane.b32.xlu0 %v7094_v43, %s7164_s8  ;;  %v4322_v7 = vadd.f32 %v4244_v8, %v3962_v39  ;;  %v4327_v43 = vadd.f32 %v4254_v61, %v3967_v14  ;;  %v7102_v8 = vpop.eup %7101  ;;  %v3966_v39 = vmul.f32 %v8972_v15, %v9906_v21 }
 0x381   : > { %4893 = vrot.lane.b32.xlu1 %v4323_v40, %s7165_s10  ;;  %7107 = vtanh.f32 %v4322_v7 }
 0x383   : > { %4895 = vrot.lane.b32.xlu0 %v4324_v0, %s7165_s10  ;;  %v4328_v0 = vadd.f32 %v4256_v6, %v3968_v45 }
 0x385   : > { %4889 = vrot.lane.b32.xlu1 %v4321_v52, %s7165_s10  ;;  %7109 = vtanh.f32 %v4328_v0 }
 0x386   : > { %7111 = vtanh.f32 %v4321_v52 }
 0x387   : > { %4453 = vrot.lane.b32.xlu0 %v7098_v60, %s7164_s8 }
 0x389   : > { %4455 = vrot.lane.b32.xlu1 %v7096_v16, %s7164_s8  ;;  %v3965_v16 = vmul.f32 %v8964_v4, %v9905_v2 }
 0x38b   : > { %v4838_v48 = vpop.permute.xlu1 %4837  ;;  %4891 = vrot.lane.b32.xlu0 %v4322_v7, %s7165_s10  ;;  %v4325_v40 = vadd.f32 %v4250_v24, %v3965_v16  ;;  %v7104_v7 = vpop.eup %7103 }
 0x38c   : > { %4943 = vst.msk [vmem:[#allocation3 + $0x10] sm:$0xff] %vm682_vm1, %v4838_v48  ;;  %v7106_v24 = vpop.eup %7105 }
 0x38d   : > { %v4840_v13 = vpop.permute.xlu0 %4839  ;;  %4451 = vrot.lane.b32.xlu1 %v7100_v50, %s7164_s8  ;;  %v4326_v50 = vadd.f32 %v4252_v49, %v3966_v39 }
 0x38e   : > { %4944 = vst.msk [vmem:[#allocation3 + $0x18] sm:$0xff] %vm682_vm1, %v4840_v13  ;;  %v7108_v13 = vpop.eup %7107 }
 0x38f   : > { %v4834_v36 = vpop.permute.xlu1 %4833  ;;  %4449 = vrot.lane.b32.xlu0 %v7102_v8, %s7164_s8  ;;  %7113 = vtanh.f32 %v4326_v50 }
 0x390   : > { %4941 = vst.msk [vmem:[#allocation3] sm:$0xff] %vm682_vm1, %v4834_v36  ;;  %7115 = vtanh.f32 %v4327_v43  ;;  %v7110_v36 = vpop.eup %7109 }
 0x391   : > { %v4836_v60 = vpop.permute.xlu0 %4835  ;;  %4901 = vrot.lane.b32.xlu1 %v4327_v43, %s7165_s10  ;;  %7117 = vtanh.f32 %v4325_v40  ;;  %v7112_v3 = vpop.eup %7111 }
 0x392   : > { %4942 = vst.msk [vmem:[#allocation3 + $0x8] sm:$0xff] %vm682_vm1, %v4836_v60  ;;  %v9907_v60 = vld [vmem:[#allocation24_spill] sm:$0xff] }
 0x393   : > { %v4846_v61 = vpop.permute.xlu1 %4845  ;;  %4903 = vrot.lane.b32.xlu0 %v4328_v0, %s7165_s10 }
 0x394   : > { %4947 = vst.msk [vmem:[#allocation3 + $0x30] sm:$0xff] %vm682_vm1, %v4846_v61 }
 0x395   : > { %v4848_v48 = vpop.permute.xlu0 %4847  ;;  %4897 = vrot.lane.b32.xlu1 %v4325_v40, %s7165_s10 }
 0x396   : > { %4948 = vst.msk [vmem:[#allocation3 + $0x38] sm:$0xff] %vm682_vm1, %v4848_v48  ;;  %v9908_v48 = vld [vmem:[#allocation31_spill] sm:$0xff] }
 0x397   : > { %v4842_v6 = vpop.permute.xlu1 %4841  ;;  %4461 = vrot.lane.b32.xlu0 %v7106_v24, %s7164_s8 }
 0x398   : > { %4945 = vst.msk [vmem:[#allocation3 + $0x20] sm:$0xff] %vm682_vm1, %v4842_v6 }
 0x399   : > { %v4406_v26 = vpop.permute.xlu0 %4405  ;;  %4463 = vrot.lane.b32.xlu1 %v7104_v7, %s7164_s8  ;;  %v7114_v2 = vpop.eup %7113  ;;  %v9909_v7 = vld [vmem:[#allocation23_spill] sm:$0xff] }
 0x39a   : > { %v4511_v43 = vmul.f32 %v8809_v10, %v4406_v26  ;;  %v7116_v16 = vpop.eup %7115 }
 0x39b   : > { %v4408_v14 = vpop.permute.xlu1 %4407  ;;  %4899 = vrot.lane.b32.xlu0 %v4326_v50, %s7165_s10  ;;  %v7118_v10 = vpop.eup %7117 }
 0x39c   : > { %v9130_v0 = vmul.f32 %v9907_v60, %v4511_v43  ;;  %v4512_v21 = vmul.f32 %v8812_v59, %v4408_v14  ;;  %v9910_v14 = vld [vmem:[#allocation35_spill] sm:$0xff] }
 0x39d   : > { %v4844_v49 = vpop.permute.xlu0 %4843  ;;  %4459 = vrot.lane.b32.xlu1 %v7108_v13, %s7164_s8 }
 0x39e   : > { %4946 = vst.msk [vmem:[#allocation3 + $0x28] sm:$0xff] %vm682_vm1, %v4844_v49 }
 0x39f   : > { %v4404_v52 = vpop.permute.xlu1 %4403  ;;  %4457 = vrot.lane.b32.xlu0 %v7112_v3, %s7164_s8 }
 0x3a0   : > { %v4510_v59 = vmul.f32 %v8822_v44, %v4404_v52 }
 0x3a1   : > { %4471 = vrot.lane.b32.xlu1 %v7110_v36, %s7164_s8  ;;  %v4402_v45 = vpop.permute.xlu0 %4401  ;;  %v9911_v36 = vld [vmem:[#allocation32_spill] sm:$0xff] }
 0x3a2   : > { %v4509_v40 = vmul.f32 %v8817_v55, %v4402_v45  ;;  %v9143_v55 = vmul.f32 %v9909_v7, %v4512_v21  ;;  %v9155_v3 = vmul.f32 %v9911_v36, %v4510_v59  ;;  %v9916_v59 = vld [vmem:[#allocation39_spill] sm:$0xff] }
 0x3a3   : > { %v4854_v8 = vpop.permute.xlu1 %4853  ;;  %4469 = vrot.lane.b32.xlu0 %v7116_v16, %s7164_s8  ;;  %v9913_v16 = vld [vmem:[#allocation26_spill] sm:$0xff] }
 0x3a4   : > { %4951 = vst.msk [vmem:[#allocation3 + $0x50] sm:$0xff] %vm682_vm1, %v4854_v8  ;;  %v9140_v50 = vmul.f32 %v9908_v48, %v4509_v40 }
 0x3a5   : > { %4467 = vrot.lane.b32.xlu1 %v7114_v2, %s7164_s8  ;;  %v4856_v39 = vpop.permute.xlu0 %4855 }
 0x3a6   : > { %4952 = vst.msk [vmem:[#allocation3 + $0x58] sm:$0xff] %vm682_vm1, %v4856_v39 }
 0x3a7   : > { %v4850_v61 = vpop.permute.xlu1 %4849  ;;  %4465 = vrot.lane.b32.xlu0 %v7118_v10, %s7164_s8 }
 0x3a8   : > { %4949 = vst.msk [vmem:[#allocation3 + $0x40] sm:$0xff] %vm682_vm1, %v4850_v61  ;;  %v9914_v61 = vld [vmem:[#allocation25_spill] sm:$0xff] }
 0x3a9   : > { %5017 = vrot.lane.b32.xlu1 %v9130_v0, %s7162_s21  ;;  %v4414_v24 = vpop.permute.xlu0 %4413 }
 0x3aa   : > { %v4515_v26 = vmul.f32 %v8826_v17, %v4414_v24  ;;  %v9912_v17 = vld [vmem:[#allocation33_spill] sm:$0xff] }
 0x3ab   : > { %v4416_v6 = vpop.permute.xlu1 %4415  ;;  %5019 = vrot.lane.b32.xlu0 %v9143_v55, %s7162_s21 }
 0x3ac   : > { %v9152_v13 = vmul.f32 %v9910_v14, %v4515_v26  ;;  %v4516_v45 = vmul.f32 %v8831_v19, %v4416_v6  ;;  %v9915_v6 = vld [vmem:[#allocation38_spill] sm:$0xff] }
 0x3ad   : > { %5013 = vrot.lane.b32.xlu1 %v9140_v50, %s7162_s21  ;;  %v4852_v43 = vpop.permute.xlu0 %4851 }
 0x3ae   : > { %4950 = vst.msk [vmem:[#allocation3 + $0x48] sm:$0xff] %vm682_vm1, %v4852_v43  ;;  %v9164_v52 = vmul.f32 %v9912_v17, %v4516_v45  ;;  %v9918_v43 = vld [vmem:[#allocation37_spill] sm:$0xff] }
 0x3af   : > { %v4412_v49 = vpop.permute.xlu1 %4411  ;;  %5015 = vrot.lane.b32.xlu0 %v9155_v3, %s7162_s21 }
 0x3b0   : > { %v4514_v8 = vmul.f32 %v8838_v9, %v4412_v49 }
 0x3b1   : > { %5025 = vrot.lane.b32.xlu1 %v9152_v13, %s7162_s21  ;;  %v4410_v2 = vpop.permute.xlu0 %4409 }
 0x3b2   : > { %v4513_v19 = vmul.f32 %v8833_v20, %v4410_v2  ;;  %v9175_v21 = vmul.f32 %v9914_v61, %v4514_v8  ;;  %v9919_v61 = vld [vmem:[#allocation42_spill] sm:$0xff] }
 0x3b3   : > { %v4862_v44 = vpop.permute.xlu1 %4861  ;;  %5027 = vrot.lane.b32.xlu0 %v9164_v52, %s7162_s21 }
 0x3b4   : > { %4955 = vst.msk [vmem:[#allocation3 + $0x70] sm:$0xff] %vm682_vm1, %v4862_v44  ;;  %v9172_v60 = vmul.f32 %v9913_v16, %v4513_v19 }
 0x3b5   : > { %v4864_v39 = vpop.permute.xlu0 %4863 }
 0x3b6   : > { %4956 = vst.msk [vmem:[#allocation3 + $0x78] sm:$0xff] %vm682_vm1, %v4864_v39  ;;  %5021 = vrot.lane.b32.xlu1 %v9172_v60, %s7162_s21 }
 0x3b7   : > { %v4858_v40 = vpop.permute.xlu1 %4857  ;;  %5023 = vrot.lane.b32.xlu0 %v9175_v21, %s7162_s21 }
 0x3b8   : > { %4953 = vst.msk [vmem:[#allocation3 + $0x60] sm:$0xff] %vm682_vm1, %v4858_v40 }
 0x3b9   : > { %v4422_v9 = vpop.permute.xlu0 %4421 }
 0x3ba   : > { %v4519_v48 = vmul.f32 %v8846_v54, %v4422_v9 }
 0x3bb   : > { %v4424_v20 = vpop.permute.xlu1 %4423 }
 0x3bc   : > { %v4520_v10 = vmul.f32 %v8858_v31, %v4424_v20  ;;  %v9189_v24 = vmul.f32 %v9916_v59, %v4519_v48  ;;  %v9917_v31 = vld [vmem:[#allocation36_spill] sm:$0xff] }
 0x3bd   : > { %v4860_v14 = vpop.permute.xlu0 %4859 }
 0x3be   : > { %v9186_v7 = vmul.f32 %v9915_v6, %v4520_v10  ;;  %4954 = vst.msk [vmem:[#allocation3 + $0x68] sm:$0xff] %vm682_vm1, %v4860_v14  ;;  %5033 = vrot.lane.b32.xlu1 %v9189_v24, %s7162_s21 }
 0x3bf   : > { %v4420_v26 = vpop.permute.xlu1 %4419 }
 0x3c0   : > { %v4518_v49 = vmul.f32 %v8861_v11, %v4420_v26  ;;  %5035 = vrot.lane.b32.xlu0 %v9186_v7, %s7162_s21 }
 0x3c1   : > { %v4418_v45 = vpop.permute.xlu0 %4417 }
 0x3c2   : > { %v9198_v54 = vmul.f32 %v9917_v31, %v4518_v49  ;;  %v4517_v11 = vmul.f32 %v8852_v32, %v4418_v45 }
 0x3c3   : > { %v4870_v36 = vpop.permute.xlu1 %4869 }
 0x3c4   : > { %4959 = vst.msk [vmem:[#allocation3 + $0x90] sm:$0xff] %vm682_vm1, %v4870_v36  ;;  %5031 = vrot.lane.b32.xlu0 %v9198_v54, %s7162_s21  ;;  %v9205_v44 = vmul.f32 %v9918_v43, %v4517_v11 }
 0x3c5   : > { %v4872_v8 = vpop.permute.xlu0 %4871 }
 0x3c6   : > { %4960 = vst.msk [vmem:[#allocation3 + $0x98] sm:$0xff] %vm682_vm1, %v4872_v8  ;;  %5029 = vrot.lane.b32.xlu1 %v9205_v44, %s7162_s21 }
 0x3c7   : > { %v4866_v17 = vpop.permute.xlu1 %4865 }
 0x3c8   : > { %4957 = vst.msk [vmem:[#allocation3 + $0x80] sm:$0xff] %vm682_vm1, %v4866_v17 }
 0x3c9   : > { %v4430_v19 = vpop.permute.xlu0 %4429 }
 0x3ca   : > { %v4523_v40 = vmul.f32 %v8864_v34, %v4430_v19 }
 0x3cb   : > { %v4432_v2 = vpop.permute.xlu1 %4431 }
 0x3cc   : > { %v4524_v16 = vmul.f32 %v8877_v63, %v4432_v2  ;;  %v9217_v39 = vmul.f32 %v8717_v62, %v4523_v40  ;;  %v9920_v63 = vld [vmem:[#allocation40_spill] sm:$0xff] }
 0x3cd   : > { %v4868_v9 = vpop.permute.xlu0 %4867 }
 0x3ce   : > { %v9214_v32 = vmul.f32 %v9919_v61, %v4524_v16  ;;  %4958 = vst.msk [vmem:[#allocation3 + $0x88] sm:$0xff] %vm682_vm1, %v4868_v9  ;;  %5041 = vrot.lane.b32.xlu1 %v9217_v39, %s7162_s21 }
 0x3cf   : > { %v4428_v20 = vpop.permute.xlu1 %4427 }
 0x3d0   : > { %v4522_v10 = vmul.f32 %v8883_v18, %v4428_v20  ;;  %5043 = vrot.lane.b32.xlu0 %v9214_v32, %s7162_s21  ;;  %v9921_v18 = vld [vmem:[#allocation41_spill] sm:$0xff] }
 0x3d1   : > { %v4426_v6 = vpop.permute.xlu0 %4425  ;;  %v9922_v20 = vld [vmem:[#allocation45_spill] sm:$0xff] }
 0x3d2   : > { %v9226_v34 = vmul.f32 %v9920_v63, %v4522_v10  ;;  %v4521_v62 = vmul.f32 %v8873_v37, %v4426_v6 }
 0x3d3   : > { %v4878_v48 = vpop.permute.xlu1 %4877 }
 0x3d4   : > { %4963 = vst.msk [vmem:[#allocation3 + $0xb0] sm:$0xff] %vm682_vm1, %v4878_v48  ;;  %5039 = vrot.lane.b32.xlu0 %v9226_v34, %s7162_s21  ;;  %v9233_v59 = vmul.f32 %v9921_v18, %v4521_v62  ;;  %v9925_v18 = vld [vmem:[#allocation44_spill] sm:$0xff] }
 0x3d5   : > { %v4880_v14 = vpop.permute.xlu0 %4879 }
 0x3d6   : > { %4964 = vst.msk [vmem:[#allocation3 + $0xb8] sm:$0xff] %vm682_vm1, %v4880_v14  ;;  %5037 = vrot.lane.b32.xlu1 %v9233_v59, %s7162_s21 }
 0x3d7   : > { %v4874_v26 = vpop.permute.xlu1 %4873 }
 0x3d8   : > { %4961 = vst.msk [vmem:[#allocation3 + $0xa0] sm:$0xff] %vm682_vm1, %v4874_v26 }
 0x3d9   : > { %v4438_v31 = vpop.permute.xlu0 %4437 }
 0x3da   : > { %v4527_v45 = vmul.f32 %v8887_v5, %v4438_v31 }
 0x3db   : > { %v4440_v49 = vpop.permute.xlu1 %4439 }
 0x3dc   : > { %v4528_v36 = vmul.f32 %v8895_v29, %v4440_v49  ;;  %v9245_v11 = vmul.f32 %v8738_v41, %v4527_v45 }
 0x3dd   : > { %v4876_v17 = vpop.permute.xlu0 %4875 }
 0x3de   : > { %v9242_v37 = vmul.f32 %v8734_v22, %v4528_v36  ;;  %4962 = vst.msk [vmem:[#allocation3 + $0xa8] sm:$0xff] %vm682_vm1, %v4876_v17  ;;  %5049 = vrot.lane.b32.xlu1 %v9245_v11, %s7162_s21  ;;  %v9926_v17 = vld [vmem:[#allocation49_spill] sm:$0xff] }
 0x3df   : > { %v4436_v43 = vpop.permute.xlu1 %4435 }
 0x3e0   : > { %v4526_v8 = vmul.f32 %v8903_v12, %v4436_v43  ;;  %5051 = vrot.lane.b32.xlu0 %v9242_v37, %s7162_s21 }
 0x3e1   : > { %v4434_v29 = vpop.permute.xlu0 %4433 }
 0x3e2   : > { %v9254_v5 = vmul.f32 %v8727_v33, %v4526_v8  ;;  %v4525_v41 = vmul.f32 %v8892_v47, %v4434_v29  ;;  %v9927_v8 = vld [vmem:[#allocation50_spill] sm:$0xff] }
 0x3e3   : > { %v4886_v22 = vpop.permute.xlu1 %4885 }
 0x3e4   : > { %4967 = vst.msk [vmem:[#allocation3 + $0xd0] sm:$0xff] %vm682_vm1, %v4886_v22  ;;  %5047 = vrot.lane.b32.xlu0 %v9254_v5, %s7162_s21  ;;  %v9261_v12 = vmul.f32 %v8730_v30, %v4525_v41  ;;  %v9923_v30 = vld [vmem:[#allocation46_spill] sm:$0xff] }
 0x3e5   : > { %v4888_v19 = vpop.permute.xlu0 %4887 }
 0x3e6   : > { %4968 = vst.msk [vmem:[#allocation3 + $0xd8] sm:$0xff] %vm682_vm1, %v4888_v19  ;;  %5045 = vrot.lane.b32.xlu1 %v9261_v12, %s7162_s21 }
 0x3e7   : > { %v4882_v2 = vpop.permute.xlu1 %4881 }
 0x3e8   : > { %4965 = vst.msk [vmem:[#allocation3 + $0xc0] sm:$0xff] %vm682_vm1, %v4882_v2 }
 0x3e9   : > { %v4446_v16 = vpop.permute.xlu0 %4445 }
 0x3ea   : > { %v4531_v61 = vmul.f32 %v8907_v56, %v4446_v16  ;;  %v9929_v16 = vld [vmem:[#allocation48_spill] sm:$0xff] }
 0x3eb   : > { %v4448_v33 = vpop.permute.xlu1 %4447 }
 0x3ec   : > { %v4532_v40 = vmul.f32 %v8917_v53, %v4448_v33  ;;  %v9273_v9 = vmul.f32 %v9923_v30, %v4531_v61  ;;  %v9924_v53 = vld [vmem:[#allocation43_spill] sm:$0xff] }
 0x3ed   : > { %v4884_v63 = vpop.permute.xlu0 %4883 }
 0x3ee   : > { %v9270_v47 = vmul.f32 %v9922_v20, %v4532_v40  ;;  %4966 = vst.msk [vmem:[#allocation3 + $0xc8] sm:$0xff] %vm682_vm1, %v4884_v63  ;;  %5057 = vrot.lane.b32.xlu1 %v9273_v9, %s7162_s21 }
 0x3ef   : > { %v4444_v10 = vpop.permute.xlu1 %4443 }
 0x3f0   : > { %v4530_v48 = vmul.f32 %v8923_v58, %v4444_v10  ;;  %5059 = vrot.lane.b32.xlu0 %v9270_v47, %s7162_s21 }
 0x3f1   : > { %v4442_v62 = vpop.permute.xlu0 %4441 }
 0x3f2   : > { %v9282_v56 = vmul.f32 %v9924_v53, %v4530_v48  ;;  %v4529_v58 = vmul.f32 %v8913_v38, %v4442_v62  ;;  %v9930_v53 = vld [vmem:[#allocation53_spill] sm:$0xff] }
 0x3f3   : > { %v4894_v6 = vpop.permute.xlu1 %4893 }
 0x3f4   : > { %4971 = vst.msk [vmem:[#allocation3 + $0xf0] sm:$0xff] %vm682_vm1, %v4894_v6  ;;  %5055 = vrot.lane.b32.xlu0 %v9282_v56, %s7162_s21  ;;  %v9289_v26 = vmul.f32 %v9925_v18, %v4529_v58  ;;  %v9931_v6 = vld [vmem:[#allocation54_spill] sm:$0xff] }
 0x3f5   : > { %v4896_v49 = vpop.permute.xlu0 %4895 }
 0x3f6   : > { %4972 = vst.msk [vmem:[#allocation3 + $0xf8] sm:$0xff] %vm682_vm1, %v4896_v49  ;;  %5053 = vrot.lane.b32.xlu1 %v9289_v26, %s7162_s21 }
 0x3f7   : > { %v4890_v14 = vpop.permute.xlu1 %4889 }
 0x3f8   : > { %4969 = vst.msk [vmem:[#allocation3 + $0xe0] sm:$0xff] %vm682_vm1, %v4890_v14 }
 0x3f9   : > { %v4454_v36 = vpop.permute.xlu0 %4453 }
 0x3fa   : > { %v4535_v43 = vmul.f32 %v8927_v1, %v4454_v36 }
 0x3fb   : > { %v4456_v31 = vpop.permute.xlu1 %4455 }
 0x3fc   : > { %v4536_v45 = vmul.f32 %v8935_v51, %v4456_v31  ;;  %v9301_v22 = vmul.f32 %v9927_v8, %v4535_v43  ;;  %v9928_v51 = vld [vmem:[#allocation47_spill] sm:$0xff] }
 0x3fd   : > { %v4892_v41 = vpop.permute.xlu0 %4891 }
 0x3fe   : > { %v9298_v38 = vmul.f32 %v9926_v17, %v4536_v45  ;;  %4970 = vst.msk [vmem:[#allocation3 + $0xe8] sm:$0xff] %vm682_vm1, %v4892_v41  ;;  %5065 = vrot.lane.b32.xlu1 %v9301_v22, %s7162_s21  ;;  %v9933_v45 = vld [vmem:[#allocation52_spill] sm:$0xff]  ;;  %v9934_v41 = vld [vmem:[#allocation55_spill] sm:$0xff] }
 0x3ff   : > { %v4452_v29 = vpop.permute.xlu1 %4451 }
 0x400   : > { %v4534_v2 = vmul.f32 %v8940_v23, %v4452_v29  ;;  %5067 = vrot.lane.b32.xlu0 %v9298_v38, %s7162_s21 }
 0x401   : > { %v4450_v33 = vpop.permute.xlu0 %4449 }
 0x402   : > { %v9310_v1 = vmul.f32 %v9928_v51, %v4534_v2  ;;  %v4533_v23 = vmul.f32 %v8932_v25, %v4450_v33  ;;  %v9935_v33 = vld [vmem:[#allocation57_spill] sm:$0xff] }
 0x403   : > { %v4902_v19 = vpop.permute.xlu1 %4901 }
 0x404   : > { %4975 = vst.msk [vmem:[#allocation3 + $0x110] sm:$0xff] %vm682_vm1, %v4902_v19  ;;  %5063 = vrot.lane.b32.xlu0 %v9310_v1, %s7162_s21  ;;  %v9317_v40 = vmul.f32 %v9929_v16, %v4533_v23  ;;  %v9936_v16 = vld [vmem:[#allocation56_spill] sm:$0xff] }
 0x405   : > { %v4904_v20 = vpop.permute.xlu0 %4903 }
 0x406   : > { %4976 = vst.msk [vmem:[#allocation3 + $0x118] sm:$0xff] %vm682_vm1, %v4904_v20  ;;  %5061 = vrot.lane.b32.xlu1 %v9317_v40, %s7162_s21 }
 0x407   : > { %v4898_v61 = vpop.permute.xlu1 %4897 }
 0x408   : > { %4973 = vst.msk [vmem:[#allocation3 + $0x100] sm:$0xff] %vm682_vm1, %v4898_v61 }
 0x409   : > { %v4462_v10 = vpop.permute.xlu0 %4461 }
 0x40a   : > { %v4539_v48 = vmul.f32 %v8943_v35, %v4462_v10 }
 0x40b   : > { %v4464_v30 = vpop.permute.xlu1 %4463 }
 0x40c   : > { %v4540_v63 = vmul.f32 %v8951_v27, %v4464_v30  ;;  %v9329_v62 = vmul.f32 %v9931_v6, %v4539_v48  ;;  %v9932_v27 = vld [vmem:[#allocation51_spill] sm:$0xff] }
 0x40d   : > { %v4900_v18 = vpop.permute.xlu0 %4899 }
 0x40e   : > { %v9326_v25 = vmul.f32 %v9930_v53, %v4540_v63  ;;  %4974 = vst.msk [vmem:[#allocation3 + $0x108] sm:$0xff] %vm682_vm1, %v4900_v18  ;;  %5073 = vrot.lane.b32.xlu1 %v9329_v62, %s7162_s21 }
 0x40f   : > { %v4460_v58 = vpop.permute.xlu1 %4459 }
 0x410   : > { %v4538_v14 = vmul.f32 %v8956_v46, %v4460_v58  ;;  %5075 = vrot.lane.b32.xlu0 %v9326_v25, %s7162_s21 }
 0x411   : > { %v4458_v31 = vpop.permute.xlu0 %4457 }
 0x412   : > { %v9338_v35 = vmul.f32 %v9932_v27, %v4538_v14  ;;  %v4537_v36 = vmul.f32 %v8948_v28, %v4458_v31 }
 0x413   : > { %v4472_v49 = vpop.permute.xlu1 %4471 }
 0x414   : > { %5071 = vrot.lane.b32.xlu0 %v9338_v35, %s7162_s21  ;;  %v9344_v46 = vmul.f32 %v9933_v45, %v4537_v36  ;;  %v4544_v29 = vmul.f32 %v8967_v42, %v4472_v49 }
 0x415   : > { %v4470_v17 = vpop.permute.xlu0 %4469 }
 0x416   : > { %5069 = vrot.lane.b32.xlu1 %v9344_v46, %s7162_s21  ;;  %v9358_v23 = vmul.f32 %v9935_v33, %v4544_v29 }
 0x417   : > { %v4468_v43 = vpop.permute.xlu1 %4467 }
 0x418   : > { %v4542_v8 = vmul.f32 %v8972_v15, %v4468_v43  ;;  %v4543_v15 = vmul.f32 %v8959_v57, %v4470_v17 }
 0x419   : > { %v4466_v19 = vpop.permute.xlu0 %4465 }
 0x41a   : > { %v9351_v2 = vmul.f32 %v9934_v41, %v4542_v8  ;;  %v4541_v28 = vmul.f32 %v8964_v4, %v4466_v19  ;;  %v9937_v4 = vld [vmem:[#allocation58_spill] sm:$0xff] }
 0x41b   : > { %v5018_v51 = vpop.permute.xlu1 %5017  ;;  %v9371_v30 = vmul.f32 %v9937_v4, %v4543_v15 }
 0x41c   : > { %5123 = vst.msk [vmem:[#allocation2 + $0x28] sm:$0xff] %vm682_vm1, %v5018_v51  ;;  %5079 = vrot.lane.b32.xlu0 %v9351_v2, %s7162_s21  ;;  %v9362_v61 = vmul.f32 %v9936_v16, %v4541_v28 }
 0x41d   : > { %v5020_v20 = vpop.permute.xlu0 %5019 }
 0x41e   : > { %5124 = vst.msk [vmem:[#allocation2 + $0x30] sm:$0xff] %vm682_vm1, %v5020_v20  ;;  %5077 = vrot.lane.b32.xlu1 %v9362_v61, %s7162_s21 }
 0x41f   : > { %v5014_v42 = vpop.permute.xlu1 %5013 }
 0x420   : > { %5121 = vst.msk [vmem:[#allocation2 + $0x18] sm:$0xff] %vm682_vm1, %v5014_v42  ;;  %5083 = vrot.lane.b32.xlu0 %v9358_v23, %s7162_s21 }
 0x421   : > { %v5016_v57 = vpop.permute.xlu0 %5015 }
 0x422   : > { %5122 = vst.msk [vmem:[#allocation2 + $0x20] sm:$0xff] %vm682_vm1, %v5016_v57  ;;  %5081 = vrot.lane.b32.xlu1 %v9371_v30, %s7162_s21 }
 0x423   : > { %v5026_v10 = vpop.permute.xlu1 %5025 }
 0x424   : > { %5127 = vst.msk [vmem:[#allocation2 + $0x48] sm:$0xff] %vm682_vm1, %v5026_v10 }
 0x425   : > { %v5028_v63 = vpop.permute.xlu0 %5027 }
 0x426   : > { %5128 = vst.msk [vmem:[#allocation2 + $0x50] sm:$0xff] %vm682_vm1, %v5028_v63 }
 0x428   : > { %v5022_v48 = vpop.permute.xlu1 %5021 }
 0x429   : > { %5125 = vst.msk [vmem:[#allocation2 + $0x38] sm:$0xff] %vm682_vm1, %v5022_v48  ;;  %v5024_v53 = vpop.permute.xlu0 %5023 }
 0x42a   : > { %5126 = vst.msk [vmem:[#allocation2 + $0x40] sm:$0xff] %vm682_vm1, %v5024_v53 }
 0x430   : > { %v5034_v58 = vpop.permute.xlu1 %5033 }
 0x431   : > { %5131 = vst.msk [vmem:[#allocation2 + $0x68] sm:$0xff] %vm682_vm1, %v5034_v58 }
 0x432   : > { %v5036_v6 = vpop.permute.xlu0 %5035 }
 0x433   : > { %5132 = vst.msk [vmem:[#allocation2 + $0x70] sm:$0xff] %vm682_vm1, %v5036_v6  ;;  %v5885_v6 = vld [vmem:[%s9686_s3] ss:$0 sm:$0xff] (!%p5884_p12) }
 0x434   : > { %5167 = vrot.lane.b32.xlu0 (!%p5884_p12), %v5885_v6, %s7166_s11 }
 0x436   : > { %v5032_v18 = vpop.permute.xlu0 %5031 }
 0x437   : > { %5130 = vst.msk [vmem:[#allocation2 + $0x60] sm:$0xff] %vm682_vm1, %v5032_v18 }
 0x438   : > { %v5030_v14 = vpop.permute.xlu1 %5029 }
 0x439   : > { %5129 = vst.msk [vmem:[#allocation2 + $0x58] sm:$0xff] %vm682_vm1, %v5030_v14 }
 0x440   : > { %v5042_v49 = vpop.permute.xlu1 %5041 }
 0x441   : > { %5135 = vst.msk [vmem:[#allocation2 + $0x88] sm:$0xff] %vm682_vm1, %v5042_v49 }
 0x442   : > { %v5044_v27 = vpop.permute.xlu0 %5043 }
 0x443   : > { %5136 = vst.msk [vmem:[#allocation2 + $0x90] sm:$0xff] %vm682_vm1, %v5044_v27 }
 0x446   : > { %v5040_v31 = vpop.permute.xlu0 %5039 }
 0x447   : > { %5134 = vst.msk [vmem:[#allocation2 + $0x80] sm:$0xff] %vm682_vm1, %v5040_v31 }
 0x448   : > { %v5038_v36 = vpop.permute.xlu1 %5037 }
 0x449   : > { %5133 = vst.msk [vmem:[#allocation2 + $0x78] sm:$0xff] %vm682_vm1, %v5038_v36 }
 0x450   : > { %v5050_v43 = vpop.permute.xlu1 %5049 }
 0x451   : > { %5139 = vst.msk [vmem:[#allocation2 + $0xa8] sm:$0xff] %vm682_vm1, %v5050_v43 }
 0x452   : > { %v5052_v45 = vpop.permute.xlu0 %5051 }
 0x453   : > { %5140 = vst.msk [vmem:[#allocation2 + $0xb0] sm:$0xff] %vm682_vm1, %v5052_v45 }
 0x456   : > { %v5048_v17 = vpop.permute.xlu0 %5047 }
 0x457   : > { %5138 = vst.msk [vmem:[#allocation2 + $0xa0] sm:$0xff] %vm682_vm1, %v5048_v17 }
 0x458   : > { %v5046_v8 = vpop.permute.xlu1 %5045 }
 0x459   : > { %5137 = vst.msk [vmem:[#allocation2 + $0x98] sm:$0xff] %vm682_vm1, %v5046_v8 }
 0x460   : > { %v5058_v41 = vpop.permute.xlu1 %5057 }
 0x461   : > { %5143 = vst.msk [vmem:[#allocation2 + $0xc8] sm:$0xff] %vm682_vm1, %v5058_v41 }
 0x462   : > { %v5060_v29 = vpop.permute.xlu0 %5059 }
 0x463   : > { %5144 = vst.msk [vmem:[#allocation2 + $0xd0] sm:$0xff] %vm682_vm1, %v5060_v29 }
 0x466   : > { %v5056_v51 = vpop.permute.xlu0 %5055 }
 0x467   : > { %5142 = vst.msk [vmem:[#allocation2 + $0xc0] sm:$0xff] %vm682_vm1, %v5056_v51 }
 0x468   : > { %v5054_v19 = vpop.permute.xlu1 %5053 }
 0x469   : > { %5141 = vst.msk [vmem:[#allocation2 + $0xb8] sm:$0xff] %vm682_vm1, %v5054_v19 }
 0x470   : > { %v5066_v33 = vpop.permute.xlu1 %5065 }
 0x471   : > { %5147 = vst.msk [vmem:[#allocation2 + $0xe8] sm:$0xff] %vm682_vm1, %v5066_v33 }
 0x472   : > { %v5068_v28 = vpop.permute.xlu0 %5067 }
 0x473   : > { %5148 = vst.msk [vmem:[#allocation2 + $0xf0] sm:$0xff] %vm682_vm1, %v5068_v28 }
 0x476   : > { %v5064_v15 = vpop.permute.xlu0 %5063 }
 0x477   : > { %5146 = vst.msk [vmem:[#allocation2 + $0xe0] sm:$0xff] %vm682_vm1, %v5064_v15 }
 0x478   : > { %v5062_v16 = vpop.permute.xlu1 %5061 }
 0x479   : > { %5145 = vst.msk [vmem:[#allocation2 + $0xd8] sm:$0xff] %vm682_vm1, %v5062_v16 }
 0x480   : > { %v5074_v20 = vpop.permute.xlu1 %5073 }
 0x481   : > { %5151 = vst.msk [vmem:[#allocation2 + $0x108] sm:$0xff] %vm682_vm1, %v5074_v20 }
 0x482   : > { %v5076_v42 = vpop.permute.xlu0 %5075 }
 0x483   : > { %5152 = vst.msk [vmem:[#allocation2 + $0x110] sm:$0xff] %vm682_vm1, %v5076_v42 }
 0x486   : > { %v5072_v4 = vpop.permute.xlu0 %5071 }
 0x487   : > { %5150 = vst.msk [vmem:[#allocation2 + $0x100] sm:$0xff] %vm682_vm1, %v5072_v4 }
 0x488   : > { %v5070_v10 = vpop.permute.xlu1 %5069 }
 0x489   : > { %5149 = vst.msk [vmem:[#allocation2 + $0xf8] sm:$0xff] %vm682_vm1, %v5070_v10 }
 0x48e   : > { %v5080_v57 = vpop.permute.xlu0 %5079 }
 0x48f   : > { %5154 = vst.msk [vmem:[#allocation2 + $0x120] sm:$0xff] %vm682_vm1, %v5080_v57  ;;  %5160 = sbr.rel (%p5884_p12) target bundleno = 1522 (0x5f2), region = 48 }
 0x490   : > { %v5078_v48 = vpop.permute.xlu1 %5077 }
 0x491   : > { %5153 = vst.msk [vmem:[#allocation2 + $0x118] sm:$0xff] %vm682_vm1, %v5078_v48 }
 0x492   : > { %v5084_v63 = vpop.permute.xlu0 %5083 }
 0x493   : > { %5156 = vst.msk [vmem:[#allocation2 + $0x130] sm:$0xff] %vm682_vm1, %v5084_v63 }
 0x494   : > { %v5082_v53 = vpop.permute.xlu1 %5081 }
 0x495   : > { %5155 = vst.msk [vmem:[#allocation2 + $0x128] sm:$0xff] %vm682_vm1, %v5082_v53 }
 0x4a6   : > { %v9412_v58 = vpop.permute.xlu0 %5167 }
 0x4a7   : > { %v5171_v18 = vmul.f32 %v9412_v58, %v9155_v3  ;;  %v5170_v14 = vmul.f32 %v9412_v58, %v9140_v50  ;;  %v5172_v27 = vmul.f32 %v9412_v58, %v9130_v0  ;;  %v5173_v49 = vmul.f32 %v9412_v58, %v9143_v55 }
 0x4a8   : > { %v5174_v3 = vmul.f32 %v9412_v58, %v9172_v60  ;;  %v5175_v50 = vmul.f32 %v9412_v58, %v9175_v21  ;;  %v5176_v0 = vmul.f32 %v9412_v58, %v9152_v13  ;;  %v5177_v55 = vmul.f32 %v9412_v58, %v9164_v52 }
 0x4a9   : > { %5244 = vrot.lane.b32.xlu1 %v5171_v18, %s7167_s15  ;;  %5242 = vrot.lane.b32.xlu0 %v5170_v14, %s7167_s15  ;;  %v5178_v60 = vmul.f32 %v9412_v58, %v9205_v44  ;;  %v5179_v21 = vmul.f32 %v9412_v58, %v9198_v54  ;;  %v5180_v13 = vmul.f32 %v9412_v58, %v9189_v24 }
 0x4aa   : > { %v5181_v52 = vmul.f32 %v9412_v58, %v9186_v7  ;;  %v5182_v44 = vmul.f32 %v9412_v58, %v9233_v59  ;;  %v5183_v54 = vmul.f32 %v9412_v58, %v9226_v34  ;;  %v5184_v24 = vmul.f32 %v9412_v58, %v9217_v39 }
 0x4ab   : > { %v5185_v7 = vmul.f32 %v9412_v58, %v9214_v32  ;;  %v5186_v59 = vmul.f32 %v9412_v58, %v9261_v12  ;;  %v5187_v34 = vmul.f32 %v9412_v58, %v9254_v5  ;;  %v5188_v39 = vmul.f32 %v9412_v58, %v9245_v11 }
 0x4ac   : > { %v5189_v32 = vmul.f32 %v9412_v58, %v9242_v37  ;;  %v5190_v12 = vmul.f32 %v9412_v58, %v9289_v26  ;;  %v5191_v5 = vmul.f32 %v9412_v58, %v9282_v56  ;;  %v5192_v11 = vmul.f32 %v9412_v58, %v9273_v9 }
 0x4ad   : > { %5246 = vrot.lane.b32.xlu1 %v5172_v27, %s7167_s15  ;;  %5248 = vrot.lane.b32.xlu0 %v5173_v49, %s7167_s15  ;;  %v5193_v37 = vmul.f32 %v9412_v58, %v9270_v47  ;;  %v5194_v26 = vmul.f32 %v9412_v58, %v9317_v40  ;;  %v5195_v56 = vmul.f32 %v9412_v58, %v9310_v1 }
 0x4ae   : > { %v5196_v9 = vmul.f32 %v9412_v58, %v9301_v22  ;;  %v5197_v47 = vmul.f32 %v9412_v58, %v9298_v38  ;;  %v5198_v40 = vmul.f32 %v9412_v58, %v9344_v46  ;;  %v5199_v1 = vmul.f32 %v9412_v58, %v9338_v35 }
 0x4af   : > { %v5200_v22 = vmul.f32 %v9412_v58, %v9329_v62  ;;  %v5201_v38 = vmul.f32 %v9412_v58, %v9326_v25  ;;  %v5202_v46 = vmul.f32 %v9412_v58, %v9362_v61  ;;  %v5203_v35 = vmul.f32 %v9412_v58, %v9351_v2 }
 0x4b0   : > { %v5204_v62 = vmul.f32 %v9412_v58, %v9371_v30  ;;  %v5205_v25 = vmul.f32 %v9412_v58, %v9358_v23 }
 0x4b1   : > { %5250 = vrot.lane.b32.xlu1 %v5174_v3, %s7167_s15  ;;  %5252 = vrot.lane.b32.xlu0 %v5175_v50, %s7167_s15 }
 0x4b5   : > { %5254 = vrot.lane.b32.xlu1 %v5176_v0, %s7167_s15  ;;  %5256 = vrot.lane.b32.xlu0 %v5177_v55, %s7167_s15 }
 0x4b9   : > { %5258 = vrot.lane.b32.xlu1 %v5178_v60, %s7167_s15  ;;  %5260 = vrot.lane.b32.xlu0 %v5179_v21, %s7167_s15 }
 0x4bd   : > { %5262 = vrot.lane.b32.xlu1 %v5180_v13, %s7167_s15  ;;  %5264 = vrot.lane.b32.xlu0 %v5181_v52, %s7167_s15 }
 0x4c1   : > { %5266 = vrot.lane.b32.xlu1 %v5182_v44, %s7167_s15  ;;  %5268 = vrot.lane.b32.xlu0 %v5183_v54, %s7167_s15 }
 0x4c5   : > { %5270 = vrot.lane.b32.xlu1 %v5184_v24, %s7167_s15  ;;  %5272 = vrot.lane.b32.xlu0 %v5185_v7, %s7167_s15 }
 0x4c9   : > { %5274 = vrot.lane.b32.xlu1 %v5186_v59, %s7167_s15  ;;  %5276 = vrot.lane.b32.xlu0 %v5187_v34, %s7167_s15 }
 0x4cd   : > { %5278 = vrot.lane.b32.xlu1 %v5188_v39, %s7167_s15  ;;  %5280 = vrot.lane.b32.xlu0 %v5189_v32, %s7167_s15 }
 0x4d1   : > { %5282 = vrot.lane.b32.xlu1 %v5190_v12, %s7167_s15  ;;  %5284 = vrot.lane.b32.xlu0 %v5191_v5, %s7167_s15 }
 0x4d5   : > { %5286 = vrot.lane.b32.xlu1 %v5192_v11, %s7167_s15  ;;  %5288 = vrot.lane.b32.xlu0 %v5193_v37, %s7167_s15 }
 0x4d9   : > { %5290 = vrot.lane.b32.xlu1 %v5194_v26, %s7167_s15  ;;  %5292 = vrot.lane.b32.xlu0 %v5195_v56, %s7167_s15 }
 0x4dd   : > { %5294 = vrot.lane.b32.xlu1 %v5196_v9, %s7167_s15  ;;  %5296 = vrot.lane.b32.xlu0 %v5197_v47, %s7167_s15 }
 0x4e1   : > { %5298 = vrot.lane.b32.xlu1 %v5198_v40, %s7167_s15  ;;  %5300 = vrot.lane.b32.xlu0 %v5199_v1, %s7167_s15 }
 0x4e5   : > { %5302 = vrot.lane.b32.xlu1 %v5200_v22, %s7167_s15  ;;  %5304 = vrot.lane.b32.xlu0 %v5201_v38, %s7167_s15 }
 0x4e9   : > { %5306 = vrot.lane.b32.xlu1 %v5202_v46, %s7167_s15  ;;  %5308 = vrot.lane.b32.xlu0 %v5203_v35, %s7167_s15 }
 0x4ed   : > { %5310 = vrot.lane.b32.xlu1 %v5204_v62, %s7167_s15  ;;  %5312 = vrot.lane.b32.xlu0 %v5205_v25, %s7167_s15 }
 0x51b   : > { %v5245_v31 = vpop.permute.xlu1 %5244  ;;  %v5243_v36 = vpop.permute.xlu0 %5242 }
 0x51c   : > { %v5353_v61 = vsel %vm682_vm1, %v5245_v31, 0.0  ;;  %v5350_v2 = vsel %vm682_vm1, %v5243_v36, 0.0 }
 0x51d   : > { %5354 = vadd.xlane.f32.xlu0 %v5353_v61  ;;  %5351 = vadd.xlane.f32.xlu1 %v5350_v2 }
 0x51f   : > { %v5247_v45 = vpop.permute.xlu1 %5246  ;;  %v5249_v43 = vpop.permute.xlu0 %5248 }
 0x520   : > { %v5356_v17 = vsel %vm682_vm1, %v5247_v45, 0.0  ;;  %v5359_v30 = vsel %vm682_vm1, %v5249_v43, 0.0 }
 0x521   : > { %5357 = vadd.xlane.f32.xlu0 %v5356_v17  ;;  %5360 = vadd.xlane.f32.xlu1 %v5359_v30 }
 0x523   : > { %v5251_v23 = vpop.permute.xlu1 %5250  ;;  %v5253_v8 = vpop.permute.xlu0 %5252 }
 0x524   : > { %v5362_v29 = vsel %vm682_vm1, %v5251_v23, 0.0  ;;  %v5365_v41 = vsel %vm682_vm1, %v5253_v8, 0.0  ;;  %v9558_v23 = vld [vmem:[#allocation4] ss:$0 sm:$0xff] }
 0x525   : > { %5363 = vadd.xlane.f32.xlu0 %v5362_v29  ;;  %5366 = vadd.xlane.f32.xlu1 %v5365_v41 }
 0x527   : > { %v5255_v51 = vpop.permute.xlu1 %5254  ;;  %v5257_v19 = vpop.permute.xlu0 %5256 }
 0x528   : > { %v5368_v28 = vsel %vm682_vm1, %v5255_v51, 0.0  ;;  %v5371_v33 = vsel %vm682_vm1, %v5257_v19, 0.0 }
 0x529   : > { %5369 = vadd.xlane.f32.xlu0 %v5368_v28  ;;  %5372 = vadd.xlane.f32.xlu1 %v5371_v33 }
 0x52b   : > { %v5259_v15 = vpop.permute.xlu1 %5258  ;;  %v5261_v16 = vpop.permute.xlu0 %5260 }
 0x52c   : > { %v5374_v42 = vsel %vm682_vm1, %v5259_v15, 0.0  ;;  %v5377_v20 = vsel %vm682_vm1, %v5261_v16, 0.0 }
 0x52d   : > { %5375 = vadd.xlane.f32.xlu0 %v5374_v42  ;;  %5378 = vadd.xlane.f32.xlu1 %v5377_v20 }
 0x52f   : > { %v5263_v4 = vpop.permute.xlu1 %5262  ;;  %v5265_v10 = vpop.permute.xlu0 %5264 }
 0x530   : > { %v5380_v57 = vsel %vm682_vm1, %v5263_v4, 0.0  ;;  %v5383_v63 = vsel %vm682_vm1, %v5265_v10, 0.0 }
 0x531   : > { %5381 = vadd.xlane.f32.xlu0 %v5380_v57  ;;  %5384 = vadd.xlane.f32.xlu1 %v5383_v63 }
 0x533   : > { %v5267_v48 = vpop.permute.xlu1 %5266  ;;  %v5269_v53 = vpop.permute.xlu0 %5268 }
 0x534   : > { %v5386_v6 = vsel %vm682_vm1, %v5267_v48, 0.0  ;;  %v5389_v58 = vsel %vm682_vm1, %v5269_v53, 0.0 }
 0x535   : > { %5387 = vadd.xlane.f32.xlu0 %v5386_v6  ;;  %5390 = vadd.xlane.f32.xlu1 %v5389_v58 }
 0x537   : > { %v5271_v18 = vpop.permute.xlu1 %5270  ;;  %v5273_v14 = vpop.permute.xlu0 %5272 }
 0x538   : > { %v5392_v27 = vsel %vm682_vm1, %v5271_v18, 0.0  ;;  %v5395_v49 = vsel %vm682_vm1, %v5273_v14, 0.0 }
 0x539   : > { %5393 = vadd.xlane.f32.xlu0 %v5392_v27  ;;  %5396 = vadd.xlane.f32.xlu1 %v5395_v49 }
 0x53b   : > { %v5275_v3 = vpop.permute.xlu1 %5274  ;;  %v5277_v50 = vpop.permute.xlu0 %5276 }
 0x53c   : > { %v5398_v0 = vsel %vm682_vm1, %v5275_v3, 0.0  ;;  %v5401_v55 = vsel %vm682_vm1, %v5277_v50, 0.0 }
 0x53d   : > { %5399 = vadd.xlane.f32.xlu0 %v5398_v0  ;;  %5402 = vadd.xlane.f32.xlu1 %v5401_v55 }
 0x53f   : > { %v5279_v60 = vpop.permute.xlu1 %5278  ;;  %v5281_v21 = vpop.permute.xlu0 %5280 }
 0x540   : > { %v5404_v13 = vsel %vm682_vm1, %v5279_v60, 0.0  ;;  %v5407_v52 = vsel %vm682_vm1, %v5281_v21, 0.0 }
 0x541   : > { %5405 = vadd.xlane.f32.xlu0 %v5404_v13  ;;  %5408 = vadd.xlane.f32.xlu1 %v5407_v52 }
 0x543   : > { %v5283_v44 = vpop.permute.xlu1 %5282  ;;  %v5285_v54 = vpop.permute.xlu0 %5284 }
 0x544   : > { %v5410_v24 = vsel %vm682_vm1, %v5283_v44, 0.0  ;;  %v5413_v7 = vsel %vm682_vm1, %v5285_v54, 0.0 }
 0x545   : > { %5411 = vadd.xlane.f32.xlu0 %v5410_v24  ;;  %5414 = vadd.xlane.f32.xlu1 %v5413_v7 }
 0x547   : > { %v5287_v59 = vpop.permute.xlu1 %5286  ;;  %v5289_v34 = vpop.permute.xlu0 %5288 }
 0x548   : > { %v5416_v39 = vsel %vm682_vm1, %v5287_v59, 0.0  ;;  %v5419_v32 = vsel %vm682_vm1, %v5289_v34, 0.0 }
 0x549   : > { %5417 = vadd.xlane.f32.xlu0 %v5416_v39  ;;  %5420 = vadd.xlane.f32.xlu1 %v5419_v32 }
 0x54b   : > { %v5291_v12 = vpop.permute.xlu1 %5290  ;;  %v5293_v5 = vpop.permute.xlu0 %5292 }
 0x54c   : > { %v5422_v11 = vsel %vm682_vm1, %v5291_v12, 0.0  ;;  %v5425_v37 = vsel %vm682_vm1, %v5293_v5, 0.0 }
 0x54d   : > { %5423 = vadd.xlane.f32.xlu0 %v5422_v11  ;;  %5426 = vadd.xlane.f32.xlu1 %v5425_v37 }
 0x54f   : > { %v5295_v26 = vpop.permute.xlu1 %5294  ;;  %v5297_v56 = vpop.permute.xlu0 %5296 }
 0x550   : > { %v5428_v9 = vsel %vm682_vm1, %v5295_v26, 0.0  ;;  %v5431_v47 = vsel %vm682_vm1, %v5297_v56, 0.0 }
 0x551   : > { %5429 = vadd.xlane.f32.xlu0 %v5428_v9  ;;  %5432 = vadd.xlane.f32.xlu1 %v5431_v47 }
 0x553   : > { %v5299_v40 = vpop.permute.xlu1 %5298  ;;  %v5301_v1 = vpop.permute.xlu0 %5300 }
 0x554   : > { %v5434_v22 = vsel %vm682_vm1, %v5299_v40, 0.0  ;;  %v5437_v38 = vsel %vm682_vm1, %v5301_v1, 0.0 }
 0x555   : > { %5435 = vadd.xlane.f32.xlu0 %v5434_v22  ;;  %5438 = vadd.xlane.f32.xlu1 %v5437_v38 }
 0x557   : > { %v5303_v46 = vpop.permute.xlu1 %5302  ;;  %v5305_v35 = vpop.permute.xlu0 %5304 }
 0x558   : > { %v5440_v62 = vsel %vm682_vm1, %v5303_v46, 0.0  ;;  %v5443_v25 = vsel %vm682_vm1, %v5305_v35, 0.0 }
 0x559   : > { %5441 = vadd.xlane.f32.xlu0 %v5440_v62  ;;  %5444 = vadd.xlane.f32.xlu1 %v5443_v25 }
 0x55b   : > { %v5307_v31 = vpop.permute.xlu1 %5306  ;;  %v5309_v36 = vpop.permute.xlu0 %5308 }
 0x55c   : > { %v5446_v61 = vsel %vm682_vm1, %v5307_v31, 0.0  ;;  %v5449_v2 = vsel %vm682_vm1, %v5309_v36, 0.0 }
 0x55d   : > { %5447 = vadd.xlane.f32.xlu0 %v5446_v61  ;;  %5450 = vadd.xlane.f32.xlu1 %v5449_v2 }
 0x55f   : > { %v5311_v45 = vpop.permute.xlu1 %5310  ;;  %v5313_v43 = vpop.permute.xlu0 %5312 }
 0x560   : > { %v5452_v17 = vsel %vm682_vm1, %v5311_v45, 0.0  ;;  %v5455_v30 = vsel %vm682_vm1, %v5313_v43, 0.0 }
 0x561   : > { %5453 = vadd.xlane.f32.xlu0 %v5452_v17  ;;  %5456 = vadd.xlane.f32.xlu1 %v5455_v30 }
 0x5aa   : > { %v5352_v8 = vpop.xlane.xlu1 %5351  ;;  %v5355_v29 = vpop.xlane.xlu0 %5354 }
 0x5ab   : > { %v5465_v41 = vadd.f32 %v9558_v23, %v5352_v8  ;;  %v5466_v51 = vadd.f32 %v9558_v23, %v5355_v29 }
 0x5ad   : > { %5502 = vst.msk [vmem:[%s7250_s28] sm:$0xff] %vm5501_vm9, %v5465_v41  ;;  %5503 = vst.msk [vmem:[%s7250_s28 + $0x8] sm:$0xff] %vm5501_vm9, %v5466_v51 }
 0x5ae   : > { %v5361_v19 = vpop.xlane.xlu1 %5360  ;;  %v5358_v28 = vpop.xlane.xlu0 %5357 }
 0x5af   : > { %v5468_v33 = vadd.f32 %v9558_v23, %v5361_v19  ;;  %v5467_v15 = vadd.f32 %v9558_v23, %v5358_v28 }
 0x5b1   : > { %5505 = vst.msk [vmem:[%s7250_s28 + $0x18] sm:$0xff] %vm5501_vm9, %v5468_v33  ;;  %5504 = vst.msk [vmem:[%s7250_s28 + $0x10] sm:$0xff] %vm5501_vm9, %v5467_v15 }
 0x5b2   : > { %v5367_v16 = vpop.xlane.xlu1 %5366  ;;  %v5364_v42 = vpop.xlane.xlu0 %5363 }
 0x5b3   : > { %v5470_v20 = vadd.f32 %v9558_v23, %v5367_v16  ;;  %v5469_v4 = vadd.f32 %v9558_v23, %v5364_v42 }
 0x5b5   : > { %5507 = vst.msk [vmem:[%s7250_s28 + $0x28] sm:$0xff] %vm5501_vm9, %v5470_v20  ;;  %5506 = vst.msk [vmem:[%s7250_s28 + $0x20] sm:$0xff] %vm5501_vm9, %v5469_v4 }
 0x5b6   : > { %v5373_v10 = vpop.xlane.xlu1 %5372  ;;  %v5370_v57 = vpop.xlane.xlu0 %5369 }
 0x5b7   : > { %v5472_v63 = vadd.f32 %v9558_v23, %v5373_v10  ;;  %v5471_v48 = vadd.f32 %v9558_v23, %v5370_v57 }
 0x5b9   : > { %5509 = vst.msk [vmem:[%s7250_s28 + $0x38] sm:$0xff] %vm5501_vm9, %v5472_v63  ;;  %5508 = vst.msk [vmem:[%s7250_s28 + $0x30] sm:$0xff] %vm5501_vm9, %v5471_v48 }
 0x5ba   : > { %v5379_v53 = vpop.xlane.xlu1 %5378  ;;  %v5376_v6 = vpop.xlane.xlu0 %5375 }
 0x5bb   : > { %v5474_v58 = vadd.f32 %v9558_v23, %v5379_v53  ;;  %v5473_v18 = vadd.f32 %v9558_v23, %v5376_v6 }
 0x5bd   : > { %5511 = vst.msk [vmem:[%s7250_s28 + $0x48] sm:$0xff] %vm5501_vm9, %v5474_v58  ;;  %5510 = vst.msk [vmem:[%s7250_s28 + $0x40] sm:$0xff] %vm5501_vm9, %v5473_v18 }
 0x5be   : > { %v5385_v14 = vpop.xlane.xlu1 %5384  ;;  %v5382_v27 = vpop.xlane.xlu0 %5381 }
 0x5bf   : > { %v5476_v49 = vadd.f32 %v9558_v23, %v5385_v14  ;;  %v5475_v3 = vadd.f32 %v9558_v23, %v5382_v27 }
 0x5c1   : > { %5513 = vst.msk [vmem:[%s7250_s28 + $0x58] sm:$0xff] %vm5501_vm9, %v5476_v49  ;;  %5512 = vst.msk [vmem:[%s7250_s28 + $0x50] sm:$0xff] %vm5501_vm9, %v5475_v3 }
 0x5c2   : > { %v5391_v50 = vpop.xlane.xlu1 %5390  ;;  %v5388_v0 = vpop.xlane.xlu0 %5387 }
 0x5c3   : > { %v5478_v55 = vadd.f32 %v9558_v23, %v5391_v50  ;;  %v5477_v60 = vadd.f32 %v9558_v23, %v5388_v0 }
 0x5c5   : > { %5515 = vst.msk [vmem:[%s7250_s28 + $0x68] sm:$0xff] %vm5501_vm9, %v5478_v55  ;;  %5514 = vst.msk [vmem:[%s7250_s28 + $0x60] sm:$0xff] %vm5501_vm9, %v5477_v60 }
 0x5c6   : > { %v5397_v21 = vpop.xlane.xlu1 %5396  ;;  %v5394_v13 = vpop.xlane.xlu0 %5393 }
 0x5c7   : > { %v5480_v52 = vadd.f32 %v9558_v23, %v5397_v21  ;;  %v5479_v44 = vadd.f32 %v9558_v23, %v5394_v13 }
 0x5c9   : > { %5517 = vst.msk [vmem:[%s7250_s28 + $0x78] sm:$0xff] %vm5501_vm9, %v5480_v52  ;;  %5516 = vst.msk [vmem:[%s7250_s28 + $0x70] sm:$0xff] %vm5501_vm9, %v5479_v44 }
 0x5ca   : > { %v5403_v54 = vpop.xlane.xlu1 %5402  ;;  %v5400_v24 = vpop.xlane.xlu0 %5399 }
 0x5cb   : > { %v5482_v7 = vadd.f32 %v9558_v23, %v5403_v54  ;;  %v5481_v59 = vadd.f32 %v9558_v23, %v5400_v24 }
 0x5cd   : > { %5519 = vst.msk [vmem:[%s7250_s28 + $0x88] sm:$0xff] %vm5501_vm9, %v5482_v7  ;;  %5518 = vst.msk [vmem:[%s7250_s28 + $0x80] sm:$0xff] %vm5501_vm9, %v5481_v59 }
 0x5ce   : > { %v5409_v34 = vpop.xlane.xlu1 %5408  ;;  %v5406_v39 = vpop.xlane.xlu0 %5405 }
 0x5cf   : > { %v5484_v32 = vadd.f32 %v9558_v23, %v5409_v34  ;;  %v5483_v12 = vadd.f32 %v9558_v23, %v5406_v39 }
 0x5d1   : > { %5521 = vst.msk [vmem:[%s7250_s28 + $0x98] sm:$0xff] %vm5501_vm9, %v5484_v32  ;;  %5520 = vst.msk [vmem:[%s7250_s28 + $0x90] sm:$0xff] %vm5501_vm9, %v5483_v12 }
 0x5d2   : > { %v5415_v5 = vpop.xlane.xlu1 %5414  ;;  %v5412_v11 = vpop.xlane.xlu0 %5411 }
 0x5d3   : > { %v5486_v37 = vadd.f32 %v9558_v23, %v5415_v5  ;;  %v5485_v26 = vadd.f32 %v9558_v23, %v5412_v11 }
 0x5d5   : > { %5523 = vst.msk [vmem:[%s7250_s28 + $0xa8] sm:$0xff] %vm5501_vm9, %v5486_v37  ;;  %5522 = vst.msk [vmem:[%s7250_s28 + $0xa0] sm:$0xff] %vm5501_vm9, %v5485_v26 }
 0x5d6   : > { %v5421_v56 = vpop.xlane.xlu1 %5420  ;;  %v5418_v9 = vpop.xlane.xlu0 %5417 }
 0x5d7   : > { %v5488_v47 = vadd.f32 %v9558_v23, %v5421_v56  ;;  %v5487_v40 = vadd.f32 %v9558_v23, %v5418_v9 }
 0x5d9   : > { %5525 = vst.msk [vmem:[%s7250_s28 + $0xb8] sm:$0xff] %vm5501_vm9, %v5488_v47  ;;  %5524 = vst.msk [vmem:[%s7250_s28 + $0xb0] sm:$0xff] %vm5501_vm9, %v5487_v40 }
 0x5da   : > { %v5427_v1 = vpop.xlane.xlu1 %5426  ;;  %v5424_v22 = vpop.xlane.xlu0 %5423 }
 0x5db   : > { %v5490_v38 = vadd.f32 %v9558_v23, %v5427_v1  ;;  %v5489_v46 = vadd.f32 %v9558_v23, %v5424_v22 }
 0x5dd   : > { %5527 = vst.msk [vmem:[%s7250_s28 + $0xc8] sm:$0xff] %vm5501_vm9, %v5490_v38  ;;  %5526 = vst.msk [vmem:[%s7250_s28 + $0xc0] sm:$0xff] %vm5501_vm9, %v5489_v46 }
 0x5de   : > { %v5433_v35 = vpop.xlane.xlu1 %5432  ;;  %v5430_v62 = vpop.xlane.xlu0 %5429 }
 0x5df   : > { %v5492_v25 = vadd.f32 %v9558_v23, %v5433_v35  ;;  %v5491_v31 = vadd.f32 %v9558_v23, %v5430_v62 }
 0x5e1   : > { %5529 = vst.msk [vmem:[%s7250_s28 + $0xd8] sm:$0xff] %vm5501_vm9, %v5492_v25  ;;  %5528 = vst.msk [vmem:[%s7250_s28 + $0xd0] sm:$0xff] %vm5501_vm9, %v5491_v31 }
 0x5e2   : > { %v5439_v36 = vpop.xlane.xlu1 %5438  ;;  %v5436_v61 = vpop.xlane.xlu0 %5435 }
 0x5e3   : > { %v5494_v2 = vadd.f32 %v9558_v23, %v5439_v36  ;;  %v5493_v45 = vadd.f32 %v9558_v23, %v5436_v61 }
 0x5e5   : > { %5531 = vst.msk [vmem:[%s7250_s28 + $0xe8] sm:$0xff] %vm5501_vm9, %v5494_v2  ;;  %5530 = vst.msk [vmem:[%s7250_s28 + $0xe0] sm:$0xff] %vm5501_vm9, %v5493_v45 }
 0x5e6   : > { %v5445_v43 = vpop.xlane.xlu1 %5444  ;;  %v5442_v17 = vpop.xlane.xlu0 %5441 }
 0x5e7   : > { %v5496_v30 = vadd.f32 %v9558_v23, %v5445_v43  ;;  %v5495_v8 = vadd.f32 %v9558_v23, %v5442_v17 }
 0x5e9   : > { %5533 = vst.msk [vmem:[%s7250_s28 + $0xf8] sm:$0xff] %vm5501_vm9, %v5496_v30  ;;  %5532 = vst.msk [vmem:[%s7250_s28 + $0xf0] sm:$0xff] %vm5501_vm9, %v5495_v8 }
 0x5ea   : > { %v5451_v29 = vpop.xlane.xlu1 %5450  ;;  %v5448_v41 = vpop.xlane.xlu0 %5447 }
 0x5eb   : > { %v5498_v51 = vadd.f32 %v9558_v23, %v5451_v29  ;;  %v5497_v19 = vadd.f32 %v9558_v23, %v5448_v41 }
 0x5ed   : > { %5535 = vst.msk [vmem:[%s7250_s28 + $0x108] sm:$0xff] %vm5501_vm9, %v5498_v51  ;;  %5534 = vst.msk [vmem:[%s7250_s28 + $0x100] sm:$0xff] %vm5501_vm9, %v5497_v19 }
 0x5ee   : > { %v5457_v28 = vpop.xlane.xlu1 %5456  ;;  %v5454_v33 = vpop.xlane.xlu0 %5453 }
 0x5ef   : > { %v5500_v15 = vadd.f32 %v9558_v23, %v5457_v28  ;;  %v5499_v16 = vadd.f32 %v9558_v23, %v5454_v33 }
 0x5f1   : > { %5537 = vst.msk [vmem:[%s7250_s28 + $0x118] sm:$0xff] %vm5501_vm9, %v5500_v15  ;;  %5536 = vst.msk [vmem:[%s7250_s28 + $0x110] sm:$0xff] %vm5501_vm9, %v5499_v16 }
 0x5f2 PF: > { %s17_s24 = sadd.s32 1, %s7159_s24   ;;  %s9938_s20 = smov %s7151_s22 }
 0x5f3   : > { %p14_p13 = scmp.ge.s32.totalorder %s17_s24, 18   ;;  %s9939_s21 = smov %s7155_s23 }
 0x5f4   : > { %s9940_s22 = smov %s9943_s4  ;;  %s9941_s23 = smov %s9947_s25 }
 0x5f5   :  { %16 = sbr.rel (!%p14_p13) target bundleno = 3 (0x3), region = 89 }

</bundles_post_ra>
